<compile_context>
chip_gen: v6e
topology: v6e:2x2x1
jax: 0.10.0
libtpu: 0.0.40
codegen_flags: <defaults>
</compile_context>

<pallas_src>
import jax
import jax.numpy as jnp
from jax.experimental import pallas as pl
from jax.experimental.pallas import tpu as pltpu

TILE_M_MAX = 2048   # per-step working set stays ~3 MiB << scoped-VMEM default
EPS = 1e-5          # nn.BatchNorm2d default


def _round_up(x, m):
    return ((x + m - 1) // m) * m


def _pad2d(x, rows, cols):
    r, c = x.shape
    if r == rows and c == cols:
        return x
    return jnp.pad(x, ((0, rows - r), (0, cols - c)))


# ----------------------------- Pallas kernels ------------------------------

def _matmul_stats_kernel(a_ref, w_ref, o_ref, sum_ref, sq_ref):
    """o = A @ W (no bias: it cancels through BN); per-tile channel sum/sumsq.

    Padded rows of A are zero, so (bias-free) they contribute exactly zero to
    both sums -> no row masking required.
    """
    o = jnp.dot(a_ref[...], w_ref[...], preferred_element_type=jnp.float32)
    o_ref[...] = o
    sum_ref[...] = jnp.sum(o, axis=0, keepdims=True)       # (1, Cpad)
    sq_ref[...] = jnp.sum(o * o, axis=0, keepdims=True)    # (1, Cpad)


def _matmul_bias_kernel(a_ref, w_ref, b_ref, o_ref):
    """Final layer GEMM + bias (tanh is applied outside, lane-dense)."""
    o = jnp.dot(a_ref[...], w_ref[...], preferred_element_type=jnp.float32)
    o_ref[...] = o + b_ref[...]


def _affine_relu_kernel(x_ref, s_ref, t_ref, o_ref):
    """Fused BatchNorm affine + ReLU; emits bf16 for the next layer."""
    y = jnp.maximum(x_ref[...] * s_ref[...] + t_ref[...], 0.0)
    o_ref[...] = y.astype(o_ref.dtype)


# --------------------------- pallas_call wrappers ---------------------------

def _matmul_stats(A, W, tile_m):
    P, Mpad, Kpad = A.shape
    Cpad = W.shape[2]
    gm = Mpad // tile_m
    return pl.pallas_call(
        _matmul_stats_kernel,
        out_shape=(jax.ShapeDtypeStruct((P, Mpad, Cpad), jnp.float32),
                   jax.ShapeDtypeStruct((P * gm, 1, Cpad), jnp.float32),
                   jax.ShapeDtypeStruct((P * gm, 1, Cpad), jnp.float32)),
        grid_spec=pltpu.PrefetchScalarGridSpec(
            num_scalar_prefetch=0,
            grid=(P, gm),
            in_specs=[pl.BlockSpec((None, tile_m, Kpad), lambda p, i: (p, i, 0)),
                      pl.BlockSpec((None, Kpad, Cpad), lambda p, i: (p, 0, 0))],
            out_specs=(pl.BlockSpec((None, tile_m, Cpad), lambda p, i: (p, i, 0)),
                       pl.BlockSpec((None, 1, Cpad),
                                    lambda p, i: (p * gm + i, 0, 0)),
                       pl.BlockSpec((None, 1, Cpad),
                                    lambda p, i: (p * gm + i, 0, 0)))),
        compiler_params=pltpu.CompilerParams(
            dimension_semantics=("parallel", "parallel")),
    )(A, W)


def _matmul_bias(A, W, b, tile_m):
    P, Mpad, Kpad = A.shape
    Cpad = W.shape[2]
    gm = Mpad // tile_m
    return pl.pallas_call(
        _matmul_bias_kernel,
        out_shape=jax.ShapeDtypeStruct((P, Mpad, Cpad), jnp.float32),
        grid_spec=pltpu.PrefetchScalarGridSpec(
            num_scalar_prefetch=0,
            grid=(P, gm),
            in_specs=[pl.BlockSpec((None, tile_m, Kpad), lambda p, i: (p, i, 0)),
                      pl.BlockSpec((None, Kpad, Cpad), lambda p, i: (p, 0, 0)),
                      pl.BlockSpec((1, Cpad), lambda p, i: (0, 0))],
            out_specs=pl.BlockSpec((None, tile_m, Cpad), lambda p, i: (p, i, 0))),
        compiler_params=pltpu.CompilerParams(
            dimension_semantics=("parallel", "parallel")),
    )(A, W, b)


def _affine_relu(x, scale, shift, tile_m):
    P, Mpad, Cpad = x.shape
    gm = Mpad // tile_m
    return pl.pallas_call(
        _affine_relu_kernel,
        out_shape=jax.ShapeDtypeStruct((P, Mpad, Cpad), jnp.bfloat16),
        grid_spec=pltpu.PrefetchScalarGridSpec(
            num_scalar_prefetch=0,
            grid=(P, gm),
            in_specs=[pl.BlockSpec((None, tile_m, Cpad), lambda p, i: (p, i, 0)),
                      pl.BlockSpec((1, Cpad), lambda p, i: (0, 0)),
                      pl.BlockSpec((1, Cpad), lambda p, i: (0, 0))],
            out_specs=pl.BlockSpec((None, tile_m, Cpad), lambda p, i: (p, i, 0))),
        compiler_params=pltpu.CompilerParams(
            dimension_semantics=("parallel", "parallel")),
    )(x, scale, shift)


# ------------------------------ layer blocks --------------------------------

def _bn_scale_shift(ssum, ssq, count, gamma, beta):
    mean = ssum / count
    var = jnp.maximum(ssq / count - mean * mean, 0.0)   # clamp: cancellation-safe
    inv = jax.lax.rsqrt(var + EPS)
    scale = gamma * inv
    shift = beta - mean * scale
    return scale, shift


def project_block(x, W, gamma, beta):
    """Layer 1: ConvTranspose2d(k=4, s=1, p=0) on a 1x1 input + BN + ReLU.

    Equivalent to a dense projection (N, Cin) @ (Cin, 16*Cout) -> (N, 4, 4, Cout).
    Conv bias dropped (cancels through training-mode BN).
    """
    N, H, Wsp, Cin = x.shape
    assert H == 1 and Wsp == 1
    Cout, k = W.shape[1], W.shape[2]
    ncol = k * k * Cout
    A = x.reshape(N, Cin)
    W2 = jnp.transpose(W, (0, 2, 3, 1)).reshape(Cin, ncol)   # cols = (kh, kw, co)

    Mpad = _round_up(N, 8)
    Kpad = _round_up(Cin, 128)
    Cpad = _round_up(ncol, 128)
    Ap = _pad2d(A.astype(jnp.bfloat16), Mpad, Kpad)[None]     # (1, Mpad, Kpad)
    Wp = _pad2d(W2.astype(jnp.bfloat16), Kpad, Cpad)[None]    # (1, Kpad, Cpad)

    o, psum, psq = _matmul_stats(Ap, Wp, tile_m=Mpad)
    # GEMM columns are (kh, kw, co): fold the 16 spatial groups into channels.
    ssum = jnp.sum(psum.reshape(-1, Cpad), axis=0)[:ncol].reshape(k * k, Cout).sum(0)
    ssq = jnp.sum(psq.reshape(-1, Cpad), axis=0)[:ncol].reshape(k * k, Cout).sum(0)
    scale, shift = _bn_scale_shift(ssum, ssq, N * k * k, gamma, beta)
    sc = _pad2d(jnp.tile(scale, k * k).reshape(1, ncol), 1, Cpad)
    sh = _pad2d(jnp.tile(shift, k * k).reshape(1, ncol), 1, Cpad)
    y = _affine_relu(o, sc, sh, tile_m=Mpad)                  # bf16
    return y[0, :N, :ncol].reshape(N, k, k, Cout)             # NHWC


def upsample_block(x, W, b, gamma, beta, final=False):
    """ConvTranspose2d(k=4, s=2, p=1) via sub-pixel (phase) decomposition.

    Output phase (oh%2, ow%2) only uses kernel taps (kh, kw) = (3-ph-2a, 3-pw-2b),
    a, b in {0,1}, applied to a 2x2 window of the 1-padded input, so each phase
    is a small GEMM with K = 4*Cin.  x is NHWC; returns NHWC.
    """
    N, H, Wsp, Cin = x.shape
    Cout, k = W.shape[1], W.shape[2]
    assert k == 4
    Mp = N * H * Wsp
    K = 4 * Cin

    xp = jnp.pad(x.astype(jnp.bfloat16), ((0, 0), (1, 1), (1, 1), (0, 0)))

    a_phases, w_phases = [], []
    for ph in range(2):
        for pw in range(2):
            taps, wts = [], []
            for a in range(2):
                for bb in range(2):
                    taps.append(xp[:, ph + a: ph + a + H, pw + bb: pw + bb + Wsp, :])
                    wts.append(W[:, :, 3 - ph - 2 * a, 3 - pw - 2 * bb])  # (Cin, Cout)
            a_phases.append(jnp.concatenate(taps, axis=-1).reshape(Mp, K))
            w_phases.append(jnp.concatenate(wts, axis=0))                 # (4*Cin, Cout)

    A = jnp.stack(a_phases, axis=0)                           # (4, Mp, K) bf16
    Wk = jnp.stack(w_phases, axis=0).astype(jnp.bfloat16)     # (4, K, Cout)

    tile_m = min(TILE_M_MAX, _round_up(Mp, 8))
    Mpad = _round_up(Mp, tile_m)
    Kpad = _round_up(K, 128)
    Cpad = _round_up(Cout, 128)
    A = jnp.pad(A, ((0, 0), (0, Mpad - Mp), (0, Kpad - K)))
    Wk = jnp.pad(Wk, ((0, 0), (0, Kpad - K), (0, Cpad - Cout)))

    if not final:
        o, psum, psq = _matmul_stats(A, Wk, tile_m)
        ssum = jnp.sum(psum.reshape(-1, Cpad), axis=0)[:Cout]
        ssq = jnp.sum(psq.reshape(-1, Cpad), axis=0)[:Cout]
        scale, shift = _bn_scale_shift(ssum, ssq, 4 * Mp, gamma, beta)
        sc = _pad2d(scale.reshape(1, Cout), 1, Cpad)
        sh = _pad2d(shift.reshape(1, Cout), 1, Cpad)
        y = _affine_relu(o, sc, sh, tile_m)                   # (4, Mpad, Cpad) bf16
    else:
        bp = _pad2d(b.reshape(1, Cout).astype(jnp.float32), 1, Cpad)
        y = _matmul_bias(A, Wk, bp, tile_m)                   # (4, Mpad, Cpad) f32

    # Interleave phases back into NHWC: phase p holds (oh, ow) = (2j+p//2, 2l+p%2).
    y = y[:, :Mp, :Cout].reshape(2, 2, N, H, Wsp, Cout)
    y = jnp.transpose(y, (2, 3, 0, 4, 1, 5)).reshape(N, 2 * H, 2 * Wsp, Cout)
    return y


# ------------------------------ Generator ----------------------------------

def init_generator_params(key, noize_dim=10, output_dim=3, hidden_dim=8):
    cfg = [
        (noize_dim, hidden_dim * 8, 4, 1, 0, True),
        (hidden_dim * 8, hidden_dim * 4, 4, 2, 1, True),
        (hidden_dim * 4, hidden_dim * 2, 4, 2, 1, True),
        (hidden_dim * 2, hidden_dim, 4, 2, 1, True),
        (hidden_dim, output_dim, 4, 2, 1, False),
    ]
    params = []
    for (cin, cout, k, s, p, has_bn) in cfg:
        key, kw, kb = jax.random.split(key, 3)
        W = 0.05 * jax.random.normal(kw, (cin, cout, k, k), jnp.float32)
        b = 0.05 * jax.random.normal(kb, (cout,), jnp.float32)
        gamma = jnp.ones((cout,), jnp.float32) if has_bn else None
        beta = jnp.zeros((cout,), jnp.float32) if has_bn else None
        params.append(dict(W=W, b=b, gamma=gamma, beta=beta,
                           stride=s, pad=p, has_bn=has_bn))
    return params


def generator_forward(params, noize):
    x = jnp.transpose(noize, (0, 2, 3, 1))          # NCHW -> NHWC once at entry
    x = project_block(x, params[0]["W"], params[0]["gamma"], params[0]["beta"])
    for layer in params[1:-1]:
        x = upsample_block(x, layer["W"], layer["b"],
                           layer["gamma"], layer["beta"], final=False)
    last = params[-1]
    x = upsample_block(x, last["W"], last["b"], None, None, final=True)
    x = jnp.transpose(x, (0, 3, 1, 2))              # NHWC -> NCHW once at exit
    # Tanh applied here (lane-dense, real channels only) instead of inside the
    # Cpad=128 GEMM epilogue where 125/128 lanes would be wasted EUP work.
    return jnp.tanh(x)


if __name__ == "__main__":
    key = jax.random.PRNGKey(0)
    kp, kn = jax.random.split(key)

    noize_dim, output_dim, hidden_dim, batch = 10, 3, 8, 2
    params = init_generator_params(kp, noize_dim, output_dim, hidden_dim)

    # gen_noize equivalent: (batch, noize_dim) -> (batch, noize_dim, 1, 1)
    noize = jax.random.normal(kn, (batch, noize_dim), jnp.float32)
    noize = noize.reshape(batch, noize_dim, 1, 1)

    forward = jax.jit(lambda z: generator_forward(params, z))
    out = jax.block_until_ready(forward(noize))

    assert out.shape == (batch, output_dim, 64, 64), out.shape
    assert bool(jnp.all(jnp.isfinite(out)))
    assert bool(jnp.all(jnp.abs(out) <= 1.0 + 1e-5))  # tanh output range
    print("KERNEL_OK")
</pallas_src>

<mosaic_0001>
module attributes {stable_mosaic.version = 11 : i64} {
  func.func @_matmul_stats_kernel(%arg0: i32, %arg1: i32, %arg2: memref<1x8x128xbf16, #tpu.memory_space<vmem>>, %arg3: memref<1x128x1024xbf16, #tpu.memory_space<vmem>>, %arg4: memref<1x8x1024xf32, #tpu.memory_space<vmem>>, %arg5: memref<1x1x1024xf32, #tpu.memory_space<vmem>>, %arg6: memref<1x1x1024xf32, #tpu.memory_space<vmem>>) attributes {dimension_semantics = [#tpu.dimension_semantics<parallel>, #tpu.dimension_semantics<parallel>], iteration_bounds = array<i64: 1, 1>, scalar_prefetch = 0 : i64, scratch_operands = 0 : i64, tpu.core_type = #tpu.core_type<tc>, window_params = [{transform_indices = @transform_0, window_bounds = array<i64: 1, 8, 128>}, {transform_indices = @transform_1, window_bounds = array<i64: 1, 128, 1024>}, {transform_indices = @transform_2, window_bounds = array<i64: 1, 8, 1024>}, {transform_indices = @transform_3, window_bounds = array<i64: 1, 1, 1024>}, {transform_indices = @transform_4, window_bounds = array<i64: 1, 1, 1024>}]} {
    %c0 = arith.constant 0 : index
    %c0_0 = arith.constant 0 : index
    %c0_1 = arith.constant 0 : index
    %0 = vector.load %arg2[%c0, %c0_0, %c0_1] : memref<1x8x128xbf16, #tpu.memory_space<vmem>>, vector<1x8x128xbf16>
    %1 = vector.shape_cast %0 : vector<1x8x128xbf16> to vector<8x128xbf16>
    %c0_2 = arith.constant 0 : index
    %c0_3 = arith.constant 0 : index
    %c0_4 = arith.constant 0 : index
    %2 = vector.load %arg3[%c0_2, %c0_3, %c0_4] : memref<1x128x1024xbf16, #tpu.memory_space<vmem>>, vector<1x128x1024xbf16>
    %3 = vector.shape_cast %2 : vector<1x128x1024xbf16> to vector<128x1024xbf16>
    %cst = arith.constant dense<0.000000e+00> : vector<8x1024xf32>
    %4 = tpu.matmul %1, %3, %cst {dimension_numbers = #tpu.dot_dimension_numbers<[1], [0], [0], [1], [0, 0, 1, 1], [], []>} : vector<8x128xbf16>, vector<128x1024xbf16>, vector<8x1024xf32> -> vector<8x1024xf32>
    %c0_5 = arith.constant 0 : index
    %c0_6 = arith.constant 0 : index
    %c0_7 = arith.constant 0 : index
    %5 = vector.load %arg4[%c0_5, %c0_6, %c0_7] : memref<1x8x1024xf32, #tpu.memory_space<vmem>>, vector<1x8x1024xf32>
    %6 = vector.shape_cast %5 : vector<1x8x1024xf32> to vector<8x1024xf32>
    %7 = vector.shape_cast %4 : vector<8x1024xf32> to vector<1x8x1024xf32>
    tpu.vector_store %arg4[%c0_5, %c0_6, %c0_7], %7 {strides = array<i32>} : memref<1x8x1024xf32, #tpu.memory_space<vmem>>, vector<1x8x1024xf32>,
    %cst_8 = arith.constant dense<0.000000e+00> : vector<1024xf32>
    %8 = vector.multi_reduction <add>, %4, %cst_8 [0] : vector<8x1024xf32> to vector<1024xf32>
    %9 = vector.shape_cast %8 : vector<1024xf32> to vector<1x1024xf32>
    %c0_9 = arith.constant 0 : index
    %c0_10 = arith.constant 0 : index
    %c0_11 = arith.constant 0 : index
    %10 = vector.load %arg5[%c0_9, %c0_10, %c0_11] : memref<1x1x1024xf32, #tpu.memory_space<vmem>>, vector<1x1x1024xf32>
    %11 = vector.shape_cast %10 : vector<1x1x1024xf32> to vector<1x1024xf32>
    %12 = vector.shape_cast %9 : vector<1x1024xf32> to vector<1x1x1024xf32>
    tpu.vector_store %arg5[%c0_9, %c0_10, %c0_11], %12 {strides = array<i32>} : memref<1x1x1024xf32, #tpu.memory_space<vmem>>, vector<1x1x1024xf32>,
    %13 = arith.mulf %4, %4 : vector<8x1024xf32>
    %cst_12 = arith.constant dense<0.000000e+00> : vector<1024xf32>
    %14 = vector.multi_reduction <add>, %13, %cst_12 [0] : vector<8x1024xf32> to vector<1024xf32>
    %15 = vector.shape_cast %14 : vector<1024xf32> to vector<1x1024xf32>
    %c0_13 = arith.constant 0 : index
    %c0_14 = arith.constant 0 : index
    %c0_15 = arith.constant 0 : index
    %16 = vector.load %arg6[%c0_13, %c0_14, %c0_15] : memref<1x1x1024xf32, #tpu.memory_space<vmem>>, vector<1x1x1024xf32>
    %17 = vector.shape_cast %16 : vector<1x1x1024xf32> to vector<1x1024xf32>
    %18 = vector.shape_cast %15 : vector<1x1024xf32> to vector<1x1x1024xf32>
    tpu.vector_store %arg6[%c0_13, %c0_14, %c0_15], %18 {strides = array<i32>} : memref<1x1x1024xf32, #tpu.memory_space<vmem>>, vector<1x1x1024xf32>,
    return
  }
  func.func @transform_0(%arg0: i32, %arg1: i32) -> (i32, i32, i32) {
    %c0_i32 = arith.constant 0 : i32
    %c0_i32_0 = arith.constant 0 : i32
    return %arg0, %arg1, %c0_i32 : i32, i32, i32
  }
  func.func @transform_1(%arg0: i32, %arg1: i32) -> (i32, i32, i32) {
    %c0_i32 = arith.constant 0 : i32
    %c0_i32_0 = arith.constant 0 : i32
    %c0_i32_1 = arith.constant 0 : i32
    return %arg0, %c0_i32, %c0_i32_0 : i32, i32, i32
  }
  func.func @transform_2(%arg0: i32, %arg1: i32) -> (i32, i32, i32) {
    %c0_i32 = arith.constant 0 : i32
    %c0_i32_0 = arith.constant 0 : i32
    return %arg0, %arg1, %c0_i32 : i32, i32, i32
  }
  func.func @transform_3(%arg0: i32, %arg1: i32) -> (i32, i32, i32) {
    %c1_i32 = arith.constant 1 : i32
    %0 = arith.muli %arg0, %c1_i32 : i32
    %1 = arith.addi %0, %arg1 : i32
    %c0_i32 = arith.constant 0 : i32
    %c0_i32_0 = arith.constant 0 : i32
    %c0_i32_1 = arith.constant 0 : i32
    return %1, %c0_i32, %c0_i32_0 : i32, i32, i32
  }
  func.func @transform_4(%arg0: i32, %arg1: i32) -> (i32, i32, i32) {
    %c1_i32 = arith.constant 1 : i32
    %0 = arith.muli %arg0, %c1_i32 : i32
    %1 = arith.addi %0, %arg1 : i32
    %c0_i32 = arith.constant 0 : i32
    %c0_i32_0 = arith.constant 0 : i32
    %c0_i32_1 = arith.constant 0 : i32
    return %1, %c0_i32, %c0_i32_0 : i32, i32, i32
  }
}

module attributes {stable_mosaic.version = 11 : i64} {
  func.func @_affine_relu_kernel(%arg0: i32, %arg1: i32, %arg2: memref<1x8x1024xf32, #tpu.memory_space<vmem>>, %arg3: memref<1x1024xf32, #tpu.memory_space<vmem>>, %arg4: memref<1x1024xf32, #tpu.memory_space<vmem>>, %arg5: memref<1x8x1024xbf16, #tpu.memory_space<vmem>>) attributes {dimension_semantics = [#tpu.dimension_semantics<parallel>, #tpu.dimension_semantics<parallel>], iteration_bounds = array<i64: 1, 1>, scalar_prefetch = 0 : i64, scratch_operands = 0 : i64, tpu.core_type = #tpu.core_type<tc>, window_params = [{transform_indices = @transform_0, window_bounds = array<i64: 1, 8, 1024>}, {pipeline_mode = #tpu.pipeline_mode<synchronous>, transform_indices = @transform_1, window_bounds = array<i64: 1, 1024>}, {pipeline_mode = #tpu.pipeline_mode<synchronous>, transform_indices = @transform_2, window_bounds = array<i64: 1, 1024>}, {transform_indices = @transform_3, window_bounds = array<i64: 1, 8, 1024>}]} {
    %c0 = arith.constant 0 : index
    %c0_0 = arith.constant 0 : index
    %c0_1 = arith.constant 0 : index
    %0 = vector.load %arg2[%c0, %c0_0, %c0_1] : memref<1x8x1024xf32, #tpu.memory_space<vmem>>, vector<1x8x1024xf32>
    %1 = vector.shape_cast %0 : vector<1x8x1024xf32> to vector<8x1024xf32>
    %c0_2 = arith.constant 0 : index
    %c0_3 = arith.constant 0 : index
    %2 = vector.load %arg3[%c0_2, %c0_3] : memref<1x1024xf32, #tpu.memory_space<vmem>>, vector<1x1024xf32>
    %3 = vector.broadcast %2 : vector<1x1024xf32> to vector<8x1024xf32>
    %4 = arith.mulf %1, %3 : vector<8x1024xf32>
    %c0_4 = arith.constant 0 : index
    %c0_5 = arith.constant 0 : index
    %5 = vector.load %arg4[%c0_4, %c0_5] : memref<1x1024xf32, #tpu.memory_space<vmem>>, vector<1x1024xf32>
    %6 = vector.broadcast %5 : vector<1x1024xf32> to vector<8x1024xf32>
    %7 = arith.addf %4, %6 : vector<8x1024xf32>
    %cst = arith.constant 0.000000e+00 : f32
    %8 = vector.broadcast %cst : f32 to vector<8x1024xf32>
    %9 = arith.maximumf %7, %8 : vector<8x1024xf32>
    %10 = arith.truncf %9 : vector<8x1024xf32> to vector<8x1024xbf16>
    %c0_6 = arith.constant 0 : index
    %c0_7 = arith.constant 0 : index
    %c0_8 = arith.constant 0 : index
    %11 = vector.load %arg5[%c0_6, %c0_7, %c0_8] : memref<1x8x1024xbf16, #tpu.memory_space<vmem>>, vector<1x8x1024xbf16>
    %12 = vector.shape_cast %11 : vector<1x8x1024xbf16> to vector<8x1024xbf16>
    %13 = vector.shape_cast %10 : vector<8x1024xbf16> to vector<1x8x1024xbf16>
    tpu.vector_store %arg5[%c0_6, %c0_7, %c0_8], %13 {strides = array<i32>} : memref<1x8x1024xbf16, #tpu.memory_space<vmem>>, vector<1x8x1024xbf16>,
    return
  }
  func.func @transform_0(%arg0: i32, %arg1: i32) -> (i32, i32, i32) {
    %c0_i32 = arith.constant 0 : i32
    %c0_i32_0 = arith.constant 0 : i32
    return %arg0, %arg1, %c0_i32 : i32, i32, i32
  }
  func.func @transform_1(%arg0: i32, %arg1: i32) -> (i32, i32) {
    %c0_i32 = arith.constant 0 : i32
    %c0_i32_0 = arith.constant 0 : i32
    %c0_i32_1 = arith.constant 0 : i32
    return %c0_i32, %c0_i32_0 : i32, i32
  }
  func.func @transform_2(%arg0: i32, %arg1: i32) -> (i32, i32) {
    %c0_i32 = arith.constant 0 : i32
    %c0_i32_0 = arith.constant 0 : i32
    %c0_i32_1 = arith.constant 0 : i32
    return %c0_i32, %c0_i32_0 : i32, i32
  }
  func.func @transform_3(%arg0: i32, %arg1: i32) -> (i32, i32, i32) {
    %c0_i32 = arith.constant 0 : i32
    %c0_i32_0 = arith.constant 0 : i32
    return %arg0, %arg1, %c0_i32 : i32, i32, i32
  }
}

module attributes {stable_mosaic.version = 11 : i64} {
  func.func @_matmul_stats_kernel(%arg0: i32, %arg1: i32, %arg2: memref<1x32x256xbf16, #tpu.memory_space<vmem>>, %arg3: memref<1x256x128xbf16, #tpu.memory_space<vmem>>, %arg4: memref<1x32x128xf32, #tpu.memory_space<vmem>>, %arg5: memref<1x1x128xf32, #tpu.memory_space<vmem>>, %arg6: memref<1x1x128xf32, #tpu.memory_space<vmem>>) attributes {dimension_semantics = [#tpu.dimension_semantics<parallel>, #tpu.dimension_semantics<parallel>], iteration_bounds = array<i64: 4, 1>, scalar_prefetch = 0 : i64, scratch_operands = 0 : i64, tpu.core_type = #tpu.core_type<tc>, window_params = [{transform_indices = @transform_0, window_bounds = array<i64: 1, 32, 256>}, {transform_indices = @transform_1, window_bounds = array<i64: 1, 256, 128>}, {transform_indices = @transform_2, window_bounds = array<i64: 1, 32, 128>}, {transform_indices = @transform_3, window_bounds = array<i64: 1, 1, 128>}, {transform_indices = @transform_4, window_bounds = array<i64: 1, 1, 128>}]} {
    %c0 = arith.constant 0 : index
    %c0_0 = arith.constant 0 : index
    %c0_1 = arith.constant 0 : index
    %0 = vector.load %arg2[%c0, %c0_0, %c0_1] : memref<1x32x256xbf16, #tpu.memory_space<vmem>>, vector<1x32x256xbf16>
    %1 = vector.shape_cast %0 : vector<1x32x256xbf16> to vector<32x256xbf16>
    %c0_2 = arith.constant 0 : index
    %c0_3 = arith.constant 0 : index
    %c0_4 = arith.constant 0 : index
    %2 = vector.load %arg3[%c0_2, %c0_3, %c0_4] : memref<1x256x128xbf16, #tpu.memory_space<vmem>>, vector<1x256x128xbf16>
    %3 = vector.shape_cast %2 : vector<1x256x128xbf16> to vector<256x128xbf16>
    %cst = arith.constant dense<0.000000e+00> : vector<32x128xf32>
    %4 = tpu.matmul %1, %3, %cst {dimension_numbers = #tpu.dot_dimension_numbers<[1], [0], [0], [1], [0, 0, 1, 1], [], []>} : vector<32x256xbf16>, vector<256x128xbf16>, vector<32x128xf32> -> vector<32x128xf32>
    %c0_5 = arith.constant 0 : index
    %c0_6 = arith.constant 0 : index
    %c0_7 = arith.constant 0 : index
    %5 = vector.load %arg4[%c0_5, %c0_6, %c0_7] : memref<1x32x128xf32, #tpu.memory_space<vmem>>, vector<1x32x128xf32>
    %6 = vector.shape_cast %5 : vector<1x32x128xf32> to vector<32x128xf32>
    %7 = vector.shape_cast %4 : vector<32x128xf32> to vector<1x32x128xf32>
    tpu.vector_store %arg4[%c0_5, %c0_6, %c0_7], %7 {strides = array<i32>} : memref<1x32x128xf32, #tpu.memory_space<vmem>>, vector<1x32x128xf32>,
    %cst_8 = arith.constant dense<0.000000e+00> : vector<128xf32>
    %8 = vector.multi_reduction <add>, %4, %cst_8 [0] : vector<32x128xf32> to vector<128xf32>
    %9 = vector.shape_cast %8 : vector<128xf32> to vector<1x128xf32>
    %c0_9 = arith.constant 0 : index
    %c0_10 = arith.constant 0 : index
    %c0_11 = arith.constant 0 : index
    %10 = vector.load %arg5[%c0_9, %c0_10, %c0_11] : memref<1x1x128xf32, #tpu.memory_space<vmem>>, vector<1x1x128xf32>
    %11 = vector.shape_cast %10 : vector<1x1x128xf32> to vector<1x128xf32>
    %12 = vector.shape_cast %9 : vector<1x128xf32> to vector<1x1x128xf32>
    tpu.vector_store %arg5[%c0_9, %c0_10, %c0_11], %12 {strides = array<i32>} : memref<1x1x128xf32, #tpu.memory_space<vmem>>, vector<1x1x128xf32>,
    %13 = arith.mulf %4, %4 : vector<32x128xf32>
    %cst_12 = arith.constant dense<0.000000e+00> : vector<128xf32>
    %14 = vector.multi_reduction <add>, %13, %cst_12 [0] : vector<32x128xf32> to vector<128xf32>
    %15 = vector.shape_cast %14 : vector<128xf32> to vector<1x128xf32>
    %c0_13 = arith.constant 0 : index
    %c0_14 = arith.constant 0 : index
    %c0_15 = arith.constant 0 : index
    %16 = vector.load %arg6[%c0_13, %c0_14, %c0_15] : memref<1x1x128xf32, #tpu.memory_space<vmem>>, vector<1x1x128xf32>
    %17 = vector.shape_cast %16 : vector<1x1x128xf32> to vector<1x128xf32>
    %18 = vector.shape_cast %15 : vector<1x128xf32> to vector<1x1x128xf32>
    tpu.vector_store %arg6[%c0_13, %c0_14, %c0_15], %18 {strides = array<i32>} : memref<1x1x128xf32, #tpu.memory_space<vmem>>, vector<1x1x128xf32>,
    return
  }
  func.func @transform_0(%arg0: i32, %arg1: i32) -> (i32, i32, i32) {
    %c0_i32 = arith.constant 0 : i32
    %c0_i32_0 = arith.constant 0 : i32
    return %arg0, %arg1, %c0_i32 : i32, i32, i32
  }
  func.func @transform_1(%arg0: i32, %arg1: i32) -> (i32, i32, i32) {
    %c0_i32 = arith.constant 0 : i32
    %c0_i32_0 = arith.constant 0 : i32
    %c0_i32_1 = arith.constant 0 : i32
    return %arg0, %c0_i32, %c0_i32_0 : i32, i32, i32
  }
  func.func @transform_2(%arg0: i32, %arg1: i32) -> (i32, i32, i32) {
    %c0_i32 = arith.constant 0 : i32
    %c0_i32_0 = arith.constant 0 : i32
    return %arg0, %arg1, %c0_i32 : i32, i32, i32
  }
  func.func @transform_3(%arg0: i32, %arg1: i32) -> (i32, i32, i32) {
    %c1_i32 = arith.constant 1 : i32
    %0 = arith.muli %arg0, %c1_i32 : i32
    %1 = arith.addi %0, %arg1 : i32
    %c0_i32 = arith.constant 0 : i32
    %c0_i32_0 = arith.constant 0 : i32
    %c0_i32_1 = arith.constant 0 : i32
    return %1, %c0_i32, %c0_i32_0 : i32, i32, i32
  }
  func.func @transform_4(%arg0: i32, %arg1: i32) -> (i32, i32, i32) {
    %c1_i32 = arith.constant 1 : i32
    %0 = arith.muli %arg0, %c1_i32 : i32
    %1 = arith.addi %0, %arg1 : i32
    %c0_i32 = arith.constant 0 : i32
    %c0_i32_0 = arith.constant 0 : i32
    %c0_i32_1 = arith.constant 0 : i32
    return %1, %c0_i32, %c0_i32_0 : i32, i32, i32
  }
}

module attributes {stable_mosaic.version = 11 : i64} {
  func.func @_affine_relu_kernel(%arg0: i32, %arg1: i32, %arg2: memref<1x32x128xf32, #tpu.memory_space<vmem>>, %arg3: memref<1x128xf32, #tpu.memory_space<vmem>>, %arg4: memref<1x128xf32, #tpu.memory_space<vmem>>, %arg5: memref<1x32x128xbf16, #tpu.memory_space<vmem>>) attributes {dimension_semantics = [#tpu.dimension_semantics<parallel>, #tpu.dimension_semantics<parallel>], iteration_bounds = array<i64: 4, 1>, scalar_prefetch = 0 : i64, scratch_operands = 0 : i64, tpu.core_type = #tpu.core_type<tc>, window_params = [{transform_indices = @transform_0, window_bounds = array<i64: 1, 32, 128>}, {pipeline_mode = #tpu.pipeline_mode<synchronous>, transform_indices = @transform_1, window_bounds = array<i64: 1, 128>}, {pipeline_mode = #tpu.pipeline_mode<synchronous>, transform_indices = @transform_2, window_bounds = array<i64: 1, 128>}, {transform_indices = @transform_3, window_bounds = array<i64: 1, 32, 128>}]} {
    %c0 = arith.constant 0 : index
    %c0_0 = arith.constant 0 : index
    %c0_1 = arith.constant 0 : index
    %0 = vector.load %arg2[%c0, %c0_0, %c0_1] : memref<1x32x128xf32, #tpu.memory_space<vmem>>, vector<1x32x128xf32>
    %1 = vector.shape_cast %0 : vector<1x32x128xf32> to vector<32x128xf32>
    %c0_2 = arith.constant 0 : index
    %c0_3 = arith.constant 0 : index
    %2 = vector.load %arg3[%c0_2, %c0_3] : memref<1x128xf32, #tpu.memory_space<vmem>>, vector<1x128xf32>
    %3 = vector.broadcast %2 : vector<1x128xf32> to vector<32x128xf32>
    %4 = arith.mulf %1, %3 : vector<32x128xf32>
    %c0_4 = arith.constant 0 : index
    %c0_5 = arith.constant 0 : index
    %5 = vector.load %arg4[%c0_4, %c0_5] : memref<1x128xf32, #tpu.memory_space<vmem>>, vector<1x128xf32>
    %6 = vector.broadcast %5 : vector<1x128xf32> to vector<32x128xf32>
    %7 = arith.addf %4, %6 : vector<32x128xf32>
    %cst = arith.constant 0.000000e+00 : f32
    %8 = vector.broadcast %cst : f32 to vector<32x128xf32>
    %9 = arith.maximumf %7, %8 : vector<32x128xf32>
    %10 = arith.truncf %9 : vector<32x128xf32> to vector<32x128xbf16>
    %c0_6 = arith.constant 0 : index
    %c0_7 = arith.constant 0 : index
    %c0_8 = arith.constant 0 : index
    %11 = vector.load %arg5[%c0_6, %c0_7, %c0_8] : memref<1x32x128xbf16, #tpu.memory_space<vmem>>, vector<1x32x128xbf16>
    %12 = vector.shape_cast %11 : vector<1x32x128xbf16> to vector<32x128xbf16>
    %13 = vector.shape_cast %10 : vector<32x128xbf16> to vector<1x32x128xbf16>
    tpu.vector_store %arg5[%c0_6, %c0_7, %c0_8], %13 {strides = array<i32>} : memref<1x32x128xbf16, #tpu.memory_space<vmem>>, vector<1x32x128xbf16>,
    return
  }
  func.func @transform_0(%arg0: i32, %arg1: i32) -> (i32, i32, i32) {
    %c0_i32 = arith.constant 0 : i32
    %c0_i32_0 = arith.constant 0 : i32
    return %arg0, %arg1, %c0_i32 : i32, i32, i32
  }
  func.func @transform_1(%arg0: i32, %arg1: i32) -> (i32, i32) {
    %c0_i32 = arith.constant 0 : i32
    %c0_i32_0 = arith.constant 0 : i32
    %c0_i32_1 = arith.constant 0 : i32
    return %c0_i32, %c0_i32_0 : i32, i32
  }
  func.func @transform_2(%arg0: i32, %arg1: i32) -> (i32, i32) {
    %c0_i32 = arith.constant 0 : i32
    %c0_i32_0 = arith.constant 0 : i32
    %c0_i32_1 = arith.constant 0 : i32
    return %c0_i32, %c0_i32_0 : i32, i32
  }
  func.func @transform_3(%arg0: i32, %arg1: i32) -> (i32, i32, i32) {
    %c0_i32 = arith.constant 0 : i32
    %c0_i32_0 = arith.constant 0 : i32
    return %arg0, %arg1, %c0_i32 : i32, i32, i32
  }
}

module attributes {stable_mosaic.version = 11 : i64} {
  func.func @_matmul_stats_kernel(%arg0: i32, %arg1: i32, %arg2: memref<1x128x128xbf16, #tpu.memory_space<vmem>>, %arg3: memref<1x128x128xbf16, #tpu.memory_space<vmem>>, %arg4: memref<1x128x128xf32, #tpu.memory_space<vmem>>, %arg5: memref<1x1x128xf32, #tpu.memory_space<vmem>>, %arg6: memref<1x1x128xf32, #tpu.memory_space<vmem>>) attributes {dimension_semantics = [#tpu.dimension_semantics<parallel>, #tpu.dimension_semantics<parallel>], iteration_bounds = array<i64: 4, 1>, scalar_prefetch = 0 : i64, scratch_operands = 0 : i64, tpu.core_type = #tpu.core_type<tc>, window_params = [{transform_indices = @transform_0, window_bounds = array<i64: 1, 128, 128>}, {transform_indices = @transform_1, window_bounds = array<i64: 1, 128, 128>}, {transform_indices = @transform_2, window_bounds = array<i64: 1, 128, 128>}, {transform_indices = @transform_3, window_bounds = array<i64: 1, 1, 128>}, {transform_indices = @transform_4, window_bounds = array<i64: 1, 1, 128>}]} {
    %c0 = arith.constant 0 : index
    %c0_0 = arith.constant 0 : index
    %c0_1 = arith.constant 0 : index
    %0 = vector.load %arg2[%c0, %c0_0, %c0_1] : memref<1x128x128xbf16, #tpu.memory_space<vmem>>, vector<1x128x128xbf16>
    %1 = vector.shape_cast %0 : vector<1x128x128xbf16> to vector<128x128xbf16>
    %c0_2 = arith.constant 0 : index
    %c0_3 = arith.constant 0 : index
    %c0_4 = arith.constant 0 : index
    %2 = vector.load %arg3[%c0_2, %c0_3, %c0_4] : memref<1x128x128xbf16, #tpu.memory_space<vmem>>, vector<1x128x128xbf16>
    %3 = vector.shape_cast %2 : vector<1x128x128xbf16> to vector<128x128xbf16>
    %cst = arith.constant dense<0.000000e+00> : vector<128x128xf32>
    %4 = tpu.matmul %1, %3, %cst {dimension_numbers = #tpu.dot_dimension_numbers<[1], [0], [0], [1], [0, 0, 1, 1], [], []>} : vector<128x128xbf16>, vector<128x128xbf16>, vector<128x128xf32> -> vector<128x128xf32>
    %c0_5 = arith.constant 0 : index
    %c0_6 = arith.constant 0 : index
    %c0_7 = arith.constant 0 : index
    %5 = vector.load %arg4[%c0_5, %c0_6, %c0_7] : memref<1x128x128xf32, #tpu.memory_space<vmem>>, vector<1x128x128xf32>
    %6 = vector.shape_cast %5 : vector<1x128x128xf32> to vector<128x128xf32>
    %7 = vector.shape_cast %4 : vector<128x128xf32> to vector<1x128x128xf32>
    tpu.vector_store %arg4[%c0_5, %c0_6, %c0_7], %7 {strides = array<i32>} : memref<1x128x128xf32, #tpu.memory_space<vmem>>, vector<1x128x128xf32>,
    %cst_8 = arith.constant dense<0.000000e+00> : vector<128xf32>
    %8 = vector.multi_reduction <add>, %4, %cst_8 [0] : vector<128x128xf32> to vector<128xf32>
    %9 = vector.shape_cast %8 : vector<128xf32> to vector<1x128xf32>
    %c0_9 = arith.constant 0 : index
    %c0_10 = arith.constant 0 : index
    %c0_11 = arith.constant 0 : index
    %10 = vector.load %arg5[%c0_9, %c0_10, %c0_11] : memref<1x1x128xf32, #tpu.memory_space<vmem>>, vector<1x1x128xf32>
    %11 = vector.shape_cast %10 : vector<1x1x128xf32> to vector<1x128xf32>
    %12 = vector.shape_cast %9 : vector<1x128xf32> to vector<1x1x128xf32>
    tpu.vector_store %arg5[%c0_9, %c0_10, %c0_11], %12 {strides = array<i32>} : memref<1x1x128xf32, #tpu.memory_space<vmem>>, vector<1x1x128xf32>,
    %13 = arith.mulf %4, %4 : vector<128x128xf32>
    %cst_12 = arith.constant dense<0.000000e+00> : vector<128xf32>
    %14 = vector.multi_reduction <add>, %13, %cst_12 [0] : vector<128x128xf32> to vector<128xf32>
    %15 = vector.shape_cast %14 : vector<128xf32> to vector<1x128xf32>
    %c0_13 = arith.constant 0 : index
    %c0_14 = arith.constant 0 : index
    %c0_15 = arith.constant 0 : index
    %16 = vector.load %arg6[%c0_13, %c0_14, %c0_15] : memref<1x1x128xf32, #tpu.memory_space<vmem>>, vector<1x1x128xf32>
    %17 = vector.shape_cast %16 : vector<1x1x128xf32> to vector<1x128xf32>
    %18 = vector.shape_cast %15 : vector<1x128xf32> to vector<1x1x128xf32>
    tpu.vector_store %arg6[%c0_13, %c0_14, %c0_15], %18 {strides = array<i32>} : memref<1x1x128xf32, #tpu.memory_space<vmem>>, vector<1x1x128xf32>,
    return
  }
  func.func @transform_0(%arg0: i32, %arg1: i32) -> (i32, i32, i32) {
    %c0_i32 = arith.constant 0 : i32
    %c0_i32_0 = arith.constant 0 : i32
    return %arg0, %arg1, %c0_i32 : i32, i32, i32
  }
  func.func @transform_1(%arg0: i32, %arg1: i32) -> (i32, i32, i32) {
    %c0_i32 = arith.constant 0 : i32
    %c0_i32_0 = arith.constant 0 : i32
    %c0_i32_1 = arith.constant 0 : i32
    return %arg0, %c0_i32, %c0_i32_0 : i32, i32, i32
  }
  func.func @transform_2(%arg0: i32, %arg1: i32) -> (i32, i32, i32) {
    %c0_i32 = arith.constant 0 : i32
    %c0_i32_0 = arith.constant 0 : i32
    return %arg0, %arg1, %c0_i32 : i32, i32, i32
  }
  func.func @transform_3(%arg0: i32, %arg1: i32) -> (i32, i32, i32) {
    %c1_i32 = arith.constant 1 : i32
    %0 = arith.muli %arg0, %c1_i32 : i32
    %1 = arith.addi %0, %arg1 : i32
    %c0_i32 = arith.constant 0 : i32
    %c0_i32_0 = arith.constant 0 : i32
    %c0_i32_1 = arith.constant 0 : i32
    return %1, %c0_i32, %c0_i32_0 : i32, i32, i32
  }
  func.func @transform_4(%arg0: i32, %arg1: i32) -> (i32, i32, i32) {
    %c1_i32 = arith.constant 1 : i32
    %0 = arith.muli %arg0, %c1_i32 : i32
    %1 = arith.addi %0, %arg1 : i32
    %c0_i32 = arith.constant 0 : i32
    %c0_i32_0 = arith.constant 0 : i32
    %c0_i32_1 = arith.constant 0 : i32
    return %1, %c0_i32, %c0_i32_0 : i32, i32, i32
  }
}

module attributes {stable_mosaic.version = 11 : i64} {
  func.func @_affine_relu_kernel(%arg0: i32, %arg1: i32, %arg2: memref<1x128x128xf32, #tpu.memory_space<vmem>>, %arg3: memref<1x128xf32, #tpu.memory_space<vmem>>, %arg4: memref<1x128xf32, #tpu.memory_space<vmem>>, %arg5: memref<1x128x128xbf16, #tpu.memory_space<vmem>>) attributes {dimension_semantics = [#tpu.dimension_semantics<parallel>, #tpu.dimension_semantics<parallel>], iteration_bounds = array<i64: 4, 1>, scalar_prefetch = 0 : i64, scratch_operands = 0 : i64, tpu.core_type = #tpu.core_type<tc>, window_params = [{transform_indices = @transform_0, window_bounds = array<i64: 1, 128, 128>}, {pipeline_mode = #tpu.pipeline_mode<synchronous>, transform_indices = @transform_1, window_bounds = array<i64: 1, 128>}, {pipeline_mode = #tpu.pipeline_mode<synchronous>, transform_indices = @transform_2, window_bounds = array<i64: 1, 128>}, {transform_indices = @transform_3, window_bounds = array<i64: 1, 128, 128>}]} {
    %c0 = arith.constant 0 : index
    %c0_0 = arith.constant 0 : index
    %c0_1 = arith.constant 0 : index
    %0 = vector.load %arg2[%c0, %c0_0, %c0_1] : memref<1x128x128xf32, #tpu.memory_space<vmem>>, vector<1x128x128xf32>
    %1 = vector.shape_cast %0 : vector<1x128x128xf32> to vector<128x128xf32>
    %c0_2 = arith.constant 0 : index
    %c0_3 = arith.constant 0 : index
    %2 = vector.load %arg3[%c0_2, %c0_3] : memref<1x128xf32, #tpu.memory_space<vmem>>, vector<1x128xf32>
    %3 = vector.broadcast %2 : vector<1x128xf32> to vector<128x128xf32>
    %4 = arith.mulf %1, %3 : vector<128x128xf32>
    %c0_4 = arith.constant 0 : index
    %c0_5 = arith.constant 0 : index
    %5 = vector.load %arg4[%c0_4, %c0_5] : memref<1x128xf32, #tpu.memory_space<vmem>>, vector<1x128xf32>
    %6 = vector.broadcast %5 : vector<1x128xf32> to vector<128x128xf32>
    %7 = arith.addf %4, %6 : vector<128x128xf32>
    %cst = arith.constant 0.000000e+00 : f32
    %8 = vector.broadcast %cst : f32 to vector<128x128xf32>
    %9 = arith.maximumf %7, %8 : vector<128x128xf32>
    %10 = arith.truncf %9 : vector<128x128xf32> to vector<128x128xbf16>
    %c0_6 = arith.constant 0 : index
    %c0_7 = arith.constant 0 : index
    %c0_8 = arith.constant 0 : index
    %11 = vector.load %arg5[%c0_6, %c0_7, %c0_8] : memref<1x128x128xbf16, #tpu.memory_space<vmem>>, vector<1x128x128xbf16>
    %12 = vector.shape_cast %11 : vector<1x128x128xbf16> to vector<128x128xbf16>
    %13 = vector.shape_cast %10 : vector<128x128xbf16> to vector<1x128x128xbf16>
    tpu.vector_store %arg5[%c0_6, %c0_7, %c0_8], %13 {strides = array<i32>} : memref<1x128x128xbf16, #tpu.memory_space<vmem>>, vector<1x128x128xbf16>,
    return
  }
  func.func @transform_0(%arg0: i32, %arg1: i32) -> (i32, i32, i32) {
    %c0_i32 = arith.constant 0 : i32
    %c0_i32_0 = arith.constant 0 : i32
    return %arg0, %arg1, %c0_i32 : i32, i32, i32
  }
  func.func @transform_1(%arg0: i32, %arg1: i32) -> (i32, i32) {
    %c0_i32 = arith.constant 0 : i32
    %c0_i32_0 = arith.constant 0 : i32
    %c0_i32_1 = arith.constant 0 : i32
    return %c0_i32, %c0_i32_0 : i32, i32
  }
  func.func @transform_2(%arg0: i32, %arg1: i32) -> (i32, i32) {
    %c0_i32 = arith.constant 0 : i32
    %c0_i32_0 = arith.constant 0 : i32
    %c0_i32_1 = arith.constant 0 : i32
    return %c0_i32, %c0_i32_0 : i32, i32
  }
  func.func @transform_3(%arg0: i32, %arg1: i32) -> (i32, i32, i32) {
    %c0_i32 = arith.constant 0 : i32
    %c0_i32_0 = arith.constant 0 : i32
    return %arg0, %arg1, %c0_i32 : i32, i32, i32
  }
}

module attributes {stable_mosaic.version = 11 : i64} {
  func.func @_matmul_stats_kernel(%arg0: i32, %arg1: i32, %arg2: memref<1x512x128xbf16, #tpu.memory_space<vmem>>, %arg3: memref<1x128x128xbf16, #tpu.memory_space<vmem>>, %arg4: memref<1x512x128xf32, #tpu.memory_space<vmem>>, %arg5: memref<1x1x128xf32, #tpu.memory_space<vmem>>, %arg6: memref<1x1x128xf32, #tpu.memory_space<vmem>>) attributes {dimension_semantics = [#tpu.dimension_semantics<parallel>, #tpu.dimension_semantics<parallel>], iteration_bounds = array<i64: 4, 1>, scalar_prefetch = 0 : i64, scratch_operands = 0 : i64, tpu.core_type = #tpu.core_type<tc>, window_params = [{transform_indices = @transform_0, window_bounds = array<i64: 1, 512, 128>}, {transform_indices = @transform_1, window_bounds = array<i64: 1, 128, 128>}, {transform_indices = @transform_2, window_bounds = array<i64: 1, 512, 128>}, {transform_indices = @transform_3, window_bounds = array<i64: 1, 1, 128>}, {transform_indices = @transform_4, window_bounds = array<i64: 1, 1, 128>}]} {
    %c0 = arith.constant 0 : index
    %c0_0 = arith.constant 0 : index
    %c0_1 = arith.constant 0 : index
    %0 = vector.load %arg2[%c0, %c0_0, %c0_1] : memref<1x512x128xbf16, #tpu.memory_space<vmem>>, vector<1x512x128xbf16>
    %1 = vector.shape_cast %0 : vector<1x512x128xbf16> to vector<512x128xbf16>
    %c0_2 = arith.constant 0 : index
    %c0_3 = arith.constant 0 : index
    %c0_4 = arith.constant 0 : index
    %2 = vector.load %arg3[%c0_2, %c0_3, %c0_4] : memref<1x128x128xbf16, #tpu.memory_space<vmem>>, vector<1x128x128xbf16>
    %3 = vector.shape_cast %2 : vector<1x128x128xbf16> to vector<128x128xbf16>
    %cst = arith.constant dense<0.000000e+00> : vector<512x128xf32>
    %4 = tpu.matmul %1, %3, %cst {dimension_numbers = #tpu.dot_dimension_numbers<[1], [0], [0], [1], [0, 0, 1, 1], [], []>} : vector<512x128xbf16>, vector<128x128xbf16>, vector<512x128xf32> -> vector<512x128xf32>
    %c0_5 = arith.constant 0 : index
    %c0_6 = arith.constant 0 : index
    %c0_7 = arith.constant 0 : index
    %5 = vector.load %arg4[%c0_5, %c0_6, %c0_7] : memref<1x512x128xf32, #tpu.memory_space<vmem>>, vector<1x512x128xf32>
    %6 = vector.shape_cast %5 : vector<1x512x128xf32> to vector<512x128xf32>
    %7 = vector.shape_cast %4 : vector<512x128xf32> to vector<1x512x128xf32>
    tpu.vector_store %arg4[%c0_5, %c0_6, %c0_7], %7 {strides = array<i32>} : memref<1x512x128xf32, #tpu.memory_space<vmem>>, vector<1x512x128xf32>,
    %cst_8 = arith.constant dense<0.000000e+00> : vector<128xf32>
    %8 = vector.multi_reduction <add>, %4, %cst_8 [0] : vector<512x128xf32> to vector<128xf32>
    %9 = vector.shape_cast %8 : vector<128xf32> to vector<1x128xf32>
    %c0_9 = arith.constant 0 : index
    %c0_10 = arith.constant 0 : index
    %c0_11 = arith.constant 0 : index
    %10 = vector.load %arg5[%c0_9, %c0_10, %c0_11] : memref<1x1x128xf32, #tpu.memory_space<vmem>>, vector<1x1x128xf32>
    %11 = vector.shape_cast %10 : vector<1x1x128xf32> to vector<1x128xf32>
    %12 = vector.shape_cast %9 : vector<1x128xf32> to vector<1x1x128xf32>
    tpu.vector_store %arg5[%c0_9, %c0_10, %c0_11], %12 {strides = array<i32>} : memref<1x1x128xf32, #tpu.memory_space<vmem>>, vector<1x1x128xf32>,
    %13 = arith.mulf %4, %4 : vector<512x128xf32>
    %cst_12 = arith.constant dense<0.000000e+00> : vector<128xf32>
    %14 = vector.multi_reduction <add>, %13, %cst_12 [0] : vector<512x128xf32> to vector<128xf32>
    %15 = vector.shape_cast %14 : vector<128xf32> to vector<1x128xf32>
    %c0_13 = arith.constant 0 : index
    %c0_14 = arith.constant 0 : index
    %c0_15 = arith.constant 0 : index
    %16 = vector.load %arg6[%c0_13, %c0_14, %c0_15] : memref<1x1x128xf32, #tpu.memory_space<vmem>>, vector<1x1x128xf32>
    %17 = vector.shape_cast %16 : vector<1x1x128xf32> to vector<1x128xf32>
    %18 = vector.shape_cast %15 : vector<1x128xf32> to vector<1x1x128xf32>
    tpu.vector_store %arg6[%c0_13, %c0_14, %c0_15], %18 {strides = array<i32>} : memref<1x1x128xf32, #tpu.memory_space<vmem>>, vector<1x1x128xf32>,
    return
  }
  func.func @transform_0(%arg0: i32, %arg1: i32) -> (i32, i32, i32) {
    %c0_i32 = arith.constant 0 : i32
    %c0_i32_0 = arith.constant 0 : i32
    return %arg0, %arg1, %c0_i32 : i32, i32, i32
  }
  func.func @transform_1(%arg0: i32, %arg1: i32) -> (i32, i32, i32) {
    %c0_i32 = arith.constant 0 : i32
    %c0_i32_0 = arith.constant 0 : i32
    %c0_i32_1 = arith.constant 0 : i32
    return %arg0, %c0_i32, %c0_i32_0 : i32, i32, i32
  }
  func.func @transform_2(%arg0: i32, %arg1: i32) -> (i32, i32, i32) {
    %c0_i32 = arith.constant 0 : i32
    %c0_i32_0 = arith.constant 0 : i32
    return %arg0, %arg1, %c0_i32 : i32, i32, i32
  }
  func.func @transform_3(%arg0: i32, %arg1: i32) -> (i32, i32, i32) {
    %c1_i32 = arith.constant 1 : i32
    %0 = arith.muli %arg0, %c1_i32 : i32
    %1 = arith.addi %0, %arg1 : i32
    %c0_i32 = arith.constant 0 : i32
    %c0_i32_0 = arith.constant 0 : i32
    %c0_i32_1 = arith.constant 0 : i32
    return %1, %c0_i32, %c0_i32_0 : i32, i32, i32
  }
  func.func @transform_4(%arg0: i32, %arg1: i32) -> (i32, i32, i32) {
    %c1_i32 = arith.constant 1 : i32
    %0 = arith.muli %arg0, %c1_i32 : i32
    %1 = arith.addi %0, %arg1 : i32
    %c0_i32 = arith.constant 0 : i32
    %c0_i32_0 = arith.constant 0 : i32
    %c0_i32_1 = arith.constant 0 : i32
    return %1, %c0_i32, %c0_i32_0 : i32, i32, i32
  }
}

module attributes {stable_mosaic.version = 11 : i64} {
  func.func @_affine_relu_kernel(%arg0: i32, %arg1: i32, %arg2: memref<1x512x128xf32, #tpu.memory_space<vmem>>, %arg3: memref<1x128xf32, #tpu.memory_space<vmem>>, %arg4: memref<1x128xf32, #tpu.memory_space<vmem>>, %arg5: memref<1x512x128xbf16, #tpu.memory_space<vmem>>) attributes {dimension_semantics = [#tpu.dimension_semantics<parallel>, #tpu.dimension_semantics<parallel>], iteration_bounds = array<i64: 4, 1>, scalar_prefetch = 0 : i64, scratch_operands = 0 : i64, tpu.core_type = #tpu.core_type<tc>, window_params = [{transform_indices = @transform_0, window_bounds = array<i64: 1, 512, 128>}, {pipeline_mode = #tpu.pipeline_mode<synchronous>, transform_indices = @transform_1, window_bounds = array<i64: 1, 128>}, {pipeline_mode = #tpu.pipeline_mode<synchronous>, transform_indices = @transform_2, window_bounds = array<i64: 1, 128>}, {transform_indices = @transform_3, window_bounds = array<i64: 1, 512, 128>}]} {
    %c0 = arith.constant 0 : index
    %c0_0 = arith.constant 0 : index
    %c0_1 = arith.constant 0 : index
    %0 = vector.load %arg2[%c0, %c0_0, %c0_1] : memref<1x512x128xf32, #tpu.memory_space<vmem>>, vector<1x512x128xf32>
    %1 = vector.shape_cast %0 : vector<1x512x128xf32> to vector<512x128xf32>
    %c0_2 = arith.constant 0 : index
    %c0_3 = arith.constant 0 : index
    %2 = vector.load %arg3[%c0_2, %c0_3] : memref<1x128xf32, #tpu.memory_space<vmem>>, vector<1x128xf32>
    %3 = vector.broadcast %2 : vector<1x128xf32> to vector<512x128xf32>
    %4 = arith.mulf %1, %3 : vector<512x128xf32>
    %c0_4 = arith.constant 0 : index
    %c0_5 = arith.constant 0 : index
    %5 = vector.load %arg4[%c0_4, %c0_5] : memref<1x128xf32, #tpu.memory_space<vmem>>, vector<1x128xf32>
    %6 = vector.broadcast %5 : vector<1x128xf32> to vector<512x128xf32>
    %7 = arith.addf %4, %6 : vector<512x128xf32>
    %cst = arith.constant 0.000000e+00 : f32
    %8 = vector.broadcast %cst : f32 to vector<512x128xf32>
    %9 = arith.maximumf %7, %8 : vector<512x128xf32>
    %10 = arith.truncf %9 : vector<512x128xf32> to vector<512x128xbf16>
    %c0_6 = arith.constant 0 : index
    %c0_7 = arith.constant 0 : index
    %c0_8 = arith.constant 0 : index
    %11 = vector.load %arg5[%c0_6, %c0_7, %c0_8] : memref<1x512x128xbf16, #tpu.memory_space<vmem>>, vector<1x512x128xbf16>
    %12 = vector.shape_cast %11 : vector<1x512x128xbf16> to vector<512x128xbf16>
    %13 = vector.shape_cast %10 : vector<512x128xbf16> to vector<1x512x128xbf16>
    tpu.vector_store %arg5[%c0_6, %c0_7, %c0_8], %13 {strides = array<i32>} : memref<1x512x128xbf16, #tpu.memory_space<vmem>>, vector<1x512x128xbf16>,
    return
  }
  func.func @transform_0(%arg0: i32, %arg1: i32) -> (i32, i32, i32) {
    %c0_i32 = arith.constant 0 : i32
    %c0_i32_0 = arith.constant 0 : i32
    return %arg0, %arg1, %c0_i32 : i32, i32, i32
  }
  func.func @transform_1(%arg0: i32, %arg1: i32) -> (i32, i32) {
    %c0_i32 = arith.constant 0 : i32
    %c0_i32_0 = arith.constant 0 : i32
    %c0_i32_1 = arith.constant 0 : i32
    return %c0_i32, %c0_i32_0 : i32, i32
  }
  func.func @transform_2(%arg0: i32, %arg1: i32) -> (i32, i32) {
    %c0_i32 = arith.constant 0 : i32
    %c0_i32_0 = arith.constant 0 : i32
    %c0_i32_1 = arith.constant 0 : i32
    return %c0_i32, %c0_i32_0 : i32, i32
  }
  func.func @transform_3(%arg0: i32, %arg1: i32) -> (i32, i32, i32) {
    %c0_i32 = arith.constant 0 : i32
    %c0_i32_0 = arith.constant 0 : i32
    return %arg0, %arg1, %c0_i32 : i32, i32, i32
  }
}

module attributes {stable_mosaic.version = 11 : i64} {
  func.func @_matmul_bias_kernel(%arg0: i32, %arg1: i32, %arg2: memref<1x2048x128xbf16, #tpu.memory_space<vmem>>, %arg3: memref<1x128x128xbf16, #tpu.memory_space<vmem>>, %arg4: memref<1x128xf32, #tpu.memory_space<vmem>>, %arg5: memref<1x2048x128xf32, #tpu.memory_space<vmem>>) attributes {dimension_semantics = [#tpu.dimension_semantics<parallel>, #tpu.dimension_semantics<parallel>], iteration_bounds = array<i64: 4, 1>, scalar_prefetch = 0 : i64, scratch_operands = 0 : i64, tpu.core_type = #tpu.core_type<tc>, window_params = [{transform_indices = @transform_0, window_bounds = array<i64: 1, 2048, 128>}, {transform_indices = @transform_1, window_bounds = array<i64: 1, 128, 128>}, {pipeline_mode = #tpu.pipeline_mode<synchronous>, transform_indices = @transform_2, window_bounds = array<i64: 1, 128>}, {transform_indices = @transform_3, window_bounds = array<i64: 1, 2048, 128>}]} {
    %c0 = arith.constant 0 : index
    %c0_0 = arith.constant 0 : index
    %c0_1 = arith.constant 0 : index
    %0 = vector.load %arg2[%c0, %c0_0, %c0_1] : memref<1x2048x128xbf16, #tpu.memory_space<vmem>>, vector<1x2048x128xbf16>
    %1 = vector.shape_cast %0 : vector<1x2048x128xbf16> to vector<2048x128xbf16>
    %c0_2 = arith.constant 0 : index
    %c0_3 = arith.constant 0 : index
    %c0_4 = arith.constant 0 : index
    %2 = vector.load %arg3[%c0_2, %c0_3, %c0_4] : memref<1x128x128xbf16, #tpu.memory_space<vmem>>, vector<1x128x128xbf16>
    %3 = vector.shape_cast %2 : vector<1x128x128xbf16> to vector<128x128xbf16>
    %cst = arith.constant dense<0.000000e+00> : vector<2048x128xf32>
    %4 = tpu.matmul %1, %3, %cst {dimension_numbers = #tpu.dot_dimension_numbers<[1], [0], [0], [1], [0, 0, 1, 1], [], []>} : vector<2048x128xbf16>, vector<128x128xbf16>, vector<2048x128xf32> -> vector<2048x128xf32>
    %c0_5 = arith.constant 0 : index
    %c0_6 = arith.constant 0 : index
    %5 = vector.load %arg4[%c0_5, %c0_6] : memref<1x128xf32, #tpu.memory_space<vmem>>, vector<1x128xf32>
    %6 = vector.broadcast %5 : vector<1x128xf32> to vector<2048x128xf32>
    %7 = arith.addf %4, %6 : vector<2048x128xf32>
    %c0_7 = arith.constant 0 : index
    %c0_8 = arith.constant 0 : index
    %c0_9 = arith.constant 0 : index
    %8 = vector.load %arg5[%c0_7, %c0_8, %c0_9] : memref<1x2048x128xf32, #tpu.memory_space<vmem>>, vector<1x2048x128xf32>
    %9 = vector.shape_cast %8 : vector<1x2048x128xf32> to vector<2048x128xf32>
    %10 = vector.shape_cast %7 : vector<2048x128xf32> to vector<1x2048x128xf32>
    tpu.vector_store %arg5[%c0_7, %c0_8, %c0_9], %10 {strides = array<i32>} : memref<1x2048x128xf32, #tpu.memory_space<vmem>>, vector<1x2048x128xf32>,
    return
  }
  func.func @transform_0(%arg0: i32, %arg1: i32) -> (i32, i32, i32) {
    %c0_i32 = arith.constant 0 : i32
    %c0_i32_0 = arith.constant 0 : i32
    return %arg0, %arg1, %c0_i32 : i32, i32, i32
  }
  func.func @transform_1(%arg0: i32, %arg1: i32) -> (i32, i32, i32) {
    %c0_i32 = arith.constant 0 : i32
    %c0_i32_0 = arith.constant 0 : i32
    %c0_i32_1 = arith.constant 0 : i32
    return %arg0, %c0_i32, %c0_i32_0 : i32, i32, i32
  }
  func.func @transform_2(%arg0: i32, %arg1: i32) -> (i32, i32) {
    %c0_i32 = arith.constant 0 : i32
    %c0_i32_0 = arith.constant 0 : i32
    %c0_i32_1 = arith.constant 0 : i32
    return %c0_i32, %c0_i32_0 : i32, i32
  }
  func.func @transform_3(%arg0: i32, %arg1: i32) -> (i32, i32, i32) {
    %c0_i32 = arith.constant 0 : i32
    %c0_i32_0 = arith.constant 0 : i32
    return %arg0, %arg1, %c0_i32 : i32, i32, i32
  }
}

</mosaic_0001>

<bundles_post_ra>
// kernel: tile.18
= control target key start
LH: loop header
LB: loop body
LE: loop exit
PB: predicated region body
PF: predicated region fallthrough
CT: control target
= control target key end

     0   :  { %s28_s0 = inlined_call_operand.vmem [shape: f32[64], index: 0, kind: input, shape index: {}]   ;;  %s29_s1 = inlined_call_operand.vmem [shape: f32[16,64], index: 1, kind: output, shape index: {}]  }
   0x1   :  { %v4_v0 = vld [vmem:[%s28_s0] ss:$0 sm:$0xff] }
   0x2   :  { %5 = vst [vmem:[%s29_s1] sm:$0xff] %v4_v0  ;;  %8 = vst [vmem:[%s29_s1 + $0x8] sm:$0xff] %v4_v0 }

// kernel: tile.19
= control target key start
LH: loop header
LB: loop body
LE: loop exit
PB: predicated region body
PF: predicated region fallthrough
CT: control target
= control target key end

     0   :  { %vm3_vm0 = vcmask 523264   ;;  %vm10_vm1 = vcmask 1048064   ;;  %s125_s0 = inlined_call_operand.vmem [shape: f32[16,64], index: 0, kind: input, shape index: {}]   ;;  %s126_s1 = inlined_call_operand.vmem [shape: f32[1,1024], index: 1, kind: output, shape index: {}]  }
   0x1   :  { %v75_v0 = vld [vmem:[%s125_s0 + $0x1] ss:$2 sm:$0xff]   ;;  %v2_v1 = vld [vmem:[%s125_s0] ss:$2 sm:$0xff]   ;;  %s84_s0 = smov 64  }
   0x2   :  { %8 = vrot.lane.b32.xlu0 %v75_v0, %s84_s0  ;;  %4 = vst.msk [vmem:[#allocation0] ss:$8 sm:$0xf] %vm3_vm0, %v2_v1   ;;  %5 = vst.msk [vmem:[#allocation0] ss:$8 sm:$0xf0] %vm3_vm0, %v2_v1  }
  0x74   :  { %v9_v2 = vpop.permute.xlu0 %8  }
  0x75   :  { %11 = vst.msk [vmem:[#allocation0] ss:$8 sm:$0xf] %vm10_vm1, %v9_v2   ;;  %12 = vst.msk [vmem:[#allocation0] ss:$8 sm:$0xf0] %vm10_vm1, %v9_v2  }
  0x7c   :  { %v17_v3 = vld [vmem:[#allocation0] sm:$0x1]  ;;  %v22_v4 = vld [vmem:[#allocation0 + $0x8] sm:$0x1]  ;;  %v28_v5 = vld [vmem:[#allocation0 + $0x10] sm:$0x1] }
  0x7d   :  { %20 = vst [vmem:[%s126_s1] sm:$0x1] %v17_v3  ;;  %76 = vst [vmem:[%s126_s1 + $0x1] sm:$0x1] %v22_v4  ;;  %v35_v6 = vld [vmem:[#allocation0 + $0x18] sm:$0x1] }
  0x7e   :  { %77 = vst [vmem:[%s126_s1 + $0x2] sm:$0x1] %v28_v5  ;;  %v42_v7 = vld [vmem:[#allocation0 + $0x20] sm:$0x1]  ;;  %v49_v8 = vld [vmem:[#allocation0 + $0x28] sm:$0x1] }
  0x7f   :  { %78 = vst [vmem:[%s126_s1 + $0x3] sm:$0x1] %v35_v6  ;;  %79 = vst [vmem:[%s126_s1 + $0x4] sm:$0x1] %v42_v7  ;;  %v56_v9 = vld [vmem:[#allocation0 + $0x30] sm:$0x1] }
  0x80   :  { %80 = vst [vmem:[%s126_s1 + $0x5] sm:$0x1] %v49_v8  ;;  %v63_v10 = vld [vmem:[#allocation0 + $0x38] sm:$0x1]  ;;  %81 = vst [vmem:[%s126_s1 + $0x6] sm:$0x1] %v56_v9 }
  0x81   :  { %82 = vst [vmem:[%s126_s1 + $0x7] sm:$0x1] %v63_v10 }

// kernel: squeeze.1
= control target key start
LH: loop header
LB: loop body
LE: loop exit
PB: predicated region body
PF: predicated region fallthrough
CT: control target
= control target key end

     0   :  { %vm131_vm0 = vcmask 523264   ;;  %vm186_vm1 = vcmask 1047556   ;;  %v315_v37 = vmov 0.0   ;;  %s400_s0 = inlined_call_operand.vmem [shape: bf16[1,2,1024], index: 0, kind: input, shape index: {}]   ;;  %s401_s1 = inlined_call_operand.vmem [shape: bf16[2,4,4,64], index: 1, kind: output, shape index: {}]  }
   0x1   :  { %v293_v0 = vld [vmem:[%s400_s0 + $0x7] sm:$0x1]  ;;  %v294_v1 = vld [vmem:[%s400_s0 + $0x6] sm:$0x1]  ;;  %v295_v2 = vld [vmem:[%s400_s0 + $0x5] sm:$0x1] }
   0x2   :  { %v18_v3 = vunpack.c.l.bf16 %v293_v0  ;;  %v34_v4 = vunpack.c.l.bf16 %v294_v1  ;;  %v50_v5 = vunpack.c.l.bf16 %v295_v2  ;;  %v296_v6 = vld [vmem:[%s400_s0 + $0x4] sm:$0x1]  ;;  %v297_v7 = vld [vmem:[%s400_s0 + $0x3] sm:$0x1]  ;;  %v298_v8 = vld [vmem:[%s400_s0 + $0x2] sm:$0x1] }
   0x3   :  { %v66_v9 = vunpack.c.l.bf16 %v296_v6  ;;  %v82_v10 = vunpack.c.l.bf16 %v297_v7  ;;  %v98_v11 = vunpack.c.l.bf16 %v298_v8  ;;  %v299_v12 = vld [vmem:[%s400_s0 + $0x1] sm:$0x1]  ;;  %v126_v13 = vld [vmem:[%s400_s0] sm:$0x1]  ;;  %s314_s0 = smov 64  }
   0x4   :  { %21 = vst [vmem:[#allocation1 + $0x38] sm:$0x3] %v18_v3  ;;  %37 = vst [vmem:[#allocation1 + $0x30] sm:$0x3] %v34_v4  ;;  %v113_v14 = vunpack.c.l.bf16 %v299_v12  ;;  %v127_v15 = vunpack.c.l.bf16 %v126_v13 }
   0x5   :  { %53 = vst [vmem:[#allocation1 + $0x28] sm:$0x3] %v50_v5  ;;  %69 = vst [vmem:[#allocation1 + $0x20] sm:$0x3] %v66_v9 }
   0x6   :  { %85 = vst [vmem:[#allocation1 + $0x18] sm:$0x3] %v82_v10  ;;  %101 = vst [vmem:[#allocation1 + $0x10] sm:$0x3] %v98_v11 }
   0x7   :  { %116 = vst [vmem:[#allocation1 + $0x8] sm:$0x3] %v113_v14  ;;  %129 = vst [vmem:[#allocation1] sm:$0x3] %v127_v15 }
   0xb   :  { %v171_v17 = vld [vmem:[#allocation1 + $0x30] sm:$0x3]   ;;  %v178_v18 = vld [vmem:[#allocation1 + $0x38] sm:$0x3]  }
   0xc   :  { %v164_v16 = vld [vmem:[#allocation1 + $0x28] sm:$0x3]   ;;  %v157_v21 = vld [vmem:[#allocation1 + $0x20] sm:$0x3]   ;;  %174 = vst.msk [vmem:[#allocation0 + $0x18] sm:$0x1] %vm131_vm0, %v171_v17  }
   0xd   :  { %v143_v19 = vld [vmem:[#allocation1 + $0x10] sm:$0x3]   ;;  %v150_v20 = vld [vmem:[#allocation1 + $0x18] sm:$0x3]   ;;  %167 = vst.msk [vmem:[#allocation0 + $0x12] sm:$0x1] %vm131_vm0, %v164_v16  }
   0xe   :  { %169 = vst.msk [vmem:[#allocation0 + $0x31] sm:$0x2] %vm131_vm0, %v164_v16   ;;  %176 = vst.msk [vmem:[#allocation0 + $0x37] sm:$0x2] %vm131_vm0, %v171_v17   ;;  %v130_v22 = vld [vmem:[#allocation1] sm:$0x3]  }
   0xf   :  { %181 = vst.msk [vmem:[#allocation0 + $0x1a] sm:$0x1] %vm131_vm0, %v178_v18   ;;  %183 = vst.msk [vmem:[#allocation0 + $0x39] sm:$0x2] %vm131_vm0, %v178_v18   ;;  %v136_v23 = vld [vmem:[#allocation1 + $0x8] sm:$0x3]  }
  0x10   :  { %146 = vst.msk [vmem:[#allocation0 + $0x8] sm:$0x1] %vm131_vm0, %v143_v19   ;;  %148 = vst.msk [vmem:[#allocation0 + $0x27] sm:$0x2] %vm131_vm0, %v143_v19  }
  0x11   :  { %153 = vst.msk [vmem:[#allocation0 + $0xa] sm:$0x1] %vm131_vm0, %v150_v20   ;;  %155 = vst.msk [vmem:[#allocation0 + $0x29] sm:$0x2] %vm131_vm0, %v150_v20  }
  0x12   :  { %160 = vst.msk [vmem:[#allocation0 + $0x10] sm:$0x1] %vm131_vm0, %v157_v21   ;;  %162 = vst.msk [vmem:[#allocation0 + $0x2f] sm:$0x2] %vm131_vm0, %v157_v21  }
  0x13   :  { %132 = vst.msk [vmem:[#allocation0] sm:$0x1] %vm131_vm0, %v130_v22   ;;  %134 = vst.msk [vmem:[#allocation0 + $0x1f] sm:$0x2] %vm131_vm0, %v130_v22  }
  0x14   :  { %139 = vst.msk [vmem:[#allocation0 + $0x2] sm:$0x1] %vm131_vm0, %v136_v23   ;;  %141 = vst.msk [vmem:[#allocation0 + $0x21] sm:$0x2] %vm131_vm0, %v136_v23  }
  0x15   :  { %v184_v24 = vld [vmem:[#allocation1] ss:$8 sm:$0xf]   ;;  %v200_v27 = vld [vmem:[#allocation1 + $0x1] ss:$8 sm:$0xf]  }
  0x16   :  { %v185_v25 = vld [vmem:[#allocation1] ss:$8 sm:$0xf0]   ;;  %v202_v28 = vld [vmem:[#allocation1 + $0x1] ss:$8 sm:$0xf0]  }
  0x17   :  { %v187_v26 = vsel %vm186_vm1, %v185_v25, %v184_v24  ;;  %v204_v29 = vsel %vm186_vm1, %v202_v28, %v200_v27 }
  0x18   :  { %v309_v30 = vpack.i.bf16 %v204_v29, %v187_v26 }
  0x1a   :  { %310 = vrot.lane.b32.xlu0 %v309_v30, %s314_s0 }
  0x8c   :  { %v311_v31 = vpop.permute.xlu0 %310 }
  0x8d   :  { %v313_v32 = vunpack.i.h.bf16 %v311_v31  ;;  %v312_v33 = vunpack.i.l.bf16 %v311_v31 }
  0x8f   :  { %209 = vst.msk [vmem:[#allocation0 + $0x21] ss:$2 sm:$0x3] %vm131_vm0, %v313_v32   ;;  %211 = vst.msk [vmem:[#allocation0 + $0x25] ss:$2 sm:$0xc] %vm131_vm0, %v313_v32  }
  0x90   :  { %213 = vst.msk [vmem:[#allocation0 + $0x29] ss:$2 sm:$0x30] %vm131_vm0, %v313_v32   ;;  %215 = vst.msk [vmem:[#allocation0 + $0x2d] ss:$2 sm:$0xc0] %vm131_vm0, %v313_v32  }
  0x91   :  { %192 = vst.msk [vmem:[#allocation0 + $0x1] ss:$2 sm:$0x3] %vm131_vm0, %v312_v33   ;;  %194 = vst.msk [vmem:[#allocation0 + $0x5] ss:$2 sm:$0xc] %vm131_vm0, %v312_v33  }
  0x92   :  { %196 = vst.msk [vmem:[#allocation0 + $0x9] ss:$2 sm:$0x30] %vm131_vm0, %v312_v33   ;;  %198 = vst.msk [vmem:[#allocation0 + $0xd] ss:$2 sm:$0xc0] %vm131_vm0, %v312_v33  }
  0x96   :  { %v250_v34 = vld [vmem:[#allocation0 + $0x20] sm:$0xf]  ;;  %v258_v35 = vld [vmem:[#allocation0 + $0x28] sm:$0xf] }
  0x97   :  { %v266_v36 = vld [vmem:[#allocation0 + $0x30] sm:$0xf]  ;;  %v251_v38 = vpack.c.bf16 %v315_v37, %v250_v34  ;;  %v259_v39 = vpack.c.bf16 %v315_v37, %v258_v35  ;;  %v274_v48 = vld [vmem:[#allocation0 + $0x38] sm:$0xf] }
  0x98   :  { %v267_v40 = vpack.c.bf16 %v315_v37, %v266_v36  ;;  %v221_v41 = vld [vmem:[#allocation0] sm:$0xf]  ;;  %v227_v42 = vld [vmem:[#allocation0 + $0x8] sm:$0xf]  ;;  %v275_v50 = vpack.c.bf16 %v315_v37, %v274_v48 }
  0x99   :  { %v234_v43 = vld [vmem:[#allocation0 + $0x10] sm:$0xf]  ;;  %v222_v44 = vpack.c.bf16 %v315_v37, %v221_v41  ;;  %v228_v45 = vpack.c.bf16 %v315_v37, %v227_v42  ;;  %v242_v47 = vld [vmem:[#allocation0 + $0x18] sm:$0xf]  ;;  %303 = vst [vmem:[%s401_s1 + $0x8] sm:$0x3] %v251_v38 }
  0x9a   :  { %v235_v46 = vpack.c.bf16 %v315_v37, %v234_v43  ;;  %304 = vst [vmem:[%s401_s1 + $0xa] sm:$0x3] %v259_v39  ;;  %305 = vst [vmem:[%s401_s1 + $0xc] sm:$0x3] %v267_v40  ;;  %v243_v49 = vpack.c.bf16 %v315_v37, %v242_v47 }
  0x9b   :  { %225 = vst [vmem:[%s401_s1] sm:$0x3] %v222_v44  ;;  %300 = vst [vmem:[%s401_s1 + $0x2] sm:$0x3] %v228_v45 }
  0x9c   :  { %301 = vst [vmem:[%s401_s1 + $0x4] sm:$0x3] %v235_v46  ;;  %302 = vst [vmem:[%s401_s1 + $0x6] sm:$0x3] %v243_v49 }
  0x9d   :  { %306 = vst [vmem:[%s401_s1 + $0xe] sm:$0x3] %v275_v50 }

// kernel: _lambda_.10
= control target key start
LH: loop header
LB: loop body
LE: loop exit
PB: predicated region body
PF: predicated region fallthrough
CT: control target
= control target key end

     0   :  { %v24_v0 = vlaneseq  ;;  %s240_s1 = inlined_call_operand.vmem [shape: f32[1,1024], index: 1, kind: input, shape index: {}]   ;;  %s241_s2 = inlined_call_operand.vmem [shape: f32[1,1024], index: 2, kind: input, shape index: {}]   ;;  %s242_s0 = inlined_call_operand.vmem [shape: f32[1,8,1024], index: 0, kind: input, shape index: {}]   ;;  %s243_s3 = inlined_call_operand.vmem [shape: bf16[1,8,1024], index: 3, kind: output, shape index: {}]  }
   0x1   :  { %v22_v2 = vld [vmem:[%s240_s1] sm:$0xff]  ;;  %v15_v9 = vld [vmem:[%s242_s0 + $0x8] sm:$0xff]  ;;  %v16_v18 = vld [vmem:[%s242_s0 + $0x10] sm:$0xff] }
   0x2   :  { %v25_v1 = vshrl.u32 %v24_v0, 7  ;;  %v72_v3 = vld [vmem:[%s241_s2] sm:$0xff]  ;;  %v17_v19 = vld [vmem:[%s242_s0 + $0x18] sm:$0xff]  ;;  %v19_v25 = vld [vmem:[%s242_s0 + $0x28] sm:$0xff] }
   0x3   :  { %v14_v8 = vld [vmem:[%s242_s0] sm:$0xff]  ;;  %v20_v38 = vld [vmem:[%s242_s0 + $0x30] sm:$0xff]  ;;  %v21_v39 = vld [vmem:[%s242_s0 + $0x38] sm:$0xff] }
   0x4   :  { %v26_v4 = vsub.s32 0, %v25_v1  ;;  %v30_v5 = vsub.s32 1, %v25_v1  ;;  %v34_v6 = vsub.s32 2, %v25_v1  ;;  %v38_v7 = vsub.s32 3, %v25_v1  ;;  %v18_v24 = vld [vmem:[%s242_s0 + $0x20] sm:$0xff] }
   0x5   :  { %v42_v10 = vsub.s32 4, %v25_v1  ;;  %v46_v11 = vsub.s32 5, %v25_v1  ;;  %v50_v12 = vsub.s32 6, %v25_v1  ;;  %v54_v13 = vsub.s32 7, %v25_v1 }
   0x6   :  { %v27_v14 = vrot.slane %v22_v2, %v26_v4  ;;  %v31_v15 = vrot.slane %v22_v2, %v30_v5  ;;  %v77_v16 = vrot.slane %v72_v3, %v26_v4  ;;  %v81_v17 = vrot.slane %v72_v3, %v30_v5 }
   0x7   :  { %v35_v20 = vrot.slane %v22_v2, %v34_v6  ;;  %v39_v21 = vrot.slane %v22_v2, %v38_v7  ;;  %v85_v22 = vrot.slane %v72_v3, %v34_v6  ;;  %v89_v23 = vrot.slane %v72_v3, %v38_v7 }
   0x8   :  { %v64_v26 = vmul.f32 %v27_v14, %v14_v8  ;;  %v65_v27 = vmul.f32 %v31_v15, %v15_v9  ;;  %v43_v28 = vrot.slane %v22_v2, %v42_v10  ;;  %v47_v29 = vrot.slane %v22_v2, %v46_v11 }
   0x9   :  { %v66_v30 = vmul.f32 %v35_v20, %v16_v18  ;;  %v67_v31 = vmul.f32 %v39_v21, %v17_v19  ;;  %v93_v32 = vrot.slane %v72_v3, %v42_v10  ;;  %v97_v33 = vrot.slane %v72_v3, %v46_v11 }
   0xa   :  { %v114_v34 = vadd.f32 %v77_v16, %v64_v26  ;;  %v115_v35 = vadd.f32 %v81_v17, %v65_v27  ;;  %v68_v36 = vmul.f32 %v43_v28, %v18_v24  ;;  %v69_v37 = vmul.f32 %v47_v29, %v19_v25 }
   0xb   :  { %v116_v40 = vadd.f32 %v85_v22, %v66_v30  ;;  %v117_v41 = vadd.f32 %v89_v23, %v67_v31  ;;  %v51_v42 = vrot.slane %v22_v2, %v50_v12  ;;  %v55_v43 = vrot.slane %v22_v2, %v54_v13 }
   0xc   :  { %v122_v44 = vmax.f32 %v114_v34, 0.0  ;;  %v123_v45 = vmax.f32 %v115_v35, 0.0  ;;  %v118_v46 = vadd.f32 %v93_v32, %v68_v36  ;;  %v119_v47 = vadd.f32 %v97_v33, %v69_v37 }
   0xd   :  { %v124_v48 = vmax.f32 %v116_v40, 0.0  ;;  %v125_v49 = vmax.f32 %v117_v41, 0.0  ;;  %v70_v50 = vmul.f32 %v51_v42, %v20_v38  ;;  %v71_v51 = vmul.f32 %v55_v43, %v21_v39 }
   0xe   :  { %v174_v52 = vpack.c.bf16 %v123_v45, %v122_v44  ;;  %v126_v53 = vmax.f32 %v118_v46, 0.0  ;;  %v127_v54 = vmax.f32 %v119_v47, 0.0  ;;  %v101_v55 = vrot.slane %v72_v3, %v50_v12 }
   0xf   :  { %v175_v56 = vpack.c.bf16 %v125_v49, %v124_v48  ;;  %v105_v57 = vrot.slane %v72_v3, %v54_v13 }
  0x10   :  { %162 = vst [vmem:[%s243_s3] sm:$0xff] %v174_v52  ;;  %v176_v58 = vpack.c.bf16 %v127_v54, %v126_v53  ;;  %v120_v59 = vadd.f32 %v101_v55, %v70_v50 }
  0x11   :  { %163 = vst [vmem:[%s243_s3 + $0x8] sm:$0xff] %v175_v56  ;;  %v121_v60 = vadd.f32 %v105_v57, %v71_v51 }
  0x12   :  { %164 = vst [vmem:[%s243_s3 + $0x10] sm:$0xff] %v176_v58  ;;  %v128_v61 = vmax.f32 %v120_v59, 0.0 }
  0x13   :  { %v129_v62 = vmax.f32 %v121_v60, 0.0 }
  0x15   :  { %v177_v63 = vpack.c.bf16 %v129_v62, %v128_v61 }
  0x17   :  { %165 = vst [vmem:[%s243_s3 + $0x18] sm:$0xff] %v177_v63 }

// kernel: _lambda_.9
= control target key start
LH: loop header
LB: loop body
LE: loop exit
PB: predicated region body
PF: predicated region fallthrough
CT: control target
= control target key end

     0   :  { %10 = vsyncpa [#allocation3], 0  ;;  %s972_s15 = smov [#allocation2]   ;;  %s1086_s0 = inlined_call_operand.vmem [shape: bf16[1,8,128], index: 0, kind: input, shape index: {}]   ;;  %s1087_s1 = inlined_call_operand.hbm [shape: bf16[1,128,1024], index: 1, kind: input, shape index: {}]   ;;  %s1088_s2 = inlined_call_operand.vmem [shape: f32[1,8,1024], index: 2, kind: output, shape index: {0}]   ;;  %s1089_s3 = inlined_call_operand.vmem [shape: f32[1,1,1024], index: 3, kind: output, shape index: {1}]   ;;  %s1090_s4 = inlined_call_operand.vmem [shape: f32[1,1,1024], index: 4, kind: output, shape index: {2}]  }
   0x1   :  { %s18_s16 = sshll.u32 %s972_s15, 4  ;;  %s19_s16 = int_to_ptr.vmem [resolvable:$true] %s18_s16 }
   0x2   :  { %s958_s17 = scalar_lea.vmem %s19_s16, 8192  ;;  %p963_p1 = scmp.lt.s32.totalorder %s19_s16, %s19_s16 }
   0x3   :  { %p959_p0 = scmp.ne.s32.totalorder %s19_s16, %s958_s17  ;;  %p964_p2 = scmp.lt.s32.totalorder %s958_s17, %s958_s17 }
   0x5   :  { %p965_p3 = por %p964_p2, %p963_p1 }
   0x7   :  { %p966_p4 = pnand %p965_p3, %p959_p0 }
   0x9   :  { %969 = shalt.err (!%p966_p4)
}
   0xa   :  { %s973_s18 = smov 512   ;;  %s974_s19 = smov 32  }
   0xb   :  { %24 = dma.hbm_to_vmem [thread:$0]  %s1087_s1, 8192, %s19_s16, [#allocation3], %s973_s18, %s973_s18, %s974_s19  }
   0xc   :  { %970 = dma.done.wait [#allocation3], 8192  }
   0xd   :  { %971 = vsyncadd [#allocation3], 4294959104  ;;  %v975_v0 = vmov 0   ;;  %v108_v1 = vld [vmem:[#allocation2 + $0x1c0] sm:$0xff]  ;;  %v109_v3 = vld [vmem:[#allocation2 + $0x1c8] sm:$0xff] }
   0xe   :  { %468 = vmatprep.mubr.bf16.mxu0 %v975_v0  ;;  %509 = vmatprep.mubr.bf16.mxu1 %v975_v0  ;;  %v112_v2 = vld [vmem:[#allocation2 + $0x1e0] sm:$0xff]  ;;  %v113_v5 = vld [vmem:[#allocation2 + $0x1e8] sm:$0xff]  ;;  %v110_v63 = vld [vmem:[#allocation2 + $0x1d0] sm:$0xff] }
   0xf   :  { %v938_v4 = vcombine.high %v108_v1, %v112_v2  ;;  %v937_v6 = vcombine.low %v108_v1, %v112_v2  ;;  %v100_v7 = vld [vmem:[#allocation2 + $0x180] sm:$0xff]  ;;  %v940_v9 = vcombine.high %v109_v3, %v113_v5  ;;  %v939_v10 = vcombine.low %v109_v3, %v113_v5  ;;  %v101_v12 = vld [vmem:[#allocation2 + $0x188] sm:$0xff]  ;;  %v114_v1 = vld [vmem:[#allocation2 + $0x1f0] sm:$0xff] }
  0x10   :  { %v104_v8 = vld [vmem:[#allocation2 + $0x1a0] sm:$0xff]  ;;  %v105_v13 = vld [vmem:[#allocation2 + $0x1a8] sm:$0xff]  ;;  %v111_v2 = vld [vmem:[#allocation2 + $0x1d8] sm:$0xff] }
  0x11   :  { %v930_v11 = vcombine.high %v100_v7, %v104_v8  ;;  %v92_v14 = vld [vmem:[#allocation2 + $0x140] sm:$0xff]  ;;  %436 = vmatprep.subr.bf16.mxu0 %v938_v4  ;;  %v932_v15 = vcombine.high %v101_v12, %v105_v13  ;;  %v93_v17 = vld [vmem:[#allocation2 + $0x148] sm:$0xff]  ;;  %477 = vmatprep.subr.bf16.mxu1 %v940_v9  ;;  %v929_v19 = vcombine.low %v100_v7, %v104_v8  ;;  %v115_v3 = vld [vmem:[#allocation2 + $0x1f8] sm:$0xff] }
  0x12   :  { %v96_v16 = vld [vmem:[#allocation2 + $0x160] sm:$0xff]  ;;  %v97_v18 = vld [vmem:[#allocation2 + $0x168] sm:$0xff]  ;;  %437 = vmatpush1.bf16.msra.mxu0 %v937_v6  ;;  %478 = vmatpush1.bf16.msra.mxu1 %v939_v10  ;;  %v931_v20 = vcombine.low %v101_v12, %v105_v13  ;;  %v942_v6 = vcombine.high %v110_v63, %v114_v1  ;;  %v944_v7 = vcombine.high %v111_v2, %v115_v3  ;;  %v102_v8 = vld [vmem:[#allocation2 + $0x190] sm:$0xff] }
  0x13   :  { %438 = vmatprep.subr.bf16.mxu0 %v930_v11  ;;  %v922_v21 = vcombine.high %v92_v14, %v96_v16  ;;  %479 = vmatprep.subr.bf16.mxu1 %v932_v15  ;;  %v924_v22 = vcombine.high %v93_v17, %v97_v18  ;;  %v84_v23 = vld [vmem:[#allocation2 + $0x100] sm:$0xff]  ;;  %v85_v25 = vld [vmem:[#allocation2 + $0x108] sm:$0xff]  ;;  %v921_v27 = vcombine.low %v92_v14, %v96_v16  ;;  %v106_v9 = vld [vmem:[#allocation2 + $0x1b0] sm:$0xff] }
  0x14   :  { %v88_v24 = vld [vmem:[#allocation2 + $0x120] sm:$0xff]  ;;  %v89_v26 = vld [vmem:[#allocation2 + $0x128] sm:$0xff]  ;;  %v923_v28 = vcombine.low %v93_v17, %v97_v18  ;;  %v103_v10 = vld [vmem:[#allocation2 + $0x198] sm:$0xff]  ;;  %v941_v13 = vcombine.low %v110_v63, %v114_v1  ;;  %v943_v14 = vcombine.low %v111_v2, %v115_v3  ;;  %v934_v15 = vcombine.high %v102_v8, %v106_v9 }
  0x15   :  { %v914_v29 = vcombine.high %v84_v23, %v88_v24  ;;  %v916_v30 = vcombine.high %v85_v25, %v89_v26  ;;  %v76_v31 = vld [vmem:[#allocation2 + $0xc0] sm:$0xff]  ;;  %v77_v33 = vld [vmem:[#allocation2 + $0xc8] sm:$0xff]  ;;  %v913_v35 = vcombine.low %v84_v23, %v88_v24  ;;  %v915_v36 = vcombine.low %v85_v25, %v89_v26  ;;  %v107_v11 = vld [vmem:[#allocation2 + $0x1b8] sm:$0xff] }
  0x16   :  { %439 = vmatpush1.bf16.msra.mxu0 %v929_v19  ;;  %480 = vmatpush1.bf16.msra.mxu1 %v931_v20  ;;  %v80_v32 = vld [vmem:[#allocation2 + $0xe0] sm:$0xff]  ;;  %v81_v34 = vld [vmem:[#allocation2 + $0xe8] sm:$0xff]  ;;  %v936_v16 = vcombine.high %v103_v10, %v107_v11  ;;  %v94_v17 = vld [vmem:[#allocation2 + $0x150] sm:$0xff] }
  0x17   :  { %440 = vmatprep.subr.bf16.mxu0 %v922_v21  ;;  %481 = vmatprep.subr.bf16.mxu1 %v924_v22  ;;  %v906_v37 = vcombine.high %v76_v31, %v80_v32  ;;  %v908_v38 = vcombine.high %v77_v33, %v81_v34  ;;  %v68_v39 = vld [vmem:[#allocation2 + $0x80] sm:$0xff]  ;;  %v69_v41 = vld [vmem:[#allocation2 + $0x88] sm:$0xff]  ;;  %v905_v43 = vcombine.low %v76_v31, %v80_v32  ;;  %v98_v18 = vld [vmem:[#allocation2 + $0x170] sm:$0xff] }
  0x18   :  { %v72_v40 = vld [vmem:[#allocation2 + $0xa0] sm:$0xff]  ;;  %v73_v42 = vld [vmem:[#allocation2 + $0xa8] sm:$0xff]  ;;  %v907_v44 = vcombine.low %v77_v33, %v81_v34  ;;  %v95_v19 = vld [vmem:[#allocation2 + $0x158] sm:$0xff]  ;;  %v933_v21 = vcombine.low %v102_v8, %v106_v9  ;;  %v935_v22 = vcombine.low %v103_v10, %v107_v11  ;;  %v926_v23 = vcombine.high %v94_v17, %v98_v18 }
  0x19   :  { %v898_v45 = vcombine.high %v68_v39, %v72_v40  ;;  %v900_v46 = vcombine.high %v69_v41, %v73_v42  ;;  %v60_v47 = vld [vmem:[#allocation2 + $0x40] sm:$0xff]  ;;  %v61_v49 = vld [vmem:[#allocation2 + $0x48] sm:$0xff]  ;;  %v897_v51 = vcombine.low %v68_v39, %v72_v40  ;;  %v899_v52 = vcombine.low %v69_v41, %v73_v42  ;;  %v99_v20 = vld [vmem:[#allocation2 + $0x178] sm:$0xff] }
  0x1a   :  { %441 = vmatpush1.bf16.msra.mxu0 %v921_v27  ;;  %482 = vmatpush1.bf16.msra.mxu1 %v923_v28  ;;  %v64_v48 = vld [vmem:[#allocation2 + $0x60] sm:$0xff]  ;;  %v65_v50 = vld [vmem:[#allocation2 + $0x68] sm:$0xff]  ;;  %v928_v24 = vcombine.high %v95_v19, %v99_v20  ;;  %v86_v25 = vld [vmem:[#allocation2 + $0x110] sm:$0xff] }
  0x1b   :  { %442 = vmatprep.subr.bf16.mxu0 %v914_v29  ;;  %483 = vmatprep.subr.bf16.mxu1 %v916_v30  ;;  %v890_v53 = vcombine.high %v60_v47, %v64_v48  ;;  %v892_v54 = vcombine.high %v61_v49, %v65_v50  ;;  %v52_v55 = vld [vmem:[#allocation2] sm:$0xff]  ;;  %v53_v57 = vld [vmem:[#allocation2 + $0x8] sm:$0xff]  ;;  %v889_v59 = vcombine.low %v60_v47, %v64_v48  ;;  %v90_v26 = vld [vmem:[#allocation2 + $0x130] sm:$0xff] }
  0x1c   :  { %v56_v56 = vld [vmem:[#allocation2 + $0x20] sm:$0xff]  ;;  %v57_v58 = vld [vmem:[#allocation2 + $0x28] sm:$0xff]  ;;  %v891_v60 = vcombine.low %v61_v49, %v65_v50  ;;  %v87_v27 = vld [vmem:[#allocation2 + $0x118] sm:$0xff]  ;;  %v925_v29 = vcombine.low %v94_v17, %v98_v18  ;;  %v927_v30 = vcombine.low %v95_v19, %v99_v20  ;;  %v918_v31 = vcombine.high %v86_v25, %v90_v26 }
  0x1d   :  { %v882_v61 = vcombine.high %v52_v55, %v56_v56  ;;  %v884_v62 = vcombine.high %v53_v57, %v57_v58  ;;  %v881_v4 = vcombine.low %v52_v55, %v56_v56  ;;  %v883_v5 = vcombine.low %v53_v57, %v57_v58  ;;  %v1010_v12 = vld [vmem:[%s1086_s0] sm:$0xf]  ;;  %v91_v28 = vld [vmem:[#allocation2 + $0x138] sm:$0xff]  ;;  %v78_v33 = vld [vmem:[#allocation2 + $0xd0] sm:$0xff] }
  0x1e   :  { %443 = vmatpush1.bf16.msra.mxu0 %v913_v35  ;;  %484 = vmatpush1.bf16.msra.mxu1 %v915_v36  ;;  %v920_v32 = vcombine.high %v87_v27, %v91_v28  ;;  %v82_v34 = vld [vmem:[#allocation2 + $0xf0] sm:$0xff]  ;;  %v79_v35 = vld [vmem:[#allocation2 + $0xd8] sm:$0xff] }
  0x1f   :  { %444 = vmatprep.subr.bf16.mxu0 %v906_v37  ;;  %485 = vmatprep.subr.bf16.mxu1 %v908_v38  ;;  %v83_v36 = vld [vmem:[#allocation2 + $0xf8] sm:$0xff]  ;;  %v917_v37 = vcombine.low %v86_v25, %v90_v26  ;;  %v919_v38 = vcombine.low %v87_v27, %v91_v28  ;;  %v910_v39 = vcombine.high %v78_v33, %v82_v34  ;;  %v70_v40 = vld [vmem:[#allocation2 + $0x90] sm:$0xff] }
  0x20   :  { %v74_v41 = vld [vmem:[#allocation2 + $0xb0] sm:$0xff]  ;;  %v71_v42 = vld [vmem:[#allocation2 + $0x98] sm:$0xff] }
  0x21   :  { %v62_v48 = vld [vmem:[#allocation2 + $0x50] sm:$0xff]  ;;  %v63_v50 = vld [vmem:[#allocation2 + $0x58] sm:$0xff] }
  0x22   :  { %445 = vmatpush1.bf16.msra.mxu0 %v905_v43  ;;  %486 = vmatpush1.bf16.msra.mxu1 %v907_v44  ;;  %v75_v43 = vld [vmem:[#allocation2 + $0xb8] sm:$0xff]  ;;  %v909_v44 = vcombine.low %v78_v33, %v82_v34  ;;  %v66_v49 = vld [vmem:[#allocation2 + $0x70] sm:$0xff] }
  0x23   :  { %446 = vmatprep.subr.bf16.mxu0 %v898_v45  ;;  %487 = vmatprep.subr.bf16.mxu1 %v900_v46  ;;  %v911_v45 = vcombine.low %v79_v35, %v83_v36  ;;  %v902_v46 = vcombine.high %v70_v40, %v74_v41  ;;  %v904_v47 = vcombine.high %v71_v42, %v75_v43  ;;  %v54_v56 = vld [vmem:[#allocation2 + $0x10] sm:$0xff]  ;;  %v55_v58 = vld [vmem:[#allocation2 + $0x18] sm:$0xff] }
  0x24   :  { %v58_v57 = vld [vmem:[#allocation2 + $0x30] sm:$0xff] }
  0x25   :  { %v885_v1 = vcombine.low %v54_v56, %v58_v57 }
  0x26   :  { %447 = vmatpush1.bf16.msra.mxu0 %v897_v51  ;;  %488 = vmatpush1.bf16.msra.mxu1 %v899_v52  ;;  %v67_v51 = vld [vmem:[#allocation2 + $0x78] sm:$0xff]  ;;  %v901_v52 = vcombine.low %v70_v40, %v74_v41  ;;  %v976_v41 = vmov 1966171168  }
  0x27   :  { %448 = vmatprep.subr.bf16.mxu0 %v890_v53  ;;  %489 = vmatprep.subr.bf16.mxu1 %v892_v54  ;;  %v903_v53 = vcombine.low %v71_v42, %v75_v43  ;;  %v894_v54 = vcombine.high %v62_v48, %v66_v49  ;;  %v896_v55 = vcombine.high %v63_v50, %v67_v51  ;;  %v669_v42 = vunpack.c.l.s4 %v976_v41 }
  0x2a   :  { %449 = vmatpush1.bf16.msra.mxu0 %v889_v59  ;;  %490 = vmatpush1.bf16.msra.mxu1 %v891_v60  ;;  %v59_v59 = vld [vmem:[#allocation2 + $0x38] sm:$0xff]  ;;  %v893_v60 = vcombine.low %v62_v48, %v66_v49 }
  0x2b   :  { %450 = vmatprep.subr.bf16.mxu0 %v882_v61  ;;  %491 = vmatprep.subr.bf16.mxu1 %v884_v62  ;;  %v895_v61 = vcombine.low %v63_v50, %v67_v51  ;;  %v886_v62 = vcombine.high %v54_v56, %v58_v57  ;;  %v888_v63 = vcombine.high %v55_v58, %v59_v59 }
  0x2c   :  { %v887_v2 = vcombine.low %v55_v58, %v59_v59 }
  0x2e   :  { %451 = vmatpush1.bf16.msra.mxu0 %v881_v4  ;;  %492 = vmatpush1.bf16.msra.mxu1 %v883_v5 }
  0x2f   :  { %518 = vmatprep.subr.bf16.mxu0 %v942_v6  ;;  %559 = vmatprep.subr.bf16.mxu1 %v944_v7 }
  0x31   :  { %469 = vmatmul.mubr.bf16.vlgmr.msra.gmra.mxu0 %v1010_v12  ;;  %510 = vmatmul.mubr.bf16.vlgmr.msra.gmra.mxu1 %v1010_v12 }
  0x32   :  { %519 = vmatpush1.bf16.msra.mxu0 %v941_v13  ;;  %560 = vmatpush1.bf16.msra.mxu1 %v943_v14 }
  0x33   :  { %520 = vmatprep.subr.bf16.mxu0 %v934_v15  ;;  %561 = vmatprep.subr.bf16.mxu1 %v936_v16 }
  0x34   :  { %550 = vmatprep.mubr.bf16.mxu0 %v975_v0  ;;  %591 = vmatprep.mubr.bf16.mxu1 %v975_v0  ;;  %v912_v0 = vcombine.high %v79_v35, %v83_v36 }
  0x36   :  { %521 = vmatpush1.bf16.msra.mxu0 %v933_v21  ;;  %562 = vmatpush1.bf16.msra.mxu1 %v935_v22 }
  0x37   :  { %522 = vmatprep.subr.bf16.mxu0 %v926_v23  ;;  %563 = vmatprep.subr.bf16.mxu1 %v928_v24 }
  0x3a   :  { %523 = vmatpush1.bf16.msra.mxu0 %v925_v29  ;;  %564 = vmatpush1.bf16.msra.mxu1 %v927_v30 }
  0x3b   :  { %524 = vmatprep.subr.bf16.mxu0 %v918_v31  ;;  %565 = vmatprep.subr.bf16.mxu1 %v920_v32 }
  0x3e   :  { %525 = vmatpush1.bf16.msra.mxu0 %v917_v37  ;;  %566 = vmatpush1.bf16.msra.mxu1 %v919_v38 }
  0x3f   :  { %526 = vmatprep.subr.bf16.mxu0 %v910_v39  ;;  %567 = vmatprep.subr.bf16.mxu1 %v912_v0 }
  0x42   :  { %527 = vmatpush1.bf16.msra.mxu0 %v909_v44  ;;  %568 = vmatpush1.bf16.msra.mxu1 %v911_v45 }
  0x43   :  { %528 = vmatprep.subr.bf16.mxu0 %v902_v46  ;;  %569 = vmatprep.subr.bf16.mxu1 %v904_v47  ;;  %v671_v46 = vlaneseq }
  0x45   :  { %v672_v56 = vshrl.u32 %v671_v46, 7 }
  0x46   :  { %529 = vmatpush1.bf16.msra.mxu0 %v901_v52  ;;  %570 = vmatpush1.bf16.msra.mxu1 %v903_v53  ;;  %v670_v52 = vunpack.c.0.s8 %v669_v42 }
  0x47   :  { %530 = vmatprep.subr.bf16.mxu0 %v894_v54  ;;  %571 = vmatprep.subr.bf16.mxu1 %v896_v55 }
  0x4a   :  { %531 = vmatpush1.bf16.msra.mxu0 %v893_v60  ;;  %572 = vmatpush1.bf16.msra.mxu1 %v895_v61 }
  0x4b   :  { %532 = vmatprep.subr.bf16.mxu0 %v886_v62  ;;  %573 = vmatprep.subr.bf16.mxu1 %v888_v63 }
  0x4e   :  { %533 = vmatpush1.bf16.msra.mxu0 %v885_v1  ;;  %574 = vmatpush1.bf16.msra.mxu1 %v887_v2  ;;  %v1042_v2 = vsub.s32 %v670_v52, %v672_v56 }
  0x51   :  { %551 = vmatmul.mubr.bf16.vlgmr.msra.gmra.mxu0 %v1010_v12  ;;  %592 = vmatmul.mubr.bf16.vlgmr.msra.gmra.mxu1 %v1010_v12 }
  0xf1   :  { %v470_v3 = vpop.f32.mrf.mxu0  ;;  %v511_v4 = vpop.f32.mrf.mxu1 }
  0xf2   :  { %600 = vst [vmem:[%s1088_s2] sm:$0xff] %v470_v3  ;;  %602 = vst [vmem:[%s1088_s2 + $0x10] sm:$0xff] %v511_v4  ;;  %v715_v11 = vmul.f32 %v470_v3, %v470_v3  ;;  %v717_v12 = vmul.f32 %v511_v4, %v511_v4  ;;  %v608_v17 = vrot.slane %v470_v3, 4  ;;  %v620_v19 = vrot.slane %v511_v4, 4 }
  0xf3   :  { %v472_v5 = vpop.f32.mrf.mxu0  ;;  %v513_v6 = vpop.f32.mrf.mxu1 }
  0xf4   :  { %601 = vst [vmem:[%s1088_s2 + $0x8] sm:$0xff] %v472_v5  ;;  %603 = vst [vmem:[%s1088_s2 + $0x18] sm:$0xff] %v513_v6  ;;  %v614_v13 = vrot.slane %v472_v5, 4  ;;  %v716_v14 = vmul.f32 %v472_v5, %v472_v5  ;;  %v626_v15 = vrot.slane %v513_v6, 4  ;;  %v718_v16 = vmul.f32 %v513_v6, %v513_v6 }
  0xf5   :  { %v474_v7 = vpop.f32.mrf.mxu0  ;;  %v515_v8 = vpop.f32.mrf.mxu1  ;;  %v723_v18 = vrot.slane %v715_v11, 4  ;;  %v735_v20 = vrot.slane %v717_v12, 4  ;;  %v609_v25 = vadd.f32 %v608_v17, %v470_v3  ;;  %v621_v27 = vadd.f32 %v620_v19, %v511_v4 }
  0xf6   :  { %v615_v21 = vadd.f32 %v614_v13, %v472_v5  ;;  %v729_v22 = vrot.slane %v716_v14, 4  ;;  %v627_v23 = vadd.f32 %v626_v15, %v513_v6  ;;  %v741_v24 = vrot.slane %v718_v16, 4 }
  0xf7   :  { %v475_v9 = vpop.f32.mrf.mxu0  ;;  %v516_v10 = vpop.f32.mrf.mxu1  ;;  %v724_v26 = vadd.f32 %v723_v18, %v715_v11  ;;  %v736_v28 = vadd.f32 %v735_v20, %v717_v12  ;;  %v610_v33 = vrot.slane %v609_v25, 2  ;;  %v622_v35 = vrot.slane %v621_v27, 2 }
  0xf8   :  { %v616_v29 = vrot.slane %v615_v21, 2  ;;  %v730_v30 = vadd.f32 %v729_v22, %v716_v14  ;;  %v628_v31 = vrot.slane %v627_v23, 2  ;;  %v742_v32 = vadd.f32 %v741_v24, %v718_v16 }
  0xf9   :  { %v725_v34 = vrot.slane %v724_v26, 2  ;;  %v737_v36 = vrot.slane %v736_v28, 2  ;;  %v611_v40 = vadd.f32 %v610_v33, %v609_v25  ;;  %v623_v44 = vadd.f32 %v622_v35, %v621_v27 }
  0xfa   :  { %v617_v37 = vadd.f32 %v616_v29, %v615_v21  ;;  %v731_v38 = vrot.slane %v730_v30, 2  ;;  %v629_v39 = vadd.f32 %v628_v31, %v627_v23  ;;  %v743_v0 = vrot.slane %v742_v32, 2 }
  0xfb   :  { %v726_v43 = vadd.f32 %v725_v34, %v724_v26  ;;  %v738_v45 = vadd.f32 %v737_v36, %v736_v28  ;;  %v612_v51 = vrot.slane %v611_v40, 1  ;;  %v624_v54 = vrot.slane %v623_v44, 1 }
  0xfc   :  { %v618_v47 = vrot.slane %v617_v37, 1  ;;  %v732_v48 = vadd.f32 %v731_v38, %v730_v30  ;;  %v630_v49 = vrot.slane %v629_v39, 1  ;;  %v744_v50 = vadd.f32 %v743_v0, %v742_v32 }
  0xfd   :  { %v727_v53 = vrot.slane %v726_v43, 1  ;;  %v739_v55 = vrot.slane %v738_v45, 1  ;;  %v1034_v61 = vadd.f32 %v612_v51, %v611_v40  ;;  %v1038_v63 = vadd.f32 %v624_v54, %v623_v44 }
  0xfe   :  { %v1030_v57 = vadd.f32 %v618_v47, %v617_v37  ;;  %v733_v58 = vrot.slane %v732_v48, 1  ;;  %v1032_v59 = vadd.f32 %v630_v49, %v629_v39  ;;  %v745_v60 = vrot.slane %v744_v50, 1 }
  0xff   :  { %v1036_v62 = vadd.f32 %v727_v53, %v726_v43  ;;  %v1040_v1 = vadd.f32 %v739_v55, %v738_v45 }
 0x100   :  { %v664_v4 = vcombine.low %v1034_v61, %v1030_v57  ;;  %v1046_v5 = vadd.f32 %v733_v58, %v732_v48  ;;  %v665_v9 = vcombine.low %v1038_v63, %v1032_v59  ;;  %v1053_v10 = vadd.f32 %v745_v60, %v744_v50 }
 0x102   :  { %v779_v50 = vcombine.low %v1036_v62, %v1046_v5  ;;  %v780_v54 = vcombine.low %v1040_v1, %v1053_v10  ;;  %v674_v58 = vrot.slane %v664_v4, %v1042_v2  ;;  %v681_v63 = vrot.slane %v665_v9, %v1042_v2 }
 0x104   :  { %v789_v62 = vrot.slane %v779_v50, %v1042_v2  ;;  %v796_v1 = vrot.slane %v780_v54, %v1042_v2 }
 0x111   :  { %v552_v3 = vpop.f32.mrf.mxu0  ;;  %v593_v8 = vpop.f32.mrf.mxu1 }
 0x112   :  { %604 = vst [vmem:[%s1088_s2 + $0x20] sm:$0xff] %v552_v3  ;;  %v632_v6 = vrot.slane %v552_v3, 4  ;;  %v719_v7 = vmul.f32 %v552_v3, %v552_v3  ;;  %606 = vst [vmem:[%s1088_s2 + $0x30] sm:$0xff] %v593_v8  ;;  %v644_v11 = vrot.slane %v593_v8, 4  ;;  %v721_v12 = vmul.f32 %v593_v8, %v593_v8 }
 0x113   :  { %v554_v13 = vpop.f32.mrf.mxu0  ;;  %v595_v18 = vpop.f32.mrf.mxu1 }
 0x114   :  { %v633_v14 = vadd.f32 %v632_v6, %v552_v3  ;;  %v747_v15 = vrot.slane %v719_v7, 4  ;;  %605 = vst [vmem:[%s1088_s2 + $0x28] sm:$0xff] %v554_v13  ;;  %v638_v16 = vrot.slane %v554_v13, 4  ;;  %v720_v17 = vmul.f32 %v554_v13, %v554_v13  ;;  %607 = vst [vmem:[%s1088_s2 + $0x38] sm:$0xff] %v595_v18 }
 0x115   :  { %v645_v19 = vadd.f32 %v644_v11, %v593_v8  ;;  %v759_v20 = vrot.slane %v721_v12, 4  ;;  %v650_v21 = vrot.slane %v595_v18, 4  ;;  %v722_v22 = vmul.f32 %v595_v18, %v595_v18  ;;  %v556_v23 = vpop.f32.mrf.mxu0  ;;  %v597_v28 = vpop.f32.mrf.mxu1 }
 0x116   :  { %v634_v24 = vrot.slane %v633_v14, 2  ;;  %v748_v25 = vadd.f32 %v747_v15, %v719_v7  ;;  %v639_v26 = vadd.f32 %v638_v16, %v554_v13  ;;  %v753_v27 = vrot.slane %v720_v17, 4 }
 0x117   :  { %v646_v29 = vrot.slane %v645_v19, 2  ;;  %v760_v30 = vadd.f32 %v759_v20, %v721_v12  ;;  %v651_v31 = vadd.f32 %v650_v21, %v595_v18  ;;  %v765_v32 = vrot.slane %v722_v22, 4  ;;  %v557_v33 = vpop.f32.mrf.mxu0  ;;  %v598_v38 = vpop.f32.mrf.mxu1 }
 0x118   :  { %v635_v34 = vadd.f32 %v634_v24, %v633_v14  ;;  %v749_v35 = vrot.slane %v748_v25, 2  ;;  %v640_v36 = vrot.slane %v639_v26, 2  ;;  %v754_v37 = vadd.f32 %v753_v27, %v720_v17 }
 0x119   :  { %v647_v39 = vadd.f32 %v646_v29, %v645_v19  ;;  %v761_v0 = vrot.slane %v760_v30, 2  ;;  %v652_v40 = vrot.slane %v651_v31, 2  ;;  %v766_v41 = vadd.f32 %v765_v32, %v722_v22 }
 0x11a   :  { %v636_v42 = vrot.slane %v635_v34, 1  ;;  %v750_v43 = vadd.f32 %v749_v35, %v748_v25  ;;  %v641_v44 = vadd.f32 %v640_v36, %v639_v26  ;;  %v755_v45 = vrot.slane %v754_v37, 2 }
 0x11b   :  { %v648_v46 = vrot.slane %v647_v39, 1  ;;  %v762_v47 = vadd.f32 %v761_v0, %v760_v30  ;;  %v653_v48 = vadd.f32 %v652_v40, %v651_v31  ;;  %v767_v49 = vrot.slane %v766_v41, 2 }
 0x11c   :  { %v751_v51 = vrot.slane %v750_v43, 1  ;;  %v642_v52 = vrot.slane %v641_v44, 1  ;;  %v756_v53 = vadd.f32 %v755_v45, %v754_v37  ;;  %v637_v59 = vadd.f32 %v636_v42, %v635_v34 }
 0x11d   :  { %v763_v55 = vrot.slane %v762_v47, 1  ;;  %v654_v56 = vrot.slane %v653_v48, 1  ;;  %v768_v57 = vadd.f32 %v767_v49, %v766_v41  ;;  %v649_v3 = vadd.f32 %v648_v46, %v647_v39 }
 0x11e   :  { %v643_v60 = vadd.f32 %v642_v52, %v641_v44  ;;  %v757_v61 = vrot.slane %v756_v53, 1  ;;  %v752_v5 = vadd.f32 %v751_v51, %v750_v43  ;;  %v696_v15 = vcombine.low %v674_v58, %v681_v63 }
 0x11f   :  { %v655_v6 = vadd.f32 %v654_v56, %v653_v48  ;;  %v769_v7 = vrot.slane %v768_v57, 1  ;;  %v764_v10 = vadd.f32 %v763_v55, %v762_v47  ;;  %v811_v18 = vcombine.low %v789_v62, %v796_v1 }
 0x120   :  { %v666_v8 = vcombine.low %v637_v59, %v643_v60  ;;  %v758_v11 = vadd.f32 %v757_v61, %v756_v53  ;;  %v704_v21 = vrot.slane %v696_v15, %v1042_v2 }
 0x121   :  { %v667_v12 = vcombine.low %v649_v3, %v655_v6  ;;  %v770_v13 = vadd.f32 %v769_v7, %v768_v57  ;;  %v819_v24 = vrot.slane %v811_v18, %v1042_v2 }
 0x122   :  { %v688_v4 = vrot.slane %v666_v8, %v1042_v2  ;;  %v781_v14 = vcombine.low %v752_v5, %v758_v11 }
 0x123   :  { %v695_v16 = vrot.slane %v667_v12, %v1042_v2  ;;  %v782_v9 = vcombine.low %v764_v10, %v770_v13 }
 0x124   :  { %v803_v17 = vrot.slane %v781_v14, %v1042_v2 }
 0x125   :  { %v697_v19 = vcombine.low %v688_v4, %v695_v16  ;;  %v810_v20 = vrot.slane %v782_v9, %v1042_v2 }
 0x127   :  { %v711_v22 = vrot.slane %v697_v19, %v1042_v2  ;;  %v812_v23 = vcombine.low %v803_v17, %v810_v20 }
 0x129   :  { %v712_v25 = vcombine.low %v704_v21, %v711_v22  ;;  %v826_v26 = vrot.slane %v812_v23, %v1042_v2 }
 0x12b   :  { %714 = vst [vmem:[%s1089_s3] sm:$0xff] %v712_v25  ;;  %v827_v27 = vcombine.low %v819_v24, %v826_v26 }
 0x12d   :  { %829 = vst [vmem:[%s1090_s4] sm:$0xff] %v827_v27 }
 0x12e   :  { %864 = vsyncpa [#allocation3], 1 }

// kernel: _lambda_.12
= control target key start
LH: loop header
LB: loop body
LE: loop exit
PB: predicated region body
PF: predicated region fallthrough
CT: control target
= control target key end

     0   :  { %s449_s12 = smov 0   ;;  %s451_s13 = smov 0   ;;  %s488_s0 = inlined_call_operand.vmem [shape: f32[4,32,128], index: 0, kind: input, shape index: {}]   ;;  %s489_s1 = inlined_call_operand.vmem [shape: f32[1,128], index: 1, kind: input, shape index: {}]   ;;  %s490_s2 = inlined_call_operand.vmem [shape: f32[1,128], index: 2, kind: input, shape index: {}]   ;;  %s491_s3 = inlined_call_operand.vmem [shape: bf16[4,32,128], index: 3, kind: output, shape index: {}]  }
   0x1   :  { %s453_s14 = smov 0  }
   0x2 LB: > { %s25_s15 = sadd.s32 1, %s423_s13  ;;  %p351_p0 = scmp.ge.s32.totalorder %s427_s14, 1  ;;  %s427_s14 = sphi %s453_s14, %s13_s14   ;;  %s423_s13 = sphi %s451_s13, %s493_s13   ;;  %s419_s12 = sphi %s449_s12, %s492_s12  }
   0x3   : > { %p27_p1 = scmp.ge.s32.totalorder %s25_s15, 4  ;;  %p158_p2 = scmp.lt.s32.totalorder %s427_s14, 5 }
   0x5   : > { %s495_s15 = smov (%p27_p1, %s25_s15), 0  ;;  %p159_p3 = pnand %p351_p0, %p158_p2 }
   0x6   : > { %p191_p4 = scmp.lt.s32.totalorder (!%p159_p3), %s419_s12, 3 }
   0x7   : > { %162 = sbr.rel (%p159_p3) target bundleno = 26 (0x1a), region = 32 }
   0xc   : > { %s497_s12 = smov (!%p191_p4, %s419_s12), 3  ;;  %v356_v0 = vld [vmem:[%s489_s1] ss:$0 sm:$0xff] }
   0xd   : > { %s364_s16 = sshll.u32 %s497_s12, 5  ;;  %v357_v1 = vld [vmem:[%s490_s2] ss:$0 sm:$0xff]  ;;  %s365_s24 = sshll.u32 %s497_s12, 4 }
   0xe   : > { %s198_s21 = scalar_lea.vmem %s488_s0, %s364_s16  ;;  %s208_s27 = scalar_lea.vmem %s491_s3, %s365_s24 }
   0xf   : > { %v210_v2 = vld [vmem:[%s198_s21] sm:$0xff]  ;;  %v211_v3 = vld [vmem:[%s198_s21 + $0x8] sm:$0xff]  ;;  %v212_v4 = vld [vmem:[%s198_s21 + $0x10] sm:$0xff] }
  0x10   : > { %v221_v5 = vmul.f32 %v356_v0, %v210_v2  ;;  %v222_v6 = vmul.f32 %v356_v0, %v211_v3  ;;  %v213_v7 = vld [vmem:[%s198_s21 + $0x18] sm:$0xff]  ;;  %v223_v8 = vmul.f32 %v356_v0, %v212_v4 }
  0x11   : > { %v224_v9 = vmul.f32 %v356_v0, %v213_v7 }
  0x12   : > { %v232_v10 = vadd.f32 %v357_v1, %v221_v5  ;;  %v233_v11 = vadd.f32 %v357_v1, %v222_v6  ;;  %v234_v12 = vadd.f32 %v357_v1, %v223_v8 }
  0x13   : > { %v235_v13 = vadd.f32 %v357_v1, %v224_v9 }
  0x14   : > { %v236_v14 = vmax.f32 %v232_v10, 0.0  ;;  %v237_v15 = vmax.f32 %v233_v11, 0.0  ;;  %v238_v16 = vmax.f32 %v234_v12, 0.0 }
  0x15   : > { %v239_v17 = vmax.f32 %v235_v13, 0.0 }
  0x16   : > { %v373_v18 = vpack.c.bf16 %v237_v15, %v236_v14 }
  0x17   : > { %v378_v19 = vpack.c.bf16 %v239_v17, %v238_v16 }
  0x18   : > { %374 = vst [vmem:[%s208_s27] sm:$0xff] %v373_v18  }
  0x19   : > { %380 = vst [vmem:[%s208_s27 + $0x8] sm:$0xff] %v378_v19  }
  0x1a PF: > { %s13_s14 = sadd.s32 1, %s427_s14   ;;  %s492_s12 = smov %s423_s13 }
  0x1b   : > { %p10_p5 = scmp.ge.s32.totalorder %s13_s14, 6   ;;  %s493_s13 = smov %s495_s15 }
  0x1d   :  { %12 = sbr.rel (!%p10_p5) target bundleno = 2 (0x2), region = 62 }

// kernel: _lambda_.11
= control target key start
LH: loop header
LB: loop body
LE: loop exit
PB: predicated region body
PF: predicated region fallthrough
CT: control target
= control target key end

     0   :  { %10 = vsyncpa [#allocation3], 0  ;;  %s1107_s0 = inlined_call_operand.vmem [shape: bf16[4,32,256], index: 0, kind: input, shape index: {}]   ;;  %s1108_s1 = inlined_call_operand.hbm [shape: bf16[4,256,128], index: 1, kind: input, shape index: {}]   ;;  %s1109_s2 = inlined_call_operand.vmem [shape: f32[4,32,128], index: 2, kind: output, shape index: {0}]   ;;  %s1110_s3 = inlined_call_operand.vmem [shape: f32[4,1,128], index: 3, kind: output, shape index: {1}]   ;;  %s1111_s4 = inlined_call_operand.vmem [shape: f32[4,1,128], index: 4, kind: output, shape index: {2}]  }
   0x1   :  { %12 = vsyncpa [#allocation3 + $0x1], 0  ;;  %s975_s15 = smov 0   ;;  %s977_s16 = smov 0  }
   0x2   :  { %s979_s17 = smov 0   ;;  %s981_s18 = smov 0  }
   0x3   :  { %s983_s19 = smov 0   ;;  %s985_s20 = smov 0  }
   0x4 LB: > { %s706_s21 = sadd.s32 4294967295, %s945_s20   ;;  %s30_s22 = sadd.s32 1, %s941_s19  ;;  %s945_s20 = sphi %s985_s20, %s18_s20   ;;  %s941_s19 = sphi %s983_s19, %s1119_s19   ;;  %s937_s18 = sphi %s981_s18, %s1118_s18   ;;  %s933_s17 = sphi %s979_s17, %s1117_s17   ;;  %s929_s16 = sphi %s977_s16, %s1116_s16   ;;  %s925_s15 = sphi %s975_s15, %s1115_s15  }
   0x5   : > { %p32_p0 = scmp.ge.s32.totalorder %s30_s22, 4  ;;  %s65_s23 = sadd.s32 1, %s933_s17 }
   0x6   : > { %p72_p1 = scmp.ne.s32.totalorder %s933_s17, %s929_s16  ;;  %p73_p2 = scmp.eq.s32.totalorder %s945_s20, 0 }
   0x7   : > { %s1121_s22 = smov (%p32_p0, %s30_s22), 0  ;;  %p78_p4 = scmp.ne.s32.totalorder %s929_s16, %s925_s15 }
   0x8   : > { %p1011_p3 = por %p73_p2, %p72_p1  ;;  %s62_s25 = ssub.s32 %s941_s19, %s1121_s22 }
   0x9   : > { %p79_p5 = scmp.eq.s32.totalorder %s706_s21, 0  ;;  %p63_p6 = scmp.eq.s32.totalorder %s62_s25, 0 }
   0xa   : > { %p794_p8 = scmp.lt.s32.totalorder %s945_s20, 4  ;;  %s200_s28 = sand.u32 1, %s933_s17  }
   0xb   : > { %p1018_p7 = por %p79_p5, %p78_p4  ;;  %s741_s29 = sshll.u32 %s941_s19, 11 }
   0xc   : > { %s1024_s27 = scalar_select %p63_p6, %s933_s17, %s65_s23  }
   0xd   : > { %s710_s30 = sshll.u32 %s200_s28, 7  ;;  %s210_s7 = scalar_lea.hbm %s1108_s1, %s741_s29 }
   0xe   : > { %s204_s8 = scalar_lea.vmem [#allocation2], %s710_s30  ;;  %p1033_p9 = pnand %p794_p8, %p1011_p3 }
   0xf   : > { %s211_s9 = sshll.u32 %s204_s8, 4  ;;  %s201_s11 = scalar_lea.sflag [#allocation3], %s200_s28  ;;  %s212_s9 = int_to_ptr.vmem [resolvable:$true] %s211_s9 }
  0x10   : > { %p869_p10 = pneg %p1033_p9  ;;  %s880_s12 = scalar_lea.vmem %s212_s9, 2048 }
  0x11   : > { %p881_p11 = scmp.ne.s32.totalorder %s212_s9, %s880_s12  ;;  %s947_s13 = smov [#allocation2]  }
  0x12   : > { %s885_s14 = sshll.u32 %s947_s13, 4  ;;  %s886_s14 = int_to_ptr.vmem [resolvable:$false] %s885_s14 }
  0x13   : > { %p883_p12 = pnand %p881_p11, %p869_p10  ;;  %s887_s15 = scalar_lea.vmem %s886_s14, 4096 }
  0x14   : > { %p888_p0 = scmp.lt.s32.totalorder %s212_s9, %s886_s14  ;;  %p889_p1 = scmp.lt.s32.totalorder %s887_s15, %s880_s12 }
  0x15   : > { %p884_p13 = pneg %p883_p12 }
  0x16   : > { %p890_p2 = por %p889_p1, %p888_p0 }
  0x18   : > { %p891_p3 = pnand %p890_p2, %p884_p13 }
  0x1a   : > { %894 = shalt.err (!%p891_p3)
}
  0x1b   : > { %s948_s21 = smov 64   ;;  %s949_s23 = smov 4  }
  0x1c   : > { %793 = dma.hbm_to_vmem [thread:$0]  (!%p1033_p9), %s210_s7, 2048, %s212_s9, %s201_s11, %s948_s21, %s948_s21, %s949_s23  }
  0x1d   : > { %p713_p4 = scmp.ge.s32.totalorder %s945_s20, 1  ;;  %p219_p5 = scmp.lt.s32.totalorder %s945_s20, 5 }
  0x1f   : > { %p220_p6 = pnand %p713_p4, %p219_p5 }
  0x20   : > { %s225_s24 = sand.u32 (!%p220_p6), 1, %s929_s16  }
  0x21   : > { %223 = sbr.rel (%p220_p6) target bundleno = 294 (0x126), region = 28  ;;  %s714_s25 = sshll.u32 (!%p220_p6), %s225_s24, 7 }
  0x22   : > { %s226_s28 = scalar_lea.sflag (!%p220_p6), [#allocation3], %s225_s24  ;;  %s1044_s29 = scalar_lea.vmem (!%p220_p6), [#allocation2], %s714_s25 }
  0x26   : > { %920 = dma.done.wait (%p1018_p7), %s226_s28, 2048  }
  0x27   : > { %922 = vsyncadd (%p1018_p7), %s226_s28, 4294965248  ;;  %v845_v0 = vld [vmem:[%s1044_s29 + $0x78] sm:$0xff]   ;;  %v847_v2 = vld [vmem:[%s1044_s29 + $0x70] sm:$0xff]   ;;  %p277_p8 = scmp.lt.s32.totalorder %s937_s18, 3 }
  0x28   : > { %v846_v1 = vld [vmem:[%s1044_s29 + $0x38] sm:$0xff]   ;;  %744 = vmatprep.subr.bf16.mxu0 %v845_v0  ;;  %772 = vmatprep.subr.bf16.mxu1 %v845_v0  ;;  %v848_v3 = vld [vmem:[%s1044_s29 + $0x30] sm:$0xff]   ;;  %v849_v4 = vld [vmem:[%s1044_s29 + $0x68] sm:$0xff]  }
  0x29   : > { %745 = vmatpush3.bf16.msra.mxu0 %v846_v1  ;;  %780 = vmatpush3.bf16.msra.mxu1 %v846_v1  ;;  %v850_v5 = vld [vmem:[%s1044_s29 + $0x28] sm:$0xff]   ;;  %s1123_s18 = smov (!%p277_p8, %s937_s18), 3  ;;  %v851_v6 = vld [vmem:[%s1044_s29 + $0x60] sm:$0xff]   ;;  %v853_v8 = vld [vmem:[%s1044_s29 + $0x58] sm:$0xff]  }
  0x2a   : > { %746 = vmatprep.subr.bf16.mxu0 %v847_v2  ;;  %773 = vmatprep.subr.bf16.mxu1 %v847_v2  ;;  %v852_v7 = vld [vmem:[%s1044_s29 + $0x20] sm:$0xff]   ;;  %s742_s26 = sshll.u32 %s1123_s18, 5  ;;  %v854_v9 = vld [vmem:[%s1044_s29 + $0x18] sm:$0xff]   ;;  %v855_v10 = vld [vmem:[%s1044_s29 + $0x50] sm:$0xff]   ;;  %s300_s12 = scalar_lea.vmem %s1110_s3, %s1123_s18 }
  0x2b   : > { %s285_s6 = scalar_lea.vmem %s1107_s0, %s742_s26  ;;  %v856_v13 = vld [vmem:[%s1044_s29 + $0x10] sm:$0xff]   ;;  %v857_v14 = vld [vmem:[%s1044_s29 + $0x48] sm:$0xff]   ;;  %v859_v16 = vld [vmem:[%s1044_s29 + $0x40] sm:$0xff]   ;;  %s295_s9 = scalar_lea.vmem %s1109_s2, %s742_s26 }
  0x2c   : > { %v863_v11 = vld [vmem:[%s285_s6 + $0x4] ss:$8 sps:$4 sm:$0xff]   ;;  %v866_v12 = vld [vmem:[%s285_s6 + $0x14] ss:$8 sps:$4 sm:$0xff]   ;;  %v861_v18 = vld [vmem:[%s285_s6] ss:$8 sps:$4 sm:$0xff]   ;;  %s305_s15 = scalar_lea.vmem %s1111_s4, %s1123_s18 }
  0x2d   : > { %747 = vmatpush3.bf16.msra.mxu0 %v848_v3  ;;  %781 = vmatpush3.bf16.msra.mxu1 %v848_v3  ;;  %v858_v15 = vld [vmem:[%s1044_s29 + $0x8] sm:$0xff]   ;;  %v860_v17 = vld [vmem:[%s1044_s29] sm:$0xff]   ;;  %v864_v19 = vld [vmem:[%s285_s6 + $0x10] ss:$8 sps:$4 sm:$0xff]  }
  0x2e   : > { %748 = vmatprep.subr.bf16.mxu0 %v849_v4  ;;  %774 = vmatprep.subr.bf16.mxu1 %v849_v4 }
  0x2f   : > { %492 = vmatprep.mubr.bf16.mxu0 %v863_v11  ;;  %500 = vmatprep.mubr.bf16.mxu1 %v866_v12 }
  0x31   : > { %749 = vmatpush3.bf16.msra.mxu0 %v850_v5  ;;  %782 = vmatpush3.bf16.msra.mxu1 %v850_v5 }
  0x32   : > { %750 = vmatprep.subr.bf16.mxu0 %v851_v6  ;;  %775 = vmatprep.subr.bf16.mxu1 %v851_v6 }
  0x35   : > { %751 = vmatpush3.bf16.msra.mxu0 %v852_v7  ;;  %783 = vmatpush3.bf16.msra.mxu1 %v852_v7 }
  0x36   : > { %752 = vmatprep.subr.bf16.mxu0 %v853_v8  ;;  %776 = vmatprep.subr.bf16.mxu1 %v853_v8 }
  0x39   : > { %753 = vmatpush3.bf16.msra.mxu0 %v854_v9  ;;  %784 = vmatpush3.bf16.msra.mxu1 %v854_v9 }
  0x3a   : > { %754 = vmatprep.subr.bf16.mxu0 %v855_v10  ;;  %777 = vmatprep.subr.bf16.mxu1 %v855_v10 }
  0x3d   : > { %755 = vmatpush3.bf16.msra.mxu0 %v856_v13  ;;  %785 = vmatpush3.bf16.msra.mxu1 %v856_v13 }
  0x3e   : > { %756 = vmatprep.subr.bf16.mxu0 %v857_v14  ;;  %778 = vmatprep.subr.bf16.mxu1 %v857_v14 }
  0x41   : > { %757 = vmatpush3.bf16.msra.mxu0 %v858_v15  ;;  %786 = vmatpush3.bf16.msra.mxu1 %v858_v15 }
  0x42   : > { %758 = vmatprep.subr.bf16.mxu0 %v859_v16  ;;  %779 = vmatprep.subr.bf16.mxu1 %v859_v16 }
  0x45   : > { %759 = vmatpush3.bf16.msra.mxu0 %v860_v17  ;;  %787 = vmatpush3.bf16.msra.mxu1 %v860_v17 }
  0x48   : > { %493 = vmatmul.mubr.bf16.vlgmr.msra.gmra.mxu0 %v861_v18  ;;  %501 = vmatmul.mubr.bf16.vlgmr.msra.gmra.mxu1 %v864_v19 }
 0x108   : > { %v760_v20 = vpop.f32.mrf.mxu0  ;;  %v766_v21 = vpop.f32.mrf.mxu1 }
 0x10a   : > { %v761_v22 = vpop.f32.mrf.mxu0  ;;  %v767_v23 = vpop.f32.mrf.mxu1 }
 0x10b   : > { %v762_v24 = vadd.f32 %v761_v22, %v760_v20  ;;  %v768_v25 = vadd.f32 %v767_v23, %v766_v21 }
 0x10c   : > { %v763_v26 = vpop.f32.mrf.mxu0  ;;  %v769_v27 = vpop.f32.mrf.mxu1 }
 0x10d   : > { %509 = vst [vmem:[%s295_s9] sm:$0xff] %v762_v24  ;;  %511 = vst [vmem:[%s295_s9 + $0x10] sm:$0xff] %v768_v25  ;;  %v523_v32 = vmul.f32 %v762_v24, %v762_v24  ;;  %v525_v35 = vmul.f32 %v768_v25, %v768_v25 }
 0x10e   : > { %v764_v28 = vpop.f32.mrf.mxu0  ;;  %v770_v29 = vpop.f32.mrf.mxu1 }
 0x10f   : > { %v765_v30 = vadd.f32 %v764_v28, %v763_v26  ;;  %v771_v31 = vadd.f32 %v770_v29, %v769_v27 }
 0x111   : > { %510 = vst [vmem:[%s295_s9 + $0x8] sm:$0xff] %v765_v30  ;;  %v513_v33 = vadd.f32 %v765_v30, %v762_v24  ;;  %v524_v34 = vmul.f32 %v765_v30, %v765_v30  ;;  %512 = vst [vmem:[%s295_s9 + $0x18] sm:$0xff] %v771_v31  ;;  %v526_v39 = vmul.f32 %v771_v31, %v771_v31 }
 0x113   : > { %v527_v36 = vadd.f32 %v524_v34, %v523_v32  ;;  %v514_v37 = vadd.f32 %v768_v25, %v513_v33 }
 0x115   : > { %v515_v38 = vadd.f32 %v771_v31, %v514_v37  ;;  %v528_v40 = vadd.f32 %v527_v36, %v525_v35 }
 0x117   : > { %v516_v41 = vrot.slane %v515_v38, 4  ;;  %v529_v42 = vadd.f32 %v528_v40, %v526_v39 }
 0x119   : > { %v517_v43 = vadd.f32 %v516_v41, %v515_v38  ;;  %v530_v44 = vrot.slane %v529_v42, 4 }
 0x11b   : > { %v518_v45 = vrot.slane %v517_v43, 2  ;;  %v531_v46 = vadd.f32 %v530_v44, %v529_v42 }
 0x11d   : > { %v519_v47 = vadd.f32 %v518_v45, %v517_v43  ;;  %v532_v48 = vrot.slane %v531_v46, 2 }
 0x11f   : > { %v520_v49 = vrot.slane %v519_v47, 1  ;;  %v533_v50 = vadd.f32 %v532_v48, %v531_v46 }
 0x121   : > { %v521_v51 = vadd.f32 %v520_v49, %v519_v47  ;;  %v534_v52 = vrot.slane %v533_v50, 1 }
 0x123   : > { %522 = vst [vmem:[%s300_s12] sm:$0x1] %v521_v51  ;;  %v535_v53 = vadd.f32 %v534_v52, %v533_v50 }
 0x125   : > { %536 = vst [vmem:[%s305_s15] sm:$0x1] %v535_v53 }
 0x126 PF: > { %s18_s20 = sadd.s32 1, %s945_s20   ;;  %s1115_s15 = smov %s929_s16 }
 0x127   : > { %p15_p7 = scmp.ge.s32.totalorder %s18_s20, 6   ;;  %s1116_s16 = smov %s933_s17 }
 0x128   : > { %s1117_s17 = smov %s1024_s27  ;;  %s1118_s18 = smov %s941_s19 }
 0x129   : > { %s1119_s19 = smov %s1121_s22  ;;  %17 = sbr.rel (!%p15_p7) target bundleno = 4 (0x4), region = 95 }
 0x12e   :  { %597 = vsyncpa [#allocation3], 1 }
 0x12f   :  { %599 = vsyncpa [#allocation3 + $0x1], 1 }

// kernel: _lambda_.14
= control target key start
LH: loop header
LB: loop body
LE: loop exit
PB: predicated region body
PF: predicated region fallthrough
CT: control target
= control target key end

     0   :  { %s617_s12 = smov 0   ;;  %s619_s13 = smov 0   ;;  %s724_s0 = inlined_call_operand.vmem [shape: f32[4,128,128], index: 0, kind: input, shape index: {}]   ;;  %s725_s1 = inlined_call_operand.vmem [shape: f32[1,128], index: 1, kind: input, shape index: {}]   ;;  %s726_s2 = inlined_call_operand.vmem [shape: f32[1,128], index: 2, kind: input, shape index: {}]   ;;  %s727_s3 = inlined_call_operand.vmem [shape: bf16[4,128,128], index: 3, kind: output, shape index: {}]  }
   0x1   :  { %s621_s14 = smov 0  }
   0x2 LB: > { %s25_s15 = sadd.s32 1, %s591_s13  ;;  %p459_p0 = scmp.ge.s32.totalorder %s595_s14, 1  ;;  %s595_s14 = sphi %s621_s14, %s13_s14   ;;  %s591_s13 = sphi %s619_s13, %s729_s13   ;;  %s587_s12 = sphi %s617_s12, %s728_s12  }
   0x3   : > { %p27_p1 = scmp.ge.s32.totalorder %s25_s15, 4  ;;  %p158_p2 = scmp.lt.s32.totalorder %s595_s14, 5 }
   0x5   : > { %s731_s15 = smov (%p27_p1, %s25_s15), 0  ;;  %p159_p3 = pnand %p459_p0, %p158_p2 }
   0x6   : > { %p191_p4 = scmp.lt.s32.totalorder (!%p159_p3), %s587_s12, 3 }
   0x7   : > { %162 = sbr.rel (%p159_p3) target bundleno = 36 (0x24), region = 32 }
   0xc   : > { %s733_s12 = smov (!%p191_p4, %s587_s12), 3  ;;  %v641_v0 = vld [vmem:[%s725_s1] ss:$0 sm:$0xff] }
   0xd   : > { %s484_s16 = sshll.u32 %s733_s12, 7  ;;  %v651_v1 = vld [vmem:[%s726_s2] ss:$0 sm:$0xff]  ;;  %s485_s24 = sshll.u32 %s733_s12, 6 }
   0xe   : > { %s646_s21 = scalar_lea.vmem %s724_s0, %s484_s16  ;;  %s683_s27 = scalar_lea.vmem %s727_s3, %s485_s24 }
   0xf   : > { %v210_v2 = vld [vmem:[%s646_s21] sm:$0xff]  ;;  %v211_v3 = vld [vmem:[%s646_s21 + $0x8] sm:$0xff]  ;;  %v212_v4 = vld [vmem:[%s646_s21 + $0x10] sm:$0xff] }
  0x10   : > { %v233_v5 = vmul.f32 %v641_v0, %v210_v2  ;;  %v234_v6 = vmul.f32 %v641_v0, %v211_v3  ;;  %v213_v7 = vld [vmem:[%s646_s21 + $0x18] sm:$0xff]  ;;  %v235_v8 = vmul.f32 %v641_v0, %v212_v4  ;;  %v214_v9 = vld [vmem:[%s646_s21 + $0x20] sm:$0xff]  ;;  %v215_v10 = vld [vmem:[%s646_s21 + $0x28] sm:$0xff] }
  0x11   : > { %v236_v11 = vmul.f32 %v641_v0, %v213_v7  ;;  %v237_v12 = vmul.f32 %v641_v0, %v214_v9  ;;  %v238_v13 = vmul.f32 %v641_v0, %v215_v10  ;;  %v216_v14 = vld [vmem:[%s646_s21 + $0x30] sm:$0xff]  ;;  %v217_v15 = vld [vmem:[%s646_s21 + $0x38] sm:$0xff]  ;;  %v218_v24 = vld [vmem:[%s646_s21 + $0x40] sm:$0xff] }
  0x12   : > { %v256_v16 = vadd.f32 %v651_v1, %v233_v5  ;;  %v257_v17 = vadd.f32 %v651_v1, %v234_v6  ;;  %v258_v18 = vadd.f32 %v651_v1, %v235_v8  ;;  %v239_v19 = vmul.f32 %v641_v0, %v216_v14  ;;  %v219_v25 = vld [vmem:[%s646_s21 + $0x48] sm:$0xff]  ;;  %v220_v30 = vld [vmem:[%s646_s21 + $0x50] sm:$0xff]  ;;  %v221_v35 = vld [vmem:[%s646_s21 + $0x58] sm:$0xff] }
  0x13   : > { %v259_v20 = vadd.f32 %v651_v1, %v236_v11  ;;  %v260_v21 = vadd.f32 %v651_v1, %v237_v12  ;;  %v261_v22 = vadd.f32 %v651_v1, %v238_v13  ;;  %v240_v23 = vmul.f32 %v641_v0, %v217_v15  ;;  %v222_v36 = vld [vmem:[%s646_s21 + $0x60] sm:$0xff]  ;;  %v223_v41 = vld [vmem:[%s646_s21 + $0x68] sm:$0xff]  ;;  %v224_v42 = vld [vmem:[%s646_s21 + $0x70] sm:$0xff] }
  0x14   : > { %v272_v26 = vmax.f32 %v256_v16, 0.0  ;;  %v273_v27 = vmax.f32 %v257_v17, 0.0  ;;  %v274_v28 = vmax.f32 %v258_v18, 0.0  ;;  %v262_v29 = vadd.f32 %v651_v1, %v239_v19  ;;  %v225_v51 = vld [vmem:[%s646_s21 + $0x78] sm:$0xff] }
  0x15   : > { %v275_v31 = vmax.f32 %v259_v20, 0.0  ;;  %v276_v32 = vmax.f32 %v260_v21, 0.0  ;;  %v277_v33 = vmax.f32 %v261_v22, 0.0  ;;  %v263_v34 = vadd.f32 %v651_v1, %v240_v23 }
  0x16   : > { %v505_v37 = vpack.c.bf16 %v273_v27, %v272_v26  ;;  %v278_v38 = vmax.f32 %v262_v29, 0.0  ;;  %v241_v39 = vmul.f32 %v641_v0, %v218_v24  ;;  %v242_v40 = vmul.f32 %v641_v0, %v219_v25 }
  0x17   : > { %v510_v43 = vpack.c.bf16 %v275_v31, %v274_v28  ;;  %v515_v44 = vpack.c.bf16 %v277_v33, %v276_v32  ;;  %v279_v45 = vmax.f32 %v263_v34, 0.0  ;;  %v243_v46 = vmul.f32 %v641_v0, %v220_v30 }
  0x18   : > { %506 = vst [vmem:[%s683_s27] sm:$0xff] %v505_v37   ;;  %v264_v47 = vadd.f32 %v651_v1, %v241_v39  ;;  %v265_v48 = vadd.f32 %v651_v1, %v242_v40  ;;  %v244_v49 = vmul.f32 %v641_v0, %v221_v35  ;;  %v245_v50 = vmul.f32 %v641_v0, %v222_v36 }
  0x19   : > { %542 = vst [vmem:[%s683_s27 + $0x8] sm:$0xff] %v510_v43   ;;  %543 = vst [vmem:[%s683_s27 + $0x10] sm:$0xff] %v515_v44   ;;  %v520_v52 = vpack.c.bf16 %v279_v45, %v278_v38  ;;  %v266_v53 = vadd.f32 %v651_v1, %v243_v46  ;;  %v246_v54 = vmul.f32 %v641_v0, %v223_v41 }
  0x1a   : > { %v247_v55 = vmul.f32 %v641_v0, %v224_v42  ;;  %v280_v56 = vmax.f32 %v264_v47, 0.0  ;;  %v281_v57 = vmax.f32 %v265_v48, 0.0  ;;  %v267_v58 = vadd.f32 %v651_v1, %v244_v49 }
  0x1b   : > { %v268_v59 = vadd.f32 %v651_v1, %v245_v50  ;;  %544 = vst [vmem:[%s683_s27 + $0x18] sm:$0xff] %v520_v52   ;;  %v282_v60 = vmax.f32 %v266_v53, 0.0  ;;  %v269_v61 = vadd.f32 %v651_v1, %v246_v54  ;;  %v248_v62 = vmul.f32 %v641_v0, %v225_v51 }
  0x1c   : > { %v270_v63 = vadd.f32 %v651_v1, %v247_v55  ;;  %v525_v2 = vpack.c.bf16 %v281_v57, %v280_v56  ;;  %v283_v3 = vmax.f32 %v267_v58, 0.0 }
  0x1d   : > { %v284_v4 = vmax.f32 %v268_v59, 0.0  ;;  %v285_v5 = vmax.f32 %v269_v61, 0.0  ;;  %v271_v6 = vadd.f32 %v651_v1, %v248_v62 }
  0x1e   : > { %v286_v7 = vmax.f32 %v270_v63, 0.0  ;;  %545 = vst [vmem:[%s683_s27 + $0x20] sm:$0xff] %v525_v2   ;;  %v530_v8 = vpack.c.bf16 %v283_v3, %v282_v60 }
  0x1f   : > { %v535_v9 = vpack.c.bf16 %v285_v5, %v284_v4  ;;  %v287_v10 = vmax.f32 %v271_v6, 0.0 }
  0x20   : > { %546 = vst [vmem:[%s683_s27 + $0x28] sm:$0xff] %v530_v8  }
  0x21   : > { %547 = vst [vmem:[%s683_s27 + $0x30] sm:$0xff] %v535_v9   ;;  %v540_v11 = vpack.c.bf16 %v287_v10, %v286_v7 }
  0x23   : > { %548 = vst [vmem:[%s683_s27 + $0x38] sm:$0xff] %v540_v11  }
  0x24 PF: > { %s13_s14 = sadd.s32 1, %s595_s14   ;;  %s728_s12 = smov %s591_s13 }
  0x25   : > { %p10_p5 = scmp.ge.s32.totalorder %s13_s14, 6   ;;  %s729_s13 = smov %s731_s15 }
  0x27   :  { %12 = sbr.rel (!%p10_p5) target bundleno = 2 (0x2), region = 62 }

// kernel: _lambda_.13
= control target key start
LH: loop header
LB: loop body
LE: loop exit
PB: predicated region body
PF: predicated region fallthrough
CT: control target
= control target key end

     0   :  { %10 = vsyncpa [#allocation3], 0  ;;  %s1200_s0 = inlined_call_operand.vmem [shape: bf16[4,128,128], index: 0, kind: input, shape index: {}]   ;;  %s1201_s1 = inlined_call_operand.hbm [shape: bf16[4,128,128], index: 1, kind: input, shape index: {}]   ;;  %s1202_s2 = inlined_call_operand.vmem [shape: f32[4,128,128], index: 2, kind: output, shape index: {0}]   ;;  %s1203_s3 = inlined_call_operand.vmem [shape: f32[4,1,128], index: 3, kind: output, shape index: {1}]   ;;  %s1204_s4 = inlined_call_operand.vmem [shape: f32[4,1,128], index: 4, kind: output, shape index: {2}]  }
   0x1   :  { %12 = vsyncpa [#allocation3 + $0x1], 0  ;;  %s1051_s15 = smov 0   ;;  %s1053_s16 = smov 0  }
   0x2   :  { %s1055_s17 = smov 0   ;;  %s1057_s18 = smov 0  }
   0x3   :  { %s1059_s19 = smov 0   ;;  %s1061_s20 = smov 0  }
   0x4 LB: > { %s772_s21 = sadd.s32 4294967295, %s1021_s20   ;;  %s30_s22 = sadd.s32 1, %s1017_s19  ;;  %s1021_s20 = sphi %s1061_s20, %s18_s20   ;;  %s1017_s19 = sphi %s1059_s19, %s1212_s19   ;;  %s1013_s18 = sphi %s1057_s18, %s1211_s18   ;;  %s1009_s17 = sphi %s1055_s17, %s1210_s17   ;;  %s1005_s16 = sphi %s1053_s16, %s1209_s16   ;;  %s1001_s15 = sphi %s1051_s15, %s1208_s15  }
   0x5   : > { %p32_p0 = scmp.ge.s32.totalorder %s30_s22, 4  ;;  %s65_s23 = sadd.s32 1, %s1009_s17 }
   0x6   : > { %p72_p1 = scmp.ne.s32.totalorder %s1009_s17, %s1005_s16  ;;  %p73_p2 = scmp.eq.s32.totalorder %s1021_s20, 0 }
   0x7   : > { %s1214_s22 = smov (%p32_p0, %s30_s22), 0  ;;  %p78_p4 = scmp.ne.s32.totalorder %s1005_s16, %s1001_s15 }
   0x8   : > { %p1087_p3 = por %p73_p2, %p72_p1  ;;  %s62_s25 = ssub.s32 %s1017_s19, %s1214_s22 }
   0x9   : > { %p79_p5 = scmp.eq.s32.totalorder %s772_s21, 0  ;;  %p63_p6 = scmp.eq.s32.totalorder %s62_s25, 0 }
   0xa   : > { %p876_p8 = scmp.lt.s32.totalorder %s1021_s20, 4  ;;  %s199_s28 = sand.u32 1, %s1009_s17  }
   0xb   : > { %p1094_p7 = por %p79_p5, %p78_p4  ;;  %s803_s29 = sshll.u32 %s1017_s19, 10 }
   0xc   : > { %s1100_s27 = scalar_select %p63_p6, %s1009_s17, %s65_s23  }
   0xd   : > { %s776_s30 = sshll.u32 %s199_s28, 6  ;;  %s209_s7 = scalar_lea.hbm %s1201_s1, %s803_s29 }
   0xe   : > { %s203_s8 = scalar_lea.vmem [#allocation2], %s776_s30  ;;  %p1109_p9 = pnand %p876_p8, %p1087_p3 }
   0xf   : > { %s210_s9 = sshll.u32 %s203_s8, 4  ;;  %s200_s11 = scalar_lea.sflag [#allocation3], %s199_s28  ;;  %s211_s9 = int_to_ptr.vmem [resolvable:$true] %s210_s9 }
  0x10   : > { %p945_p10 = pneg %p1109_p9  ;;  %s956_s12 = scalar_lea.vmem %s211_s9, 1024 }
  0x11   : > { %p957_p11 = scmp.ne.s32.totalorder %s211_s9, %s956_s12  ;;  %s1023_s13 = smov [#allocation2]  }
  0x12   : > { %s961_s14 = sshll.u32 %s1023_s13, 4  ;;  %s962_s14 = int_to_ptr.vmem [resolvable:$false] %s961_s14 }
  0x13   : > { %p959_p12 = pnand %p957_p11, %p945_p10  ;;  %s963_s15 = scalar_lea.vmem %s962_s14, 2048 }
  0x14   : > { %p964_p0 = scmp.lt.s32.totalorder %s211_s9, %s962_s14  ;;  %p965_p1 = scmp.lt.s32.totalorder %s963_s15, %s956_s12 }
  0x15   : > { %p960_p13 = pneg %p959_p12 }
  0x16   : > { %p966_p2 = por %p965_p1, %p964_p0 }
  0x18   : > { %p967_p3 = pnand %p966_p2, %p960_p13 }
  0x1a   : > { %970 = shalt.err (!%p967_p3)
}
  0x1b   : > { %s1024_s21 = smov 64   ;;  %s1025_s23 = smov 4  }
  0x1c   : > { %875 = dma.hbm_to_vmem [thread:$0]  (!%p1109_p9), %s209_s7, 1024, %s211_s9, %s200_s11, %s1024_s21, %s1024_s21, %s1025_s23  }
  0x1d   : > { %p779_p4 = scmp.ge.s32.totalorder %s1021_s20, 1  ;;  %p218_p5 = scmp.lt.s32.totalorder %s1021_s20, 5 }
  0x1f   : > { %p219_p6 = pnand %p779_p4, %p218_p5 }
  0x20   : > { %s224_s24 = sand.u32 (!%p219_p6), 1, %s1005_s16  }
  0x21   : > { %222 = sbr.rel (%p219_p6) target bundleno = 316 (0x13c), region = 28  ;;  %s780_s25 = sshll.u32 (!%p219_p6), %s224_s24, 6 }
  0x22   : > { %s225_s28 = scalar_lea.sflag (!%p219_p6), [#allocation3], %s224_s24  ;;  %s1120_s29 = scalar_lea.vmem (!%p219_p6), [#allocation2], %s780_s25 }
  0x26   : > { %996 = dma.done.wait (%p1094_p7), %s225_s28, 1024  }
  0x27   : > { %998 = vsyncadd (%p1094_p7), %s225_s28, 4294966272  ;;  %p275_p8 = scmp.lt.s32.totalorder %s1013_s18, 3  ;;  %v927_v0 = vld [vmem:[%s1120_s29 + $0x38] sm:$0xff]   ;;  %v928_v1 = vld [vmem:[%s1120_s29 + $0x30] sm:$0xff]  }
  0x28   : > { %822 = vmatprep.subr.bf16.mxu0 %v927_v0  ;;  %854 = vmatprep.subr.bf16.mxu1 %v927_v0  ;;  %v929_v2 = vld [vmem:[%s1120_s29 + $0x28] sm:$0xff]   ;;  %v930_v3 = vld [vmem:[%s1120_s29 + $0x20] sm:$0xff]   ;;  %v931_v5 = vld [vmem:[%s1120_s29 + $0x18] sm:$0xff]  }
  0x29   : > { %s1216_s18 = smov (!%p275_p8, %s1013_s18), 3  ;;  %823 = vmatpush3.bf16.msra.mxu0 %v927_v0  ;;  %862 = vmatpush3.bf16.msra.mxu1 %v927_v0  ;;  %v932_v7 = vld [vmem:[%s1120_s29 + $0x10] sm:$0xff]   ;;  %v933_v8 = vld [vmem:[%s1120_s29 + $0x8] sm:$0xff]   ;;  %v934_v9 = vld [vmem:[%s1120_s29] sm:$0xff]  }
  0x2a   : > { %s804_s30 = sshll.u32 %s1216_s18, 6  ;;  %824 = vmatprep.subr.bf16.mxu0 %v928_v1  ;;  %855 = vmatprep.subr.bf16.mxu1 %v928_v1  ;;  %s805_s7 = sshll.u32 %s1216_s18, 7 }
  0x2b   : > { %s1137_s6 = scalar_lea.vmem %s1200_s0, %s804_s30  ;;  %s1156_s10 = scalar_lea.vmem %s1202_s2, %s805_s7 }
  0x2c   : > { %v935_v4 = vld [vmem:[%s1137_s6] sm:$0xff]   ;;  %v936_v10 = vld [vmem:[%s1137_s6 + $0x8] sm:$0xff]   ;;  %v937_v12 = vld [vmem:[%s1137_s6 + $0x10] sm:$0xff]   ;;  %s297_s13 = scalar_lea.vmem %s1203_s3, %s1216_s18  ;;  %s302_s21 = scalar_lea.vmem %s1204_s4, %s1216_s18 }
  0x2d   : > { %825 = vmatpush3.bf16.msra.mxu0 %v928_v1  ;;  %863 = vmatpush3.bf16.msra.mxu1 %v928_v1  ;;  %v939_v6 = vld [vmem:[%s1137_s6 + $0x20] sm:$0xff]   ;;  %v940_v11 = vld [vmem:[%s1137_s6 + $0x28] sm:$0xff]   ;;  %v941_v13 = vld [vmem:[%s1137_s6 + $0x30] sm:$0xff]  }
  0x2e   : > { %826 = vmatprep.subr.bf16.mxu0 %v929_v2  ;;  %856 = vmatprep.subr.bf16.mxu1 %v929_v2  ;;  %v938_v14 = vld [vmem:[%s1137_s6 + $0x18] sm:$0xff]  }
  0x2f   : > { %838 = vmatprep.mubr.bf16.mxu0 %v935_v4  ;;  %846 = vmatprep.mubr.bf16.mxu1 %v939_v6  ;;  %v942_v15 = vld [vmem:[%s1137_s6 + $0x38] sm:$0xff]  }
  0x31   : > { %827 = vmatpush3.bf16.msra.mxu0 %v929_v2  ;;  %864 = vmatpush3.bf16.msra.mxu1 %v929_v2 }
  0x32   : > { %828 = vmatprep.subr.bf16.mxu0 %v930_v3  ;;  %857 = vmatprep.subr.bf16.mxu1 %v930_v3 }
  0x35   : > { %829 = vmatpush3.bf16.msra.mxu0 %v930_v3  ;;  %865 = vmatpush3.bf16.msra.mxu1 %v930_v3 }
  0x36   : > { %830 = vmatprep.subr.bf16.mxu0 %v931_v5  ;;  %858 = vmatprep.subr.bf16.mxu1 %v931_v5 }
  0x39   : > { %831 = vmatpush3.bf16.msra.mxu0 %v931_v5  ;;  %866 = vmatpush3.bf16.msra.mxu1 %v931_v5 }
  0x3a   : > { %832 = vmatprep.subr.bf16.mxu0 %v932_v7  ;;  %859 = vmatprep.subr.bf16.mxu1 %v932_v7 }
  0x3d   : > { %833 = vmatpush3.bf16.msra.mxu0 %v932_v7  ;;  %867 = vmatpush3.bf16.msra.mxu1 %v932_v7 }
  0x3e   : > { %834 = vmatprep.subr.bf16.mxu0 %v933_v8  ;;  %860 = vmatprep.subr.bf16.mxu1 %v933_v8 }
  0x41   : > { %835 = vmatpush3.bf16.msra.mxu0 %v933_v8  ;;  %868 = vmatpush3.bf16.msra.mxu1 %v933_v8 }
  0x42   : > { %836 = vmatprep.subr.bf16.mxu0 %v934_v9  ;;  %861 = vmatprep.subr.bf16.mxu1 %v934_v9 }
  0x45   : > { %837 = vmatpush3.bf16.msra.mxu0 %v934_v9  ;;  %869 = vmatpush3.bf16.msra.mxu1 %v934_v9 }
  0x48   : > { %839 = vmatmul.mubr.bf16.vlgmr.msra.gmra.mxu0 %v936_v10  ;;  %847 = vmatmul.mubr.bf16.vlgmr.msra.gmra.mxu1 %v940_v11 }
  0x49   : > { %842 = vmatprep.mubr.bf16.mxu0 %v937_v12  ;;  %850 = vmatprep.mubr.bf16.mxu1 %v941_v13 }
  0x50   : > { %843 = vmatmul.mubr.bf16.gmra.mxu0 %v938_v14  ;;  %851 = vmatmul.mubr.bf16.gmra.mxu1 %v942_v15 }
 0x108   : > { %v840_v16 = vpop.f32.mrf.mxu0  ;;  %v848_v17 = vpop.f32.mrf.mxu1 }
 0x109   : > { %532 = vst [vmem:[%s1156_s10 + $0x10] sm:$0xff] %v840_v16  ;;  %540 = vst [vmem:[%s1156_s10 + $0x50] sm:$0xff] %v848_v17  ;;  %v570_v29 = vmul.f32 %v840_v16, %v840_v16  ;;  %v578_v59 = vmul.f32 %v848_v17, %v848_v17 }
 0x10a   : > { %v467_v18 = vpop.f32.mrf.mxu0  ;;  %v499_v19 = vpop.f32.mrf.mxu1 }
 0x10b   : > { %530 = vst [vmem:[%s1156_s10] sm:$0xff] %v467_v18  ;;  %538 = vst [vmem:[%s1156_s10 + $0x40] sm:$0xff] %v499_v19  ;;  %v568_v24 = vmul.f32 %v467_v18, %v467_v18  ;;  %v576_v53 = vmul.f32 %v499_v19, %v499_v19 }
 0x10c   : > { %v841_v20 = vpop.f32.mrf.mxu0  ;;  %v849_v21 = vpop.f32.mrf.mxu1 }
 0x10d   : > { %533 = vst [vmem:[%s1156_s10 + $0x18] sm:$0xff] %v841_v20  ;;  %541 = vst [vmem:[%s1156_s10 + $0x58] sm:$0xff] %v849_v21  ;;  %v571_v34 = vmul.f32 %v841_v20, %v841_v20  ;;  %v579_v62 = vmul.f32 %v849_v21, %v849_v21 }
 0x10e   : > { %v470_v22 = vpop.f32.mrf.mxu0  ;;  %v502_v23 = vpop.f32.mrf.mxu1 }
 0x10f   : > { %531 = vst [vmem:[%s1156_s10 + $0x8] sm:$0xff] %v470_v22  ;;  %v546_v25 = vadd.f32 %v470_v22, %v467_v18  ;;  %v569_v26 = vmul.f32 %v470_v22, %v470_v22  ;;  %539 = vst [vmem:[%s1156_s10 + $0x48] sm:$0xff] %v502_v23  ;;  %v577_v57 = vmul.f32 %v502_v23, %v502_v23 }
 0x110   : > { %v844_v27 = vpop.f32.mrf.mxu0  ;;  %v852_v28 = vpop.f32.mrf.mxu1 }
 0x111   : > { %v547_v30 = vadd.f32 %v840_v16, %v546_v25  ;;  %v584_v31 = vadd.f32 %v569_v26, %v568_v24  ;;  %536 = vst [vmem:[%s1156_s10 + $0x30] sm:$0xff] %v844_v27  ;;  %544 = vst [vmem:[%s1156_s10 + $0x70] sm:$0xff] %v852_v28  ;;  %v574_v47 = vmul.f32 %v844_v27, %v844_v27 }
 0x112   : > { %v483_v32 = vpop.f32.mrf.mxu0  ;;  %v515_v33 = vpop.f32.mrf.mxu1  ;;  %v582_v7 = vmul.f32 %v852_v28, %v852_v28 }
 0x113   : > { %v585_v35 = vadd.f32 %v584_v31, %v570_v29  ;;  %534 = vst [vmem:[%s1156_s10 + $0x20] sm:$0xff] %v483_v32  ;;  %v548_v36 = vadd.f32 %v841_v20, %v547_v30  ;;  %542 = vst [vmem:[%s1156_s10 + $0x60] sm:$0xff] %v515_v33  ;;  %v572_v40 = vmul.f32 %v483_v32, %v483_v32 }
 0x114   : > { %v845_v37 = vpop.f32.mrf.mxu0  ;;  %v853_v38 = vpop.f32.mrf.mxu1  ;;  %v580_v2 = vmul.f32 %v515_v33, %v515_v33 }
 0x115   : > { %v549_v39 = vadd.f32 %v548_v36, %v483_v32  ;;  %v586_v41 = vadd.f32 %v585_v35, %v571_v34  ;;  %537 = vst [vmem:[%s1156_s10 + $0x38] sm:$0xff] %v845_v37  ;;  %545 = vst [vmem:[%s1156_s10 + $0x78] sm:$0xff] %v853_v38  ;;  %v575_v50 = vmul.f32 %v845_v37, %v845_v37 }
 0x116   : > { %v486_v42 = vpop.f32.mrf.mxu0  ;;  %v518_v43 = vpop.f32.mrf.mxu1  ;;  %v583_v10 = vmul.f32 %v853_v38, %v853_v38 }
 0x117   : > { %v587_v44 = vadd.f32 %v586_v41, %v572_v40  ;;  %535 = vst [vmem:[%s1156_s10 + $0x28] sm:$0xff] %v486_v42  ;;  %v550_v45 = vadd.f32 %v549_v39, %v486_v42  ;;  %v573_v46 = vmul.f32 %v486_v42, %v486_v42  ;;  %543 = vst [vmem:[%s1156_s10 + $0x68] sm:$0xff] %v518_v43 }
 0x118   : > { %v581_v6 = vmul.f32 %v518_v43, %v518_v43 }
 0x119   : > { %v551_v48 = vadd.f32 %v844_v27, %v550_v45  ;;  %v588_v49 = vadd.f32 %v587_v44, %v573_v46 }
 0x11b   : > { %v552_v51 = vadd.f32 %v845_v37, %v551_v48  ;;  %v589_v52 = vadd.f32 %v588_v49, %v574_v47 }
 0x11d   : > { %v590_v54 = vadd.f32 %v589_v52, %v575_v50  ;;  %v553_v55 = vadd.f32 %v552_v51, %v499_v19 }
 0x11f   : > { %v554_v56 = vadd.f32 %v553_v55, %v502_v23  ;;  %v591_v58 = vadd.f32 %v590_v54, %v576_v53 }
 0x121   : > { %v555_v60 = vadd.f32 %v848_v17, %v554_v56  ;;  %v592_v61 = vadd.f32 %v591_v58, %v577_v57 }
 0x123   : > { %v593_v63 = vadd.f32 %v592_v61, %v578_v59  ;;  %v556_v0 = vadd.f32 %v849_v21, %v555_v60 }
 0x125   : > { %v557_v1 = vadd.f32 %v556_v0, %v515_v33  ;;  %v594_v3 = vadd.f32 %v593_v63, %v579_v62 }
 0x127   : > { %v595_v4 = vadd.f32 %v594_v3, %v580_v2  ;;  %v558_v5 = vadd.f32 %v557_v1, %v518_v43 }
 0x129   : > { %v559_v8 = vadd.f32 %v852_v28, %v558_v5  ;;  %v596_v9 = vadd.f32 %v595_v4, %v581_v6 }
 0x12b   : > { %v560_v11 = vadd.f32 %v853_v38, %v559_v8  ;;  %v597_v12 = vadd.f32 %v596_v9, %v582_v7 }
 0x12d   : > { %v561_v13 = vrot.slane %v560_v11, 4  ;;  %v598_v14 = vadd.f32 %v597_v12, %v583_v10 }
 0x12f   : > { %v562_v15 = vadd.f32 %v561_v13, %v560_v11  ;;  %v599_v16 = vrot.slane %v598_v14, 4 }
 0x131   : > { %v563_v17 = vrot.slane %v562_v15, 2  ;;  %v600_v18 = vadd.f32 %v599_v16, %v598_v14 }
 0x133   : > { %v564_v19 = vadd.f32 %v563_v17, %v562_v15  ;;  %v601_v20 = vrot.slane %v600_v18, 2 }
 0x135   : > { %v565_v21 = vrot.slane %v564_v19, 1  ;;  %v602_v22 = vadd.f32 %v601_v20, %v600_v18 }
 0x137   : > { %v566_v23 = vadd.f32 %v565_v21, %v564_v19  ;;  %v603_v24 = vrot.slane %v602_v22, 1 }
 0x139   : > { %567 = vst [vmem:[%s297_s13] sm:$0x1] %v566_v23  ;;  %v604_v25 = vadd.f32 %v603_v24, %v602_v22 }
 0x13b   : > { %605 = vst [vmem:[%s302_s21] sm:$0x1] %v604_v25 }
 0x13c PF: > { %s18_s20 = sadd.s32 1, %s1021_s20   ;;  %s1208_s15 = smov %s1005_s16 }
 0x13d   : > { %p15_p7 = scmp.ge.s32.totalorder %s18_s20, 6   ;;  %s1209_s16 = smov %s1009_s17 }
 0x13e   : > { %s1210_s17 = smov %s1100_s27  ;;  %s1211_s18 = smov %s1017_s19 }
 0x13f   : > { %s1212_s19 = smov %s1214_s22  ;;  %17 = sbr.rel (!%p15_p7) target bundleno = 4 (0x4), region = 95 }
 0x144   :  { %666 = vsyncpa [#allocation3], 1 }
 0x145   :  { %668 = vsyncpa [#allocation3 + $0x1], 1 }

// kernel: _lambda_.15
= control target key start
LH: loop header
LB: loop body
LE: loop exit
PB: predicated region body
PF: predicated region fallthrough
CT: control target
= control target key end

     0   :  { %s1622_s15 = smov 0   ;;  %s1624_s16 = smov 0   ;;  %s1973_s0 = inlined_call_operand.vmem [shape: bf16[4,512,128], index: 0, kind: input, shape index: {}]   ;;  %s1974_s1 = inlined_call_operand.vmem [shape: bf16[4,128,128], index: 1, kind: input, shape index: {}]   ;;  %s1975_s2 = inlined_call_operand.vmem [shape: f32[4,512,128], index: 2, kind: output, shape index: {0}]   ;;  %s1976_s3 = inlined_call_operand.vmem [shape: f32[4,1,128], index: 3, kind: output, shape index: {1}]   ;;  %s1977_s4 = inlined_call_operand.vmem [shape: f32[4,1,128], index: 4, kind: output, shape index: {2}]  }
   0x1   :  { %s1626_s17 = smov 0  }
   0x2 LB: > { %s27_s18 = sadd.s32 1, %s1591_s16  ;;  %p1321_p0 = scmp.ge.s32.totalorder %s1595_s17, 1  ;;  %s1595_s17 = sphi %s1626_s17, %s15_s17   ;;  %s1591_s16 = sphi %s1624_s16, %s1979_s16   ;;  %s1587_s15 = sphi %s1622_s15, %s1978_s15  }
   0x3   : > { %p29_p1 = scmp.ge.s32.totalorder %s27_s18, 4  ;;  %p202_p2 = scmp.lt.s32.totalorder %s1595_s17, 5 }
   0x5   : > { %s1981_s18 = smov (%p29_p1, %s27_s18), 0  ;;  %p203_p3 = pnand %p1321_p0, %p202_p2 }
   0x6   : > { %p250_p4 = scmp.lt.s32.totalorder (!%p203_p3), %s1587_s15, 3 }
   0x7   : > { %206 = sbr.rel (%p203_p3) target bundleno = 388 (0x184), region = 28 }
   0xc   : > { %s1983_s15 = smov (!%p250_p4, %s1587_s15), 3 }
   0xd   : > { %s1371_s19 = sshll.u32 %s1983_s15, 6  ;;  %s1370_s23 = sshll.u32 %s1983_s15, 8 }
   0xe   : > { %s1646_s22 = scalar_lea.vmem %s1974_s1, %s1371_s19  ;;  %s1655_s26 = scalar_lea.vmem %s1973_s0, %s1370_s23 }
   0xf   : > { %v1533_v0 = vld [vmem:[%s1646_s22 + $0x38] sm:$0xff]   ;;  %v1534_v1 = vld [vmem:[%s1646_s22 + $0x30] sm:$0xff]   ;;  %v1535_v2 = vld [vmem:[%s1646_s22 + $0x28] sm:$0xff]   ;;  %s1372_s27 = sshll.u32 %s1983_s15, 9  ;;  %s277_s7 = scalar_lea.vmem %s1976_s3, %s1983_s15 }
  0x10   : > { %1413 = vmatprep.subr.bf16.mxu0 %v1533_v0  ;;  %1493 = vmatprep.subr.bf16.mxu1 %v1533_v0  ;;  %v1536_v3 = vld [vmem:[%s1646_s22 + $0x20] sm:$0xff]   ;;  %v1537_v5 = vld [vmem:[%s1646_s22 + $0x18] sm:$0xff]   ;;  %v1538_v6 = vld [vmem:[%s1646_s22 + $0x10] sm:$0xff]   ;;  %s1698_s30 = scalar_lea.vmem %s1975_s2, %s1372_s27  ;;  %s282_s10 = scalar_lea.vmem %s1977_s4, %s1983_s15 }
  0x11   : > { %1414 = vmatpush3.bf16.msra.mxu0 %v1533_v0  ;;  %1501 = vmatpush3.bf16.msra.mxu1 %v1533_v0  ;;  %v1541_v4 = vld [vmem:[%s1655_s26] sm:$0xff]   ;;  %v1539_v7 = vld [vmem:[%s1646_s22 + $0x8] sm:$0xff]   ;;  %v1543_v11 = vld [vmem:[%s1655_s26 + $0x10] sm:$0xff]  }
  0x12   : > { %1415 = vmatprep.subr.bf16.mxu0 %v1534_v1  ;;  %1494 = vmatprep.subr.bf16.mxu1 %v1534_v1  ;;  %v1540_v8 = vld [vmem:[%s1646_s22] sm:$0xff]   ;;  %v1542_v10 = vld [vmem:[%s1655_s26 + $0x8] sm:$0xff]   ;;  %v1559_v13 = vld [vmem:[%s1655_s26 + $0x90] sm:$0xff]  }
  0x13   : > { %1429 = vmatprep.mubr.bf16.mxu0 %v1541_v4  ;;  %v1557_v9 = vld [vmem:[%s1655_s26 + $0x80] sm:$0xff]   ;;  %v1558_v12 = vld [vmem:[%s1655_s26 + $0x88] sm:$0xff]   ;;  %v1544_v14 = vld [vmem:[%s1655_s26 + $0x18] sm:$0xff]  }
  0x14   : > { %1461 = vmatprep.mubr.bf16.mxu1 %v1557_v9  ;;  %v1545_v15 = vld [vmem:[%s1655_s26 + $0x20] sm:$0xff]   ;;  %v1560_v16 = vld [vmem:[%s1655_s26 + $0x98] sm:$0xff]   ;;  %v1546_v18 = vld [vmem:[%s1655_s26 + $0x28] sm:$0xff]  }
  0x15   : > { %1416 = vmatpush3.bf16.msra.mxu0 %v1534_v1  ;;  %1502 = vmatpush3.bf16.msra.mxu1 %v1534_v1  ;;  %v1561_v17 = vld [vmem:[%s1655_s26 + $0xa0] sm:$0xff]   ;;  %v1562_v19 = vld [vmem:[%s1655_s26 + $0xa8] sm:$0xff]   ;;  %v1547_v20 = vld [vmem:[%s1655_s26 + $0x30] sm:$0xff]  }
  0x16   : > { %1417 = vmatprep.subr.bf16.mxu0 %v1535_v2  ;;  %1495 = vmatprep.subr.bf16.mxu1 %v1535_v2  ;;  %v1563_v21 = vld [vmem:[%s1655_s26 + $0xb0] sm:$0xff]   ;;  %v1548_v22 = vld [vmem:[%s1655_s26 + $0x38] sm:$0xff]   ;;  %v1549_v24 = vld [vmem:[%s1655_s26 + $0x40] sm:$0xff]  }
  0x17   : > { %v1564_v23 = vld [vmem:[%s1655_s26 + $0xb8] sm:$0xff]   ;;  %v1565_v25 = vld [vmem:[%s1655_s26 + $0xc0] sm:$0xff]   ;;  %v1550_v26 = vld [vmem:[%s1655_s26 + $0x48] sm:$0xff]  }
  0x18   : > { %v1566_v27 = vld [vmem:[%s1655_s26 + $0xc8] sm:$0xff]   ;;  %v1551_v28 = vld [vmem:[%s1655_s26 + $0x50] sm:$0xff]   ;;  %v1552_v30 = vld [vmem:[%s1655_s26 + $0x58] sm:$0xff]  }
  0x19   : > { %1418 = vmatpush3.bf16.msra.mxu0 %v1535_v2  ;;  %1503 = vmatpush3.bf16.msra.mxu1 %v1535_v2  ;;  %v1567_v29 = vld [vmem:[%s1655_s26 + $0xd0] sm:$0xff]   ;;  %v1568_v31 = vld [vmem:[%s1655_s26 + $0xd8] sm:$0xff]   ;;  %v1553_v32 = vld [vmem:[%s1655_s26 + $0x60] sm:$0xff]  }
  0x1a   : > { %1419 = vmatprep.subr.bf16.mxu0 %v1536_v3  ;;  %1496 = vmatprep.subr.bf16.mxu1 %v1536_v3  ;;  %v1569_v33 = vld [vmem:[%s1655_s26 + $0xe0] sm:$0xff]   ;;  %v1554_v34 = vld [vmem:[%s1655_s26 + $0x68] sm:$0xff]   ;;  %v1555_v36 = vld [vmem:[%s1655_s26 + $0x70] sm:$0xff]  }
  0x1b   : > { %v1570_v35 = vld [vmem:[%s1655_s26 + $0xe8] sm:$0xff]   ;;  %v1571_v37 = vld [vmem:[%s1655_s26 + $0xf0] sm:$0xff]   ;;  %v1556_v38 = vld [vmem:[%s1655_s26 + $0x78] sm:$0xff]  }
  0x1c   : > { %v1572_v39 = vld [vmem:[%s1655_s26 + $0xf8] sm:$0xff]  }
  0x1d   : > { %1420 = vmatpush3.bf16.msra.mxu0 %v1536_v3  ;;  %1504 = vmatpush3.bf16.msra.mxu1 %v1536_v3 }
  0x1e   : > { %1421 = vmatprep.subr.bf16.mxu0 %v1537_v5  ;;  %1497 = vmatprep.subr.bf16.mxu1 %v1537_v5 }
  0x21   : > { %1422 = vmatpush3.bf16.msra.mxu0 %v1537_v5  ;;  %1505 = vmatpush3.bf16.msra.mxu1 %v1537_v5 }
  0x22   : > { %1423 = vmatprep.subr.bf16.mxu0 %v1538_v6  ;;  %1498 = vmatprep.subr.bf16.mxu1 %v1538_v6 }
  0x25   : > { %1424 = vmatpush3.bf16.msra.mxu0 %v1538_v6  ;;  %1506 = vmatpush3.bf16.msra.mxu1 %v1538_v6 }
  0x26   : > { %1425 = vmatprep.subr.bf16.mxu0 %v1539_v7  ;;  %1499 = vmatprep.subr.bf16.mxu1 %v1539_v7 }
  0x29   : > { %1426 = vmatpush3.bf16.msra.mxu0 %v1539_v7  ;;  %1507 = vmatpush3.bf16.msra.mxu1 %v1539_v7 }
  0x2a   : > { %1427 = vmatprep.subr.bf16.mxu0 %v1540_v8  ;;  %1500 = vmatprep.subr.bf16.mxu1 %v1540_v8 }
  0x2d   : > { %1428 = vmatpush3.bf16.msra.mxu0 %v1540_v8  ;;  %1508 = vmatpush3.bf16.msra.mxu1 %v1540_v8 }
  0x30   : > { %1430 = vmatmul.mubr.bf16.vlgmr.msra.gmra.mxu0 %v1542_v10  ;;  %1462 = vmatmul.mubr.bf16.vlgmr.msra.gmra.mxu1 %v1558_v12 }
  0x31   : > { %1433 = vmatprep.mubr.bf16.mxu0 %v1543_v11  ;;  %1465 = vmatprep.mubr.bf16.mxu1 %v1559_v13 }
  0x38   : > { %1434 = vmatmul.mubr.bf16.gmra.mxu0 %v1544_v14  ;;  %1466 = vmatmul.mubr.bf16.gmra.mxu1 %v1560_v16 }
  0x39   : > { %1437 = vmatprep.mubr.bf16.mxu0 %v1545_v15  ;;  %1469 = vmatprep.mubr.bf16.mxu1 %v1561_v17 }
  0x40   : > { %1438 = vmatmul.mubr.bf16.gmra.mxu0 %v1546_v18  ;;  %1470 = vmatmul.mubr.bf16.gmra.mxu1 %v1562_v19 }
  0x41   : > { %1441 = vmatprep.mubr.bf16.mxu0 %v1547_v20  ;;  %1473 = vmatprep.mubr.bf16.mxu1 %v1563_v21 }
  0x48   : > { %1442 = vmatmul.mubr.bf16.gmra.mxu0 %v1548_v22  ;;  %1474 = vmatmul.mubr.bf16.gmra.mxu1 %v1564_v23 }
  0x49   : > { %1445 = vmatprep.mubr.bf16.mxu0 %v1549_v24  ;;  %1477 = vmatprep.mubr.bf16.mxu1 %v1565_v25 }
  0x50   : > { %1446 = vmatmul.mubr.bf16.gmra.mxu0 %v1550_v26  ;;  %1478 = vmatmul.mubr.bf16.gmra.mxu1 %v1566_v27 }
  0x51   : > { %1449 = vmatprep.mubr.bf16.mxu0 %v1551_v28  ;;  %1481 = vmatprep.mubr.bf16.mxu1 %v1567_v29 }
  0x58   : > { %1450 = vmatmul.mubr.bf16.gmra.mxu0 %v1552_v30  ;;  %1482 = vmatmul.mubr.bf16.gmra.mxu1 %v1568_v31 }
  0x59   : > { %1453 = vmatprep.mubr.bf16.mxu0 %v1553_v32  ;;  %1485 = vmatprep.mubr.bf16.mxu1 %v1569_v33 }
  0x60   : > { %1454 = vmatmul.mubr.bf16.gmra.mxu0 %v1554_v34  ;;  %1486 = vmatmul.mubr.bf16.gmra.mxu1 %v1570_v35 }
  0x61   : > { %1457 = vmatprep.mubr.bf16.mxu0 %v1555_v36  ;;  %1489 = vmatprep.mubr.bf16.mxu1 %v1571_v37 }
  0x68   : > { %1458 = vmatmul.mubr.bf16.gmra.mxu0 %v1556_v38  ;;  %1490 = vmatmul.mubr.bf16.gmra.mxu1 %v1572_v39 }
  0xf0   : > { %v1431_v40 = vpop.f32.mrf.mxu0  ;;  %v1700_v41 = vpop.f32.mrf.mxu1 }
  0xf1   : > { %896 = vst [vmem:[%s1698_s30 + $0x10] sm:$0xff] %v1431_v40  ;;  %928 = vst [vmem:[%s1698_s30 + $0x110] sm:$0xff] %v1700_v41  ;;  %v1030_v53 = vmul.f32 %v1431_v40, %v1431_v40 }
  0xf2   : > { %v639_v42 = vpop.f32.mrf.mxu0  ;;  %v1705_v43 = vpop.f32.mrf.mxu1 }
  0xf3   : > { %894 = vst [vmem:[%s1698_s30] sm:$0xff] %v639_v42  ;;  %926 = vst [vmem:[%s1698_s30 + $0x100] sm:$0xff] %v1705_v43  ;;  %v1028_v48 = vmul.f32 %v639_v42, %v639_v42 }
  0xf4   : > { %v1432_v44 = vpop.f32.mrf.mxu0  ;;  %v1710_v45 = vpop.f32.mrf.mxu1 }
  0xf5   : > { %897 = vst [vmem:[%s1698_s30 + $0x18] sm:$0xff] %v1432_v44  ;;  %929 = vst [vmem:[%s1698_s30 + $0x118] sm:$0xff] %v1710_v45  ;;  %v1031_v58 = vmul.f32 %v1432_v44, %v1432_v44 }
  0xf6   : > { %v642_v46 = vpop.f32.mrf.mxu0  ;;  %v1715_v47 = vpop.f32.mrf.mxu1 }
  0xf7   : > { %895 = vst [vmem:[%s1698_s30 + $0x8] sm:$0xff] %v642_v46  ;;  %v958_v49 = vadd.f32 %v642_v46, %v639_v42  ;;  %v1029_v50 = vmul.f32 %v642_v46, %v642_v46  ;;  %927 = vst [vmem:[%s1698_s30 + $0x108] sm:$0xff] %v1715_v47 }
  0xf8   : > { %v1435_v51 = vpop.f32.mrf.mxu0  ;;  %v1720_v52 = vpop.f32.mrf.mxu1 }
  0xf9   : > { %v959_v54 = vadd.f32 %v1431_v40, %v958_v49  ;;  %v1092_v55 = vadd.f32 %v1029_v50, %v1028_v48  ;;  %900 = vst [vmem:[%s1698_s30 + $0x30] sm:$0xff] %v1435_v51  ;;  %932 = vst [vmem:[%s1698_s30 + $0x130] sm:$0xff] %v1720_v52  ;;  %v1034_v9 = vmul.f32 %v1435_v51, %v1435_v51 }
  0xfa   : > { %v655_v56 = vpop.f32.mrf.mxu0  ;;  %v1725_v57 = vpop.f32.mrf.mxu1 }
  0xfb   : > { %v1093_v59 = vadd.f32 %v1092_v55, %v1030_v53  ;;  %898 = vst [vmem:[%s1698_s30 + $0x20] sm:$0xff] %v655_v56  ;;  %v960_v60 = vadd.f32 %v1432_v44, %v959_v54  ;;  %930 = vst [vmem:[%s1698_s30 + $0x120] sm:$0xff] %v1725_v57  ;;  %v1032_v0 = vmul.f32 %v655_v56, %v655_v56 }
  0xfc   : > { %v1436_v61 = vpop.f32.mrf.mxu0  ;;  %v1730_v62 = vpop.f32.mrf.mxu1 }
  0xfd   : > { %v961_v63 = vadd.f32 %v960_v60, %v655_v56  ;;  %v1094_v1 = vadd.f32 %v1093_v59, %v1031_v58  ;;  %901 = vst [vmem:[%s1698_s30 + $0x38] sm:$0xff] %v1436_v61  ;;  %933 = vst [vmem:[%s1698_s30 + $0x138] sm:$0xff] %v1730_v62  ;;  %v1035_v14 = vmul.f32 %v1436_v61, %v1436_v61 }
  0xfe   : > { %v658_v2 = vpop.f32.mrf.mxu0  ;;  %v1735_v3 = vpop.f32.mrf.mxu1 }
  0xff   : > { %v1095_v4 = vadd.f32 %v1094_v1, %v1032_v0  ;;  %899 = vst [vmem:[%s1698_s30 + $0x28] sm:$0xff] %v658_v2  ;;  %v962_v5 = vadd.f32 %v961_v63, %v658_v2  ;;  %v1033_v6 = vmul.f32 %v658_v2, %v658_v2  ;;  %931 = vst [vmem:[%s1698_s30 + $0x128] sm:$0xff] %v1735_v3 }
 0x100   : > { %v1439_v7 = vpop.f32.mrf.mxu0  ;;  %v1740_v8 = vpop.f32.mrf.mxu1 }
 0x101   : > { %v963_v10 = vadd.f32 %v1435_v51, %v962_v5  ;;  %v1096_v11 = vadd.f32 %v1095_v4, %v1033_v6  ;;  %904 = vst [vmem:[%s1698_s30 + $0x50] sm:$0xff] %v1439_v7  ;;  %936 = vst [vmem:[%s1698_s30 + $0x150] sm:$0xff] %v1740_v8  ;;  %v1038_v29 = vmul.f32 %v1439_v7, %v1439_v7 }
 0x102   : > { %v671_v12 = vpop.f32.mrf.mxu0  ;;  %v1745_v13 = vpop.f32.mrf.mxu1 }
 0x103   : > { %v1097_v15 = vadd.f32 %v1096_v11, %v1034_v9  ;;  %902 = vst [vmem:[%s1698_s30 + $0x40] sm:$0xff] %v671_v12  ;;  %v964_v16 = vadd.f32 %v1436_v61, %v963_v10  ;;  %934 = vst [vmem:[%s1698_s30 + $0x140] sm:$0xff] %v1745_v13  ;;  %v1036_v20 = vmul.f32 %v671_v12, %v671_v12 }
 0x104   : > { %v1440_v17 = vpop.f32.mrf.mxu0  ;;  %v1750_v18 = vpop.f32.mrf.mxu1 }
 0x105   : > { %v965_v19 = vadd.f32 %v964_v16, %v671_v12  ;;  %v1098_v21 = vadd.f32 %v1097_v15, %v1035_v14  ;;  %905 = vst [vmem:[%s1698_s30 + $0x58] sm:$0xff] %v1440_v17  ;;  %937 = vst [vmem:[%s1698_s30 + $0x158] sm:$0xff] %v1750_v18  ;;  %v1039_v34 = vmul.f32 %v1440_v17, %v1440_v17 }
 0x106   : > { %v674_v22 = vpop.f32.mrf.mxu0  ;;  %v1755_v23 = vpop.f32.mrf.mxu1 }
 0x107   : > { %v1099_v24 = vadd.f32 %v1098_v21, %v1036_v20  ;;  %903 = vst [vmem:[%s1698_s30 + $0x48] sm:$0xff] %v674_v22  ;;  %v966_v25 = vadd.f32 %v965_v19, %v674_v22  ;;  %v1037_v26 = vmul.f32 %v674_v22, %v674_v22  ;;  %935 = vst [vmem:[%s1698_s30 + $0x148] sm:$0xff] %v1755_v23 }
 0x108   : > { %v1443_v27 = vpop.f32.mrf.mxu0  ;;  %v1760_v28 = vpop.f32.mrf.mxu1 }
 0x109   : > { %v967_v30 = vadd.f32 %v1439_v7, %v966_v25  ;;  %v1100_v31 = vadd.f32 %v1099_v24, %v1037_v26  ;;  %908 = vst [vmem:[%s1698_s30 + $0x70] sm:$0xff] %v1443_v27  ;;  %940 = vst [vmem:[%s1698_s30 + $0x170] sm:$0xff] %v1760_v28  ;;  %v1042_v54 = vmul.f32 %v1443_v27, %v1443_v27 }
 0x10a   : > { %v687_v32 = vpop.f32.mrf.mxu0  ;;  %v1765_v33 = vpop.f32.mrf.mxu1 }
 0x10b   : > { %v1101_v35 = vadd.f32 %v1100_v31, %v1038_v29  ;;  %906 = vst [vmem:[%s1698_s30 + $0x60] sm:$0xff] %v687_v32  ;;  %v968_v36 = vadd.f32 %v1440_v17, %v967_v30  ;;  %938 = vst [vmem:[%s1698_s30 + $0x160] sm:$0xff] %v1765_v33  ;;  %v1040_v40 = vmul.f32 %v687_v32, %v687_v32 }
 0x10c   : > { %v1444_v37 = vpop.f32.mrf.mxu0  ;;  %v1770_v38 = vpop.f32.mrf.mxu1 }
 0x10d   : > { %v969_v39 = vadd.f32 %v968_v36, %v687_v32  ;;  %v1102_v42 = vadd.f32 %v1101_v35, %v1039_v34  ;;  %909 = vst [vmem:[%s1698_s30 + $0x78] sm:$0xff] %v1444_v37  ;;  %941 = vst [vmem:[%s1698_s30 + $0x178] sm:$0xff] %v1770_v38  ;;  %v1043_v60 = vmul.f32 %v1444_v37, %v1444_v37 }
 0x10e   : > { %v690_v44 = vpop.f32.mrf.mxu0  ;;  %v1775_v46 = vpop.f32.mrf.mxu1 }
 0x10f   : > { %v1103_v48 = vadd.f32 %v1102_v42, %v1040_v40  ;;  %907 = vst [vmem:[%s1698_s30 + $0x68] sm:$0xff] %v690_v44  ;;  %v970_v49 = vadd.f32 %v969_v39, %v690_v44  ;;  %v1041_v50 = vmul.f32 %v690_v44, %v690_v44  ;;  %939 = vst [vmem:[%s1698_s30 + $0x168] sm:$0xff] %v1775_v46 }
 0x110   : > { %v1447_v51 = vpop.f32.mrf.mxu0  ;;  %v1780_v53 = vpop.f32.mrf.mxu1 }
 0x111   : > { %v971_v55 = vadd.f32 %v1443_v27, %v970_v49  ;;  %v1104_v56 = vadd.f32 %v1103_v48, %v1041_v50  ;;  %912 = vst [vmem:[%s1698_s30 + $0x90] sm:$0xff] %v1447_v51  ;;  %944 = vst [vmem:[%s1698_s30 + $0x190] sm:$0xff] %v1780_v53  ;;  %v1046_v15 = vmul.f32 %v1447_v51, %v1447_v51 }
 0x112   : > { %v703_v58 = vpop.f32.mrf.mxu0  ;;  %v1785_v59 = vpop.f32.mrf.mxu1 }
 0x113   : > { %v1105_v61 = vadd.f32 %v1104_v56, %v1042_v54  ;;  %910 = vst [vmem:[%s1698_s30 + $0x80] sm:$0xff] %v703_v58  ;;  %v972_v63 = vadd.f32 %v1444_v37, %v971_v55  ;;  %942 = vst [vmem:[%s1698_s30 + $0x180] sm:$0xff] %v1785_v59  ;;  %v1044_v4 = vmul.f32 %v703_v58, %v703_v58 }
 0x114   : > { %v1448_v0 = vpop.f32.mrf.mxu0  ;;  %v1790_v1 = vpop.f32.mrf.mxu1 }
 0x115   : > { %v973_v2 = vadd.f32 %v972_v63, %v703_v58  ;;  %v1106_v5 = vadd.f32 %v1105_v61, %v1043_v60  ;;  %913 = vst [vmem:[%s1698_s30 + $0x98] sm:$0xff] %v1448_v0  ;;  %945 = vst [vmem:[%s1698_s30 + $0x198] sm:$0xff] %v1790_v1  ;;  %v1047_v21 = vmul.f32 %v1448_v0, %v1448_v0 }
 0x116   : > { %v706_v6 = vpop.f32.mrf.mxu0  ;;  %v1795_v7 = vpop.f32.mrf.mxu1 }
 0x117   : > { %v1107_v9 = vadd.f32 %v1106_v5, %v1044_v4  ;;  %911 = vst [vmem:[%s1698_s30 + $0x88] sm:$0xff] %v706_v6  ;;  %v974_v10 = vadd.f32 %v973_v2, %v706_v6  ;;  %v1045_v11 = vmul.f32 %v706_v6, %v706_v6  ;;  %943 = vst [vmem:[%s1698_s30 + $0x188] sm:$0xff] %v1795_v7 }
 0x118   : > { %v1451_v12 = vpop.f32.mrf.mxu0  ;;  %v1800_v14 = vpop.f32.mrf.mxu1 }
 0x119   : > { %v975_v16 = vadd.f32 %v1447_v51, %v974_v10  ;;  %v1108_v17 = vadd.f32 %v1107_v9, %v1045_v11  ;;  %916 = vst [vmem:[%s1698_s30 + $0xb0] sm:$0xff] %v1451_v12  ;;  %948 = vst [vmem:[%s1698_s30 + $0x1b0] sm:$0xff] %v1800_v14  ;;  %v1050_v40 = vmul.f32 %v1451_v12, %v1451_v12 }
 0x11a   : > { %v719_v19 = vpop.f32.mrf.mxu0  ;;  %v1805_v20 = vpop.f32.mrf.mxu1 }
 0x11b   : > { %v1109_v22 = vadd.f32 %v1108_v17, %v1046_v15  ;;  %914 = vst [vmem:[%s1698_s30 + $0xa0] sm:$0xff] %v719_v19  ;;  %v976_v24 = vadd.f32 %v1448_v0, %v975_v16  ;;  %946 = vst [vmem:[%s1698_s30 + $0x1a0] sm:$0xff] %v1805_v20  ;;  %v1048_v29 = vmul.f32 %v719_v19, %v719_v19 }
 0x11c   : > { %v1452_v25 = vpop.f32.mrf.mxu0  ;;  %v1810_v26 = vpop.f32.mrf.mxu1 }
 0x11d   : > { %v977_v27 = vadd.f32 %v976_v24, %v719_v19  ;;  %v1110_v30 = vadd.f32 %v1109_v22, %v1047_v21  ;;  %917 = vst [vmem:[%s1698_s30 + $0xb8] sm:$0xff] %v1452_v25  ;;  %949 = vst [vmem:[%s1698_s30 + $0x1b8] sm:$0xff] %v1810_v26  ;;  %v1051_v50 = vmul.f32 %v1452_v25, %v1452_v25 }
 0x11e   : > { %v722_v31 = vpop.f32.mrf.mxu0  ;;  %v1815_v32 = vpop.f32.mrf.mxu1 }
 0x11f   : > { %v1111_v34 = vadd.f32 %v1110_v30, %v1048_v29  ;;  %915 = vst [vmem:[%s1698_s30 + $0xa8] sm:$0xff] %v722_v31  ;;  %v978_v35 = vadd.f32 %v977_v27, %v722_v31  ;;  %v1049_v36 = vmul.f32 %v722_v31, %v722_v31  ;;  %947 = vst [vmem:[%s1698_s30 + $0x1a8] sm:$0xff] %v1815_v32 }
 0x120   : > { %v1455_v37 = vpop.f32.mrf.mxu0  ;;  %v1820_v39 = vpop.f32.mrf.mxu1 }
 0x121   : > { %v979_v42 = vadd.f32 %v1451_v12, %v978_v35  ;;  %v1112_v44 = vadd.f32 %v1111_v34, %v1049_v36  ;;  %920 = vst [vmem:[%s1698_s30 + $0xd0] sm:$0xff] %v1455_v37  ;;  %952 = vst [vmem:[%s1698_s30 + $0x1d0] sm:$0xff] %v1820_v39  ;;  %v1054_v10 = vmul.f32 %v1455_v37, %v1455_v37 }
 0x122   : > { %v735_v48 = vpop.f32.mrf.mxu0  ;;  %v1825_v49 = vpop.f32.mrf.mxu1 }
 0x123   : > { %v1113_v51 = vadd.f32 %v1112_v44, %v1050_v40  ;;  %918 = vst [vmem:[%s1698_s30 + $0xc0] sm:$0xff] %v735_v48  ;;  %v980_v54 = vadd.f32 %v1452_v25, %v979_v42  ;;  %950 = vst [vmem:[%s1698_s30 + $0x1c0] sm:$0xff] %v1825_v49  ;;  %v1052_v60 = vmul.f32 %v735_v48, %v735_v48 }
 0x124   : > { %v1456_v55 = vpop.f32.mrf.mxu0  ;;  %v1830_v56 = vpop.f32.mrf.mxu1 }
 0x125   : > { %v981_v58 = vadd.f32 %v980_v54, %v735_v48  ;;  %v1114_v61 = vadd.f32 %v1113_v51, %v1051_v50  ;;  %921 = vst [vmem:[%s1698_s30 + $0xd8] sm:$0xff] %v1456_v55  ;;  %953 = vst [vmem:[%s1698_s30 + $0x1d8] sm:$0xff] %v1830_v56  ;;  %v1055_v17 = vmul.f32 %v1456_v55, %v1456_v55 }
 0x126   : > { %v738_v63 = vpop.f32.mrf.mxu0  ;;  %v1835_v0 = vpop.f32.mrf.mxu1  ;;  %v1060_v51 = vmul.f32 %v1705_v43, %v1705_v43 }
 0x127   : > { %v1115_v2 = vadd.f32 %v1114_v61, %v1052_v60  ;;  %919 = vst [vmem:[%s1698_s30 + $0xc8] sm:$0xff] %v738_v63  ;;  %v982_v4 = vadd.f32 %v981_v58, %v738_v63  ;;  %v1053_v5 = vmul.f32 %v738_v63, %v738_v63  ;;  %951 = vst [vmem:[%s1698_s30 + $0x1c8] sm:$0xff] %v1835_v0 }
 0x128   : > { %v1459_v6 = vpop.f32.mrf.mxu0  ;;  %v1840_v9 = vpop.f32.mrf.mxu1  ;;  %v1061_v60 = vmul.f32 %v1715_v47, %v1715_v47  ;;  %v1062_v63 = vmul.f32 %v1700_v41, %v1700_v41 }
 0x129   : > { %v983_v11 = vadd.f32 %v1455_v37, %v982_v4  ;;  %v1116_v12 = vadd.f32 %v1115_v2, %v1053_v5  ;;  %924 = vst [vmem:[%s1698_s30 + $0xf0] sm:$0xff] %v1459_v6  ;;  %956 = vst [vmem:[%s1698_s30 + $0x1f0] sm:$0xff] %v1840_v9  ;;  %v1058_v37 = vmul.f32 %v1459_v6, %v1459_v6 }
 0x12a   : > { %v751_v15 = vpop.f32.mrf.mxu0  ;;  %v1845_v16 = vpop.f32.mrf.mxu1  ;;  %v1063_v5 = vmul.f32 %v1710_v45, %v1710_v45 }
 0x12b   : > { %v1117_v19 = vadd.f32 %v1116_v12, %v1054_v10  ;;  %922 = vst [vmem:[%s1698_s30 + $0xe0] sm:$0xff] %v751_v15  ;;  %v984_v21 = vadd.f32 %v1456_v55, %v983_v11  ;;  %954 = vst [vmem:[%s1698_s30 + $0x1e0] sm:$0xff] %v1845_v16  ;;  %v1056_v27 = vmul.f32 %v751_v15, %v751_v15 }
 0x12c   : > { %v1460_v22 = vpop.f32.mrf.mxu0  ;;  %v1850_v24 = vpop.f32.mrf.mxu1  ;;  %v1064_v11 = vmul.f32 %v1725_v57, %v1725_v57 }
 0x12d   : > { %v985_v25 = vadd.f32 %v984_v21, %v751_v15  ;;  %v1118_v29 = vadd.f32 %v1117_v19, %v1055_v17  ;;  %925 = vst [vmem:[%s1698_s30 + $0xf8] sm:$0xff] %v1460_v22  ;;  %957 = vst [vmem:[%s1698_s30 + $0x1f8] sm:$0xff] %v1850_v24  ;;  %v1059_v44 = vmul.f32 %v1460_v22, %v1460_v22 }
 0x12e   : > { %v754_v30 = vpop.f32.mrf.mxu0  ;;  %v1855_v31 = vpop.f32.mrf.mxu1  ;;  %v1065_v17 = vmul.f32 %v1735_v3, %v1735_v3 }
 0x12f   : > { %v1119_v34 = vadd.f32 %v1118_v29, %v1056_v27  ;;  %923 = vst [vmem:[%s1698_s30 + $0xe8] sm:$0xff] %v754_v30  ;;  %v986_v35 = vadd.f32 %v985_v25, %v754_v30  ;;  %v1057_v36 = vmul.f32 %v754_v30, %v754_v30  ;;  %955 = vst [vmem:[%s1698_s30 + $0x1e8] sm:$0xff] %v1855_v31 }
 0x130   : > { %v1068_v27 = vmul.f32 %v1745_v13, %v1745_v13 }
 0x131   : > { %v987_v40 = vadd.f32 %v1459_v6, %v986_v35  ;;  %v1120_v42 = vadd.f32 %v1119_v34, %v1057_v36  ;;  %v1069_v34 = vmul.f32 %v1755_v23, %v1755_v23 }
 0x133   : > { %v988_v48 = vadd.f32 %v1460_v22, %v987_v40  ;;  %v1121_v50 = vadd.f32 %v1120_v42, %v1058_v37  ;;  %v1072_v42 = vmul.f32 %v1765_v33, %v1765_v33 }
 0x135   : > { %v1122_v54 = vadd.f32 %v1121_v50, %v1059_v44  ;;  %v989_v55 = vadd.f32 %v988_v48, %v1705_v43  ;;  %v1073_v50 = vmul.f32 %v1775_v46, %v1775_v46 }
 0x137   : > { %v990_v58 = vadd.f32 %v989_v55, %v1715_v47  ;;  %v1123_v61 = vadd.f32 %v1122_v54, %v1060_v51 }
 0x139   : > { %v991_v2 = vadd.f32 %v1700_v41, %v990_v58  ;;  %v1124_v4 = vadd.f32 %v1123_v61, %v1061_v60  ;;  %v1066_v41 = vmul.f32 %v1720_v52, %v1720_v52  ;;  %v1076_v60 = vmul.f32 %v1785_v59, %v1785_v59 }
 0x13b   : > { %v1125_v6 = vadd.f32 %v1124_v4, %v1062_v63  ;;  %v992_v10 = vadd.f32 %v1710_v45, %v991_v2  ;;  %v1067_v45 = vmul.f32 %v1730_v62, %v1730_v62  ;;  %v1077_v2 = vmul.f32 %v1795_v7, %v1795_v7 }
 0x13d   : > { %v993_v43 = vadd.f32 %v992_v10, %v1725_v57  ;;  %v1126_v12 = vadd.f32 %v1125_v6, %v1063_v5 }
 0x13f   : > { %v1127_v47 = vadd.f32 %v1126_v12, %v1064_v11  ;;  %v994_v15 = vadd.f32 %v993_v43, %v1735_v3  ;;  %v1080_v43 = vmul.f32 %v1805_v20, %v1805_v20 }
 0x141   : > { %v995_v19 = vadd.f32 %v1720_v52, %v994_v15  ;;  %v1128_v21 = vadd.f32 %v1127_v47, %v1065_v17  ;;  %v1070_v52 = vmul.f32 %v1740_v8, %v1740_v8  ;;  %v1081_v47 = vmul.f32 %v1815_v32, %v1815_v32 }
 0x143   : > { %v1129_v22 = vadd.f32 %v1128_v21, %v1066_v41  ;;  %v996_v25 = vadd.f32 %v1730_v62, %v995_v19  ;;  %v1071_v62 = vmul.f32 %v1750_v18, %v1750_v18  ;;  %v1084_v21 = vmul.f32 %v1825_v49, %v1825_v49 }
 0x145   : > { %v997_v57 = vadd.f32 %v996_v25, %v1745_v13  ;;  %v1130_v29 = vadd.f32 %v1129_v22, %v1067_v45  ;;  %v1085_v25 = vmul.f32 %v1835_v0, %v1835_v0 }
 0x147   : > { %v1131_v30 = vadd.f32 %v1130_v29, %v1068_v27  ;;  %v998_v3 = vadd.f32 %v997_v57, %v1755_v23 }
 0x149   : > { %v999_v35 = vadd.f32 %v1740_v8, %v998_v3  ;;  %v1132_v36 = vadd.f32 %v1131_v30, %v1069_v34  ;;  %v1074_v8 = vmul.f32 %v1760_v28, %v1760_v28  ;;  %v1088_v3 = vmul.f32 %v1845_v16, %v1845_v16 }
 0x14b   : > { %v1133_v37 = vadd.f32 %v1132_v36, %v1070_v52  ;;  %v1000_v40 = vadd.f32 %v1750_v18, %v999_v35  ;;  %v1075_v18 = vmul.f32 %v1770_v38, %v1770_v38  ;;  %v1089_v35 = vmul.f32 %v1855_v31, %v1855_v31 }
 0x14d   : > { %v1001_v13 = vadd.f32 %v1000_v40, %v1765_v33  ;;  %v1134_v44 = vadd.f32 %v1133_v37, %v1071_v62 }
 0x14f   : > { %v1135_v48 = vadd.f32 %v1134_v44, %v1072_v42  ;;  %v1002_v23 = vadd.f32 %v1001_v13, %v1775_v46 }
 0x151   : > { %v1003_v51 = vadd.f32 %v1760_v28, %v1002_v23  ;;  %v1136_v54 = vadd.f32 %v1135_v48, %v1073_v50  ;;  %v1078_v28 = vmul.f32 %v1780_v53, %v1780_v53 }
 0x153   : > { %v1137_v55 = vadd.f32 %v1136_v54, %v1074_v8  ;;  %v1004_v58 = vadd.f32 %v1770_v38, %v1003_v51  ;;  %v1079_v38 = vmul.f32 %v1790_v1, %v1790_v1 }
 0x155   : > { %v1005_v33 = vadd.f32 %v1004_v58, %v1785_v59  ;;  %v1138_v61 = vadd.f32 %v1137_v55, %v1075_v18 }
 0x157   : > { %v1139_v63 = vadd.f32 %v1138_v61, %v1076_v60  ;;  %v1006_v46 = vadd.f32 %v1005_v33, %v1795_v7 }
 0x159   : > { %v1007_v4 = vadd.f32 %v1780_v53, %v1006_v46  ;;  %v1140_v5 = vadd.f32 %v1139_v63, %v1077_v2  ;;  %v1082_v53 = vmul.f32 %v1800_v14, %v1800_v14 }
 0x15b   : > { %v1141_v6 = vadd.f32 %v1140_v5, %v1078_v28  ;;  %v1008_v10 = vadd.f32 %v1790_v1, %v1007_v4  ;;  %v1083_v1 = vmul.f32 %v1810_v26, %v1810_v26 }
 0x15d   : > { %v1009_v59 = vadd.f32 %v1008_v10, %v1805_v20  ;;  %v1142_v11 = vadd.f32 %v1141_v6, %v1079_v38 }
 0x15f   : > { %v1143_v12 = vadd.f32 %v1142_v11, %v1080_v43  ;;  %v1010_v7 = vadd.f32 %v1009_v59, %v1815_v32 }
 0x161   : > { %v1011_v15 = vadd.f32 %v1800_v14, %v1010_v7  ;;  %v1144_v17 = vadd.f32 %v1143_v12, %v1081_v47  ;;  %v1086_v14 = vmul.f32 %v1820_v39, %v1820_v39 }
 0x163   : > { %v1145_v41 = vadd.f32 %v1144_v17, %v1082_v53  ;;  %v1012_v19 = vadd.f32 %v1810_v26, %v1011_v15  ;;  %v1087_v26 = vmul.f32 %v1830_v56, %v1830_v56 }
 0x165   : > { %v1013_v20 = vadd.f32 %v1012_v19, %v1825_v49  ;;  %v1146_v45 = vadd.f32 %v1145_v41, %v1083_v1 }
 0x167   : > { %v1147_v22 = vadd.f32 %v1146_v45, %v1084_v21  ;;  %v1014_v32 = vadd.f32 %v1013_v20, %v1835_v0 }
 0x169   : > { %v1015_v57 = vadd.f32 %v1820_v39, %v1014_v32  ;;  %v1148_v27 = vadd.f32 %v1147_v22, %v1085_v25  ;;  %v1090_v39 = vmul.f32 %v1840_v9, %v1840_v9 }
 0x16b   : > { %v1149_v29 = vadd.f32 %v1148_v27, %v1086_v14  ;;  %v1016_v30 = vadd.f32 %v1830_v56, %v1015_v57  ;;  %v1091_v56 = vmul.f32 %v1850_v24, %v1850_v24 }
 0x16d   : > { %v1017_v49 = vadd.f32 %v1016_v30, %v1845_v16  ;;  %v1150_v34 = vadd.f32 %v1149_v29, %v1087_v26 }
 0x16f   : > { %v1151_v52 = vadd.f32 %v1150_v34, %v1088_v3  ;;  %v1018_v0 = vadd.f32 %v1017_v49, %v1855_v31 }
 0x171   : > { %v1019_v36 = vadd.f32 %v1840_v9, %v1018_v0  ;;  %v1152_v62 = vadd.f32 %v1151_v52, %v1089_v35 }
 0x173   : > { %v1020_v16 = vadd.f32 %v1850_v24, %v1019_v36  ;;  %v1153_v37 = vadd.f32 %v1152_v62, %v1090_v39 }
 0x175   : > { %v1021_v40 = vrot.slane %v1020_v16, 4  ;;  %v1154_v13 = vadd.f32 %v1153_v37, %v1091_v56 }
 0x177   : > { %v1022_v42 = vadd.f32 %v1021_v40, %v1020_v16  ;;  %v1155_v44 = vrot.slane %v1154_v13, 4 }
 0x179   : > { %v1023_v48 = vrot.slane %v1022_v42, 2  ;;  %v1156_v31 = vadd.f32 %v1155_v44, %v1154_v13 }
 0x17b   : > { %v1024_v23 = vadd.f32 %v1023_v48, %v1022_v42  ;;  %v1157_v50 = vrot.slane %v1156_v31, 2 }
 0x17d   : > { %v1025_v8 = vrot.slane %v1024_v23, 1  ;;  %v1158_v51 = vadd.f32 %v1157_v50, %v1156_v31 }
 0x17f   : > { %v1026_v9 = vadd.f32 %v1025_v8, %v1024_v23  ;;  %v1159_v54 = vrot.slane %v1158_v51, 1 }
 0x181   : > { %1027 = vst [vmem:[%s277_s7] sm:$0x1] %v1026_v9  ;;  %v1160_v24 = vadd.f32 %v1159_v54, %v1158_v51 }
 0x183   : > { %1161 = vst [vmem:[%s282_s10] sm:$0x1] %v1160_v24 }
 0x184 PF: > { %s15_s17 = sadd.s32 1, %s1595_s17   ;;  %s1978_s15 = smov %s1591_s16 }
 0x185   : > { %p12_p5 = scmp.ge.s32.totalorder %s15_s17, 6   ;;  %s1979_s16 = smov %s1981_s18 }
 0x187   :  { %14 = sbr.rel (!%p12_p5) target bundleno = 2 (0x2), region = 85 }

// kernel: _lambda_.16
= control target key start
LH: loop header
LB: loop body
LE: loop exit
PB: predicated region body
PF: predicated region fallthrough
CT: control target
= control target key end

     0   :  { %s1289_s12 = smov 0   ;;  %s1291_s13 = smov 0   ;;  %s1564_s0 = inlined_call_operand.vmem [shape: f32[4,512,128], index: 0, kind: input, shape index: {}]   ;;  %s1565_s1 = inlined_call_operand.vmem [shape: f32[1,128], index: 1, kind: input, shape index: {}]   ;;  %s1566_s2 = inlined_call_operand.vmem [shape: f32[1,128], index: 2, kind: input, shape index: {}]   ;;  %s1567_s3 = inlined_call_operand.vmem [shape: bf16[4,512,128], index: 3, kind: output, shape index: {}]  }
   0x1   :  { %s1293_s14 = smov 0  }
   0x2 LB: > { %s25_s15 = sadd.s32 1, %s1263_s13  ;;  %p891_p0 = scmp.ge.s32.totalorder %s1267_s14, 1  ;;  %s1267_s14 = sphi %s1293_s14, %s13_s14   ;;  %s1263_s13 = sphi %s1291_s13, %s1569_s13   ;;  %s1259_s12 = sphi %s1289_s12, %s1568_s12  }
   0x3   : > { %p27_p1 = scmp.ge.s32.totalorder %s25_s15, 4  ;;  %p158_p2 = scmp.lt.s32.totalorder %s1267_s14, 5 }
   0x5   : > { %s1571_s15 = smov (%p27_p1, %s25_s15), 0  ;;  %p159_p3 = pnand %p891_p0, %p158_p2 }
   0x6   : > { %p191_p4 = scmp.lt.s32.totalorder (!%p159_p3), %s1259_s12, 3 }
   0x7   : > { %162 = sbr.rel (%p159_p3) target bundleno = 78 (0x4e), region = 32 }
   0xc   : > { %s1573_s12 = smov (!%p191_p4, %s1259_s12), 3  ;;  %v1313_v0 = vld [vmem:[%s1565_s1] ss:$0 sm:$0xff] }
   0xd   : > { %s964_s16 = sshll.u32 %s1573_s12, 9  ;;  %v1323_v1 = vld [vmem:[%s1566_s2] ss:$0 sm:$0xff]  ;;  %s965_s24 = sshll.u32 %s1573_s12, 8 }
   0xe   : > { %s1318_s21 = scalar_lea.vmem %s1564_s0, %s964_s16  ;;  %s1355_s27 = scalar_lea.vmem %s1567_s3, %s965_s24 }
   0xf   : > { %v210_v2 = vld [vmem:[%s1318_s21] sm:$0xff]  ;;  %v211_v3 = vld [vmem:[%s1318_s21 + $0x8] sm:$0xff]  ;;  %v212_v4 = vld [vmem:[%s1318_s21 + $0x10] sm:$0xff] }
  0x10   : > { %v281_v5 = vmul.f32 %v1313_v0, %v210_v2  ;;  %v282_v6 = vmul.f32 %v1313_v0, %v211_v3  ;;  %v213_v7 = vld [vmem:[%s1318_s21 + $0x18] sm:$0xff]  ;;  %v283_v8 = vmul.f32 %v1313_v0, %v212_v4  ;;  %v214_v9 = vld [vmem:[%s1318_s21 + $0x20] sm:$0xff]  ;;  %v215_v10 = vld [vmem:[%s1318_s21 + $0x28] sm:$0xff] }
  0x11   : > { %v284_v11 = vmul.f32 %v1313_v0, %v213_v7  ;;  %v285_v12 = vmul.f32 %v1313_v0, %v214_v9  ;;  %v286_v13 = vmul.f32 %v1313_v0, %v215_v10  ;;  %v216_v14 = vld [vmem:[%s1318_s21 + $0x30] sm:$0xff]  ;;  %v217_v15 = vld [vmem:[%s1318_s21 + $0x38] sm:$0xff]  ;;  %v218_v24 = vld [vmem:[%s1318_s21 + $0x40] sm:$0xff] }
  0x12   : > { %v352_v16 = vadd.f32 %v1323_v1, %v281_v5  ;;  %v353_v17 = vadd.f32 %v1323_v1, %v282_v6  ;;  %v354_v18 = vadd.f32 %v1323_v1, %v283_v8  ;;  %v287_v19 = vmul.f32 %v1313_v0, %v216_v14  ;;  %v219_v25 = vld [vmem:[%s1318_s21 + $0x48] sm:$0xff]  ;;  %v220_v30 = vld [vmem:[%s1318_s21 + $0x50] sm:$0xff]  ;;  %v221_v35 = vld [vmem:[%s1318_s21 + $0x58] sm:$0xff] }
  0x13   : > { %v355_v20 = vadd.f32 %v1323_v1, %v284_v11  ;;  %v356_v21 = vadd.f32 %v1323_v1, %v285_v12  ;;  %v357_v22 = vadd.f32 %v1323_v1, %v286_v13  ;;  %v288_v23 = vmul.f32 %v1313_v0, %v217_v15  ;;  %v222_v36 = vld [vmem:[%s1318_s21 + $0x60] sm:$0xff]  ;;  %v223_v41 = vld [vmem:[%s1318_s21 + $0x68] sm:$0xff]  ;;  %v224_v42 = vld [vmem:[%s1318_s21 + $0x70] sm:$0xff] }
  0x14   : > { %v416_v26 = vmax.f32 %v352_v16, 0.0  ;;  %v417_v27 = vmax.f32 %v353_v17, 0.0  ;;  %v418_v28 = vmax.f32 %v354_v18, 0.0  ;;  %v358_v29 = vadd.f32 %v1323_v1, %v287_v19  ;;  %v225_v51 = vld [vmem:[%s1318_s21 + $0x78] sm:$0xff]  ;;  %v226_v56 = vld [vmem:[%s1318_s21 + $0x80] sm:$0xff]  ;;  %v227_v61 = vld [vmem:[%s1318_s21 + $0x88] sm:$0xff] }
  0x15   : > { %v419_v31 = vmax.f32 %v355_v20, 0.0  ;;  %v420_v32 = vmax.f32 %v356_v21, 0.0  ;;  %v421_v33 = vmax.f32 %v357_v22, 0.0  ;;  %v359_v34 = vadd.f32 %v1323_v1, %v288_v23  ;;  %v228_v4 = vld [vmem:[%s1318_s21 + $0x90] sm:$0xff]  ;;  %v229_v5 = vld [vmem:[%s1318_s21 + $0x98] sm:$0xff]  ;;  %v230_v10 = vld [vmem:[%s1318_s21 + $0xa0] sm:$0xff] }
  0x16   : > { %v1033_v37 = vpack.c.bf16 %v417_v27, %v416_v26  ;;  %v422_v38 = vmax.f32 %v358_v29, 0.0  ;;  %v289_v39 = vmul.f32 %v1313_v0, %v218_v24  ;;  %v290_v40 = vmul.f32 %v1313_v0, %v219_v25  ;;  %v231_v15 = vld [vmem:[%s1318_s21 + $0xa8] sm:$0xff]  ;;  %v232_v20 = vld [vmem:[%s1318_s21 + $0xb0] sm:$0xff]  ;;  %v233_v25 = vld [vmem:[%s1318_s21 + $0xb8] sm:$0xff] }
  0x17   : > { %v1038_v43 = vpack.c.bf16 %v419_v31, %v418_v28  ;;  %v1043_v44 = vpack.c.bf16 %v421_v33, %v420_v32  ;;  %v423_v45 = vmax.f32 %v359_v34, 0.0  ;;  %v291_v46 = vmul.f32 %v1313_v0, %v220_v30  ;;  %v234_v30 = vld [vmem:[%s1318_s21 + $0xc0] sm:$0xff] }
  0x18   : > { %1034 = vst [vmem:[%s1355_s27] sm:$0xff] %v1033_v37   ;;  %v360_v47 = vadd.f32 %v1323_v1, %v289_v39  ;;  %v361_v48 = vadd.f32 %v1323_v1, %v290_v40  ;;  %v292_v49 = vmul.f32 %v1313_v0, %v221_v35  ;;  %v293_v50 = vmul.f32 %v1313_v0, %v222_v36  ;;  %v235_v35 = vld [vmem:[%s1318_s21 + $0xc8] sm:$0xff]  ;;  %v236_v40 = vld [vmem:[%s1318_s21 + $0xd0] sm:$0xff] }
  0x19   : > { %1190 = vst [vmem:[%s1355_s27 + $0x8] sm:$0xff] %v1038_v43   ;;  %1191 = vst [vmem:[%s1355_s27 + $0x10] sm:$0xff] %v1043_v44   ;;  %v1048_v52 = vpack.c.bf16 %v423_v45, %v422_v38  ;;  %v362_v53 = vadd.f32 %v1323_v1, %v291_v46  ;;  %v294_v54 = vmul.f32 %v1313_v0, %v223_v41  ;;  %v237_v41 = vld [vmem:[%s1318_s21 + $0xd8] sm:$0xff]  ;;  %v238_v46 = vld [vmem:[%s1318_s21 + $0xe0] sm:$0xff] }
  0x1a   : > { %v295_v55 = vmul.f32 %v1313_v0, %v224_v42  ;;  %v424_v57 = vmax.f32 %v360_v47, 0.0  ;;  %v425_v58 = vmax.f32 %v361_v48, 0.0  ;;  %v363_v59 = vadd.f32 %v1323_v1, %v292_v49 }
  0x1b   : > { %v364_v60 = vadd.f32 %v1323_v1, %v293_v50  ;;  %1192 = vst [vmem:[%s1355_s27 + $0x18] sm:$0xff] %v1048_v52   ;;  %v426_v62 = vmax.f32 %v362_v53, 0.0  ;;  %v365_v63 = vadd.f32 %v1323_v1, %v294_v54  ;;  %v296_v2 = vmul.f32 %v1313_v0, %v225_v51  ;;  %v239_v51 = vld [vmem:[%s1318_s21 + $0xe8] sm:$0xff] }
  0x1c   : > { %v366_v3 = vadd.f32 %v1323_v1, %v295_v55  ;;  %v1053_v6 = vpack.c.bf16 %v425_v58, %v424_v57  ;;  %v427_v7 = vmax.f32 %v363_v59, 0.0  ;;  %v297_v9 = vmul.f32 %v1313_v0, %v226_v56  ;;  %v240_v56 = vld [vmem:[%s1318_s21 + $0xf0] sm:$0xff] }
  0x1d   : > { %v428_v8 = vmax.f32 %v364_v60, 0.0  ;;  %v429_v11 = vmax.f32 %v365_v63, 0.0  ;;  %v367_v12 = vadd.f32 %v1323_v1, %v296_v2  ;;  %v298_v14 = vmul.f32 %v1313_v0, %v227_v61  ;;  %v241_v61 = vld [vmem:[%s1318_s21 + $0xf8] sm:$0xff] }
  0x1e   : > { %v430_v13 = vmax.f32 %v366_v3, 0.0  ;;  %1193 = vst [vmem:[%s1355_s27 + $0x20] sm:$0xff] %v1053_v6   ;;  %v1058_v16 = vpack.c.bf16 %v427_v7, %v426_v62  ;;  %v368_v17 = vadd.f32 %v1323_v1, %v297_v9  ;;  %v299_v18 = vmul.f32 %v1313_v0, %v228_v4  ;;  %v242_v4 = vld [vmem:[%s1318_s21 + $0x100] sm:$0xff]  ;;  %v243_v9 = vld [vmem:[%s1318_s21 + $0x108] sm:$0xff] }
  0x1f   : > { %v300_v19 = vmul.f32 %v1313_v0, %v229_v5  ;;  %v1063_v21 = vpack.c.bf16 %v429_v11, %v428_v8  ;;  %v431_v22 = vmax.f32 %v367_v12, 0.0  ;;  %v369_v23 = vadd.f32 %v1323_v1, %v298_v14  ;;  %v244_v14 = vld [vmem:[%s1318_s21 + $0x110] sm:$0xff] }
  0x20   : > { %v301_v24 = vmul.f32 %v1313_v0, %v230_v10  ;;  %1194 = vst [vmem:[%s1355_s27 + $0x28] sm:$0xff] %v1058_v16   ;;  %v432_v26 = vmax.f32 %v368_v17, 0.0  ;;  %v370_v27 = vadd.f32 %v1323_v1, %v299_v18  ;;  %v302_v29 = vmul.f32 %v1313_v0, %v231_v15  ;;  %v245_v15 = vld [vmem:[%s1318_s21 + $0x118] sm:$0xff] }
  0x21   : > { %v371_v28 = vadd.f32 %v1323_v1, %v300_v19  ;;  %1195 = vst [vmem:[%s1355_s27 + $0x30] sm:$0xff] %v1063_v21   ;;  %v1068_v31 = vpack.c.bf16 %v431_v22, %v430_v13  ;;  %v433_v32 = vmax.f32 %v369_v23, 0.0  ;;  %v303_v34 = vmul.f32 %v1313_v0, %v232_v20  ;;  %v246_v20 = vld [vmem:[%s1318_s21 + $0x120] sm:$0xff] }
  0x22   : > { %v372_v33 = vadd.f32 %v1323_v1, %v301_v24  ;;  %v434_v36 = vmax.f32 %v370_v27, 0.0  ;;  %v373_v38 = vadd.f32 %v1323_v1, %v302_v29  ;;  %v304_v39 = vmul.f32 %v1313_v0, %v233_v25  ;;  %v247_v25 = vld [vmem:[%s1318_s21 + $0x128] sm:$0xff] }
  0x23   : > { %v435_v37 = vmax.f32 %v371_v28, 0.0  ;;  %1196 = vst [vmem:[%s1355_s27 + $0x38] sm:$0xff] %v1068_v31   ;;  %v1073_v42 = vpack.c.bf16 %v433_v32, %v432_v26  ;;  %v374_v44 = vadd.f32 %v1323_v1, %v303_v34  ;;  %v305_v45 = vmul.f32 %v1313_v0, %v234_v30  ;;  %v248_v30 = vld [vmem:[%s1318_s21 + $0x130] sm:$0xff] }
  0x24   : > { %v436_v43 = vmax.f32 %v372_v33, 0.0  ;;  %v437_v48 = vmax.f32 %v373_v38, 0.0  ;;  %v375_v49 = vadd.f32 %v1323_v1, %v304_v39  ;;  %v306_v50 = vmul.f32 %v1313_v0, %v235_v35  ;;  %v249_v35 = vld [vmem:[%s1318_s21 + $0x138] sm:$0xff] }
  0x25   : > { %v1078_v47 = vpack.c.bf16 %v435_v37, %v434_v36  ;;  %1197 = vst [vmem:[%s1355_s27 + $0x40] sm:$0xff] %v1073_v42   ;;  %v438_v52 = vmax.f32 %v374_v44, 0.0  ;;  %v376_v53 = vadd.f32 %v1323_v1, %v305_v45  ;;  %v307_v54 = vmul.f32 %v1313_v0, %v236_v40  ;;  %v250_v40 = vld [vmem:[%s1318_s21 + $0x140] sm:$0xff]  ;;  %v251_v45 = vld [vmem:[%s1318_s21 + $0x148] sm:$0xff] }
  0x26   : > { %v308_v55 = vmul.f32 %v1313_v0, %v237_v41  ;;  %v1083_v57 = vpack.c.bf16 %v437_v48, %v436_v43  ;;  %v439_v58 = vmax.f32 %v375_v49, 0.0  ;;  %v377_v59 = vadd.f32 %v1323_v1, %v306_v50  ;;  %v252_v50 = vld [vmem:[%s1318_s21 + $0x150] sm:$0xff] }
  0x27   : > { %1198 = vst [vmem:[%s1355_s27 + $0x48] sm:$0xff] %v1078_v47   ;;  %v309_v60 = vmul.f32 %v1313_v0, %v238_v46  ;;  %v440_v62 = vmax.f32 %v376_v53, 0.0  ;;  %v378_v63 = vadd.f32 %v1323_v1, %v307_v54  ;;  %v310_v3 = vmul.f32 %v1313_v0, %v239_v51  ;;  %v253_v51 = vld [vmem:[%s1318_s21 + $0x158] sm:$0xff] }
  0x28   : > { %v379_v2 = vadd.f32 %v1323_v1, %v308_v55  ;;  %1199 = vst [vmem:[%s1355_s27 + $0x50] sm:$0xff] %v1083_v57   ;;  %v1088_v5 = vpack.c.bf16 %v439_v58, %v438_v52  ;;  %v441_v6 = vmax.f32 %v377_v59, 0.0  ;;  %v311_v8 = vmul.f32 %v1313_v0, %v240_v56  ;;  %v254_v56 = vld [vmem:[%s1318_s21 + $0x160] sm:$0xff] }
  0x29   : > { %v380_v7 = vadd.f32 %v1323_v1, %v309_v60  ;;  %v442_v10 = vmax.f32 %v378_v63, 0.0  ;;  %v381_v12 = vadd.f32 %v1323_v1, %v310_v3  ;;  %v312_v13 = vmul.f32 %v1313_v0, %v241_v61  ;;  %v255_v61 = vld [vmem:[%s1318_s21 + $0x168] sm:$0xff] }
  0x2a   : > { %v443_v11 = vmax.f32 %v379_v2, 0.0  ;;  %1200 = vst [vmem:[%s1355_s27 + $0x58] sm:$0xff] %v1088_v5   ;;  %v1093_v16 = vpack.c.bf16 %v441_v6, %v440_v62  ;;  %v382_v18 = vadd.f32 %v1323_v1, %v311_v8  ;;  %v313_v19 = vmul.f32 %v1313_v0, %v242_v4  ;;  %v256_v4 = vld [vmem:[%s1318_s21 + $0x170] sm:$0xff] }
  0x2b   : > { %v444_v17 = vmax.f32 %v380_v7, 0.0  ;;  %v445_v22 = vmax.f32 %v381_v12, 0.0  ;;  %v383_v23 = vadd.f32 %v1323_v1, %v312_v13  ;;  %v314_v24 = vmul.f32 %v1313_v0, %v243_v9  ;;  %v257_v9 = vld [vmem:[%s1318_s21 + $0x178] sm:$0xff] }
  0x2c   : > { %v1098_v21 = vpack.c.bf16 %v443_v11, %v442_v10  ;;  %1201 = vst [vmem:[%s1355_s27 + $0x60] sm:$0xff] %v1093_v16   ;;  %v446_v26 = vmax.f32 %v382_v18, 0.0  ;;  %v384_v27 = vadd.f32 %v1323_v1, %v313_v19  ;;  %v315_v28 = vmul.f32 %v1313_v0, %v244_v14  ;;  %v258_v14 = vld [vmem:[%s1318_s21 + $0x180] sm:$0xff]  ;;  %v259_v19 = vld [vmem:[%s1318_s21 + $0x188] sm:$0xff] }
  0x2d   : > { %v316_v29 = vmul.f32 %v1313_v0, %v245_v15  ;;  %v1103_v31 = vpack.c.bf16 %v445_v22, %v444_v17  ;;  %v447_v32 = vmax.f32 %v383_v23, 0.0  ;;  %v385_v33 = vadd.f32 %v1323_v1, %v314_v24  ;;  %v260_v24 = vld [vmem:[%s1318_s21 + $0x190] sm:$0xff] }
  0x2e   : > { %1202 = vst [vmem:[%s1355_s27 + $0x68] sm:$0xff] %v1098_v21   ;;  %v317_v34 = vmul.f32 %v1313_v0, %v246_v20  ;;  %v448_v36 = vmax.f32 %v384_v27, 0.0  ;;  %v386_v37 = vadd.f32 %v1323_v1, %v315_v28  ;;  %v318_v39 = vmul.f32 %v1313_v0, %v247_v25  ;;  %v261_v25 = vld [vmem:[%s1318_s21 + $0x198] sm:$0xff] }
  0x2f   : > { %v387_v38 = vadd.f32 %v1323_v1, %v316_v29  ;;  %1203 = vst [vmem:[%s1355_s27 + $0x70] sm:$0xff] %v1103_v31   ;;  %v1108_v41 = vpack.c.bf16 %v447_v32, %v446_v26  ;;  %v449_v42 = vmax.f32 %v385_v33, 0.0  ;;  %v319_v44 = vmul.f32 %v1313_v0, %v248_v30  ;;  %v262_v30 = vld [vmem:[%s1318_s21 + $0x1a0] sm:$0xff] }
  0x30   : > { %v388_v43 = vadd.f32 %v1323_v1, %v317_v34  ;;  %v450_v46 = vmax.f32 %v386_v37, 0.0  ;;  %v389_v48 = vadd.f32 %v1323_v1, %v318_v39  ;;  %v320_v49 = vmul.f32 %v1313_v0, %v249_v35  ;;  %v263_v35 = vld [vmem:[%s1318_s21 + $0x1a8] sm:$0xff] }
  0x31   : > { %v451_v47 = vmax.f32 %v387_v38, 0.0  ;;  %1204 = vst [vmem:[%s1355_s27 + $0x78] sm:$0xff] %v1108_v41   ;;  %v1113_v52 = vpack.c.bf16 %v449_v42, %v448_v36  ;;  %v390_v54 = vadd.f32 %v1323_v1, %v319_v44  ;;  %v321_v55 = vmul.f32 %v1313_v0, %v250_v40  ;;  %v264_v40 = vld [vmem:[%s1318_s21 + $0x1b0] sm:$0xff] }
  0x32   : > { %v452_v53 = vmax.f32 %v388_v43, 0.0  ;;  %v453_v58 = vmax.f32 %v389_v48, 0.0  ;;  %v391_v59 = vadd.f32 %v1323_v1, %v320_v49  ;;  %v322_v60 = vmul.f32 %v1313_v0, %v251_v45  ;;  %v265_v45 = vld [vmem:[%s1318_s21 + $0x1b8] sm:$0xff] }
  0x33   : > { %v1118_v57 = vpack.c.bf16 %v451_v47, %v450_v46  ;;  %1205 = vst [vmem:[%s1355_s27 + $0x80] sm:$0xff] %v1113_v52   ;;  %v454_v62 = vmax.f32 %v390_v54, 0.0  ;;  %v392_v63 = vadd.f32 %v1323_v1, %v321_v55  ;;  %v323_v2 = vmul.f32 %v1313_v0, %v252_v50  ;;  %v266_v50 = vld [vmem:[%s1318_s21 + $0x1c0] sm:$0xff]  ;;  %v267_v55 = vld [vmem:[%s1318_s21 + $0x1c8] sm:$0xff] }
  0x34   : > { %v324_v3 = vmul.f32 %v1313_v0, %v253_v51  ;;  %v1123_v5 = vpack.c.bf16 %v453_v58, %v452_v53  ;;  %v455_v6 = vmax.f32 %v391_v59, 0.0  ;;  %v393_v7 = vadd.f32 %v1323_v1, %v322_v60  ;;  %v268_v60 = vld [vmem:[%s1318_s21 + $0x1d0] sm:$0xff] }
  0x35   : > { %1206 = vst [vmem:[%s1355_s27 + $0x88] sm:$0xff] %v1118_v57   ;;  %v325_v8 = vmul.f32 %v1313_v0, %v254_v56  ;;  %v456_v10 = vmax.f32 %v392_v63, 0.0  ;;  %v394_v11 = vadd.f32 %v1323_v1, %v323_v2  ;;  %v326_v13 = vmul.f32 %v1313_v0, %v255_v61  ;;  %v269_v61 = vld [vmem:[%s1318_s21 + $0x1d8] sm:$0xff] }
  0x36   : > { %v395_v12 = vadd.f32 %v1323_v1, %v324_v3  ;;  %1207 = vst [vmem:[%s1355_s27 + $0x90] sm:$0xff] %v1123_v5   ;;  %v1128_v15 = vpack.c.bf16 %v455_v6, %v454_v62  ;;  %v457_v16 = vmax.f32 %v393_v7, 0.0  ;;  %v327_v18 = vmul.f32 %v1313_v0, %v256_v4  ;;  %v270_v4 = vld [vmem:[%s1318_s21 + $0x1e0] sm:$0xff] }
  0x37   : > { %v396_v17 = vadd.f32 %v1323_v1, %v325_v8  ;;  %v458_v20 = vmax.f32 %v394_v11, 0.0  ;;  %v397_v22 = vadd.f32 %v1323_v1, %v326_v13  ;;  %v328_v23 = vmul.f32 %v1313_v0, %v257_v9  ;;  %v271_v9 = vld [vmem:[%s1318_s21 + $0x1e8] sm:$0xff] }
  0x38   : > { %v459_v21 = vmax.f32 %v395_v12, 0.0  ;;  %1208 = vst [vmem:[%s1355_s27 + $0x98] sm:$0xff] %v1128_v15   ;;  %v1133_v26 = vpack.c.bf16 %v457_v16, %v456_v10  ;;  %v398_v28 = vadd.f32 %v1323_v1, %v327_v18  ;;  %v329_v29 = vmul.f32 %v1313_v0, %v258_v14  ;;  %v272_v14 = vld [vmem:[%s1318_s21 + $0x1f0] sm:$0xff] }
  0x39   : > { %v460_v27 = vmax.f32 %v396_v17, 0.0  ;;  %v461_v32 = vmax.f32 %v397_v22, 0.0  ;;  %v399_v33 = vadd.f32 %v1323_v1, %v328_v23  ;;  %v330_v34 = vmul.f32 %v1313_v0, %v259_v19  ;;  %v273_v19 = vld [vmem:[%s1318_s21 + $0x1f8] sm:$0xff] }
  0x3a   : > { %v1138_v31 = vpack.c.bf16 %v459_v21, %v458_v20  ;;  %1209 = vst [vmem:[%s1355_s27 + $0xa0] sm:$0xff] %v1133_v26   ;;  %v462_v36 = vmax.f32 %v398_v28, 0.0  ;;  %v400_v37 = vadd.f32 %v1323_v1, %v329_v29  ;;  %v331_v38 = vmul.f32 %v1313_v0, %v260_v24 }
  0x3b   : > { %v332_v39 = vmul.f32 %v1313_v0, %v261_v25  ;;  %v1143_v41 = vpack.c.bf16 %v461_v32, %v460_v27  ;;  %v463_v42 = vmax.f32 %v399_v33, 0.0  ;;  %v401_v43 = vadd.f32 %v1323_v1, %v330_v34 }
  0x3c   : > { %1210 = vst [vmem:[%s1355_s27 + $0xa8] sm:$0xff] %v1138_v31   ;;  %v333_v44 = vmul.f32 %v1313_v0, %v262_v30  ;;  %v464_v46 = vmax.f32 %v400_v37, 0.0  ;;  %v402_v47 = vadd.f32 %v1323_v1, %v331_v38  ;;  %v334_v49 = vmul.f32 %v1313_v0, %v263_v35 }
  0x3d   : > { %v403_v48 = vadd.f32 %v1323_v1, %v332_v39  ;;  %1211 = vst [vmem:[%s1355_s27 + $0xb0] sm:$0xff] %v1143_v41   ;;  %v1148_v51 = vpack.c.bf16 %v463_v42, %v462_v36  ;;  %v465_v52 = vmax.f32 %v401_v43, 0.0  ;;  %v335_v54 = vmul.f32 %v1313_v0, %v264_v40 }
  0x3e   : > { %v404_v53 = vadd.f32 %v1323_v1, %v333_v44  ;;  %v466_v56 = vmax.f32 %v402_v47, 0.0  ;;  %v405_v58 = vadd.f32 %v1323_v1, %v334_v49  ;;  %v336_v59 = vmul.f32 %v1313_v0, %v265_v45 }
  0x3f   : > { %v467_v57 = vmax.f32 %v403_v48, 0.0  ;;  %1212 = vst [vmem:[%s1355_s27 + $0xb8] sm:$0xff] %v1148_v51   ;;  %v1153_v62 = vpack.c.bf16 %v465_v52, %v464_v46  ;;  %v406_v2 = vadd.f32 %v1323_v1, %v335_v54  ;;  %v337_v3 = vmul.f32 %v1313_v0, %v266_v50 }
  0x40   : > { %v468_v63 = vmax.f32 %v404_v53, 0.0  ;;  %v469_v6 = vmax.f32 %v405_v58, 0.0  ;;  %v407_v7 = vadd.f32 %v1323_v1, %v336_v59  ;;  %v338_v8 = vmul.f32 %v1313_v0, %v267_v55 }
  0x41   : > { %v1158_v5 = vpack.c.bf16 %v467_v57, %v466_v56  ;;  %1213 = vst [vmem:[%s1355_s27 + $0xc0] sm:$0xff] %v1153_v62   ;;  %v470_v10 = vmax.f32 %v406_v2, 0.0  ;;  %v408_v11 = vadd.f32 %v1323_v1, %v337_v3  ;;  %v339_v12 = vmul.f32 %v1313_v0, %v268_v60 }
  0x42   : > { %v340_v13 = vmul.f32 %v1313_v0, %v269_v61  ;;  %v1163_v15 = vpack.c.bf16 %v469_v6, %v468_v63  ;;  %v471_v16 = vmax.f32 %v407_v7, 0.0  ;;  %v409_v17 = vadd.f32 %v1323_v1, %v338_v8 }
  0x43   : > { %1214 = vst [vmem:[%s1355_s27 + $0xc8] sm:$0xff] %v1158_v5   ;;  %v341_v18 = vmul.f32 %v1313_v0, %v270_v4  ;;  %v472_v20 = vmax.f32 %v408_v11, 0.0  ;;  %v410_v21 = vadd.f32 %v1323_v1, %v339_v12  ;;  %v342_v23 = vmul.f32 %v1313_v0, %v271_v9 }
  0x44   : > { %v411_v22 = vadd.f32 %v1323_v1, %v340_v13  ;;  %1215 = vst [vmem:[%s1355_s27 + $0xd0] sm:$0xff] %v1163_v15   ;;  %v1168_v24 = vpack.c.bf16 %v471_v16, %v470_v10  ;;  %v473_v25 = vmax.f32 %v409_v17, 0.0  ;;  %v343_v27 = vmul.f32 %v1313_v0, %v272_v14 }
  0x45   : > { %v412_v26 = vadd.f32 %v1323_v1, %v341_v18  ;;  %v474_v28 = vmax.f32 %v410_v21, 0.0  ;;  %v413_v30 = vadd.f32 %v1323_v1, %v342_v23  ;;  %v344_v31 = vmul.f32 %v1313_v0, %v273_v19 }
  0x46   : > { %v475_v29 = vmax.f32 %v411_v22, 0.0  ;;  %1216 = vst [vmem:[%s1355_s27 + $0xd8] sm:$0xff] %v1168_v24   ;;  %v1173_v32 = vpack.c.bf16 %v473_v25, %v472_v20  ;;  %v414_v34 = vadd.f32 %v1323_v1, %v343_v27 }
  0x47   : > { %v476_v33 = vmax.f32 %v412_v26, 0.0  ;;  %v477_v36 = vmax.f32 %v413_v30, 0.0  ;;  %v415_v37 = vadd.f32 %v1323_v1, %v344_v31 }
  0x48   : > { %v1178_v35 = vpack.c.bf16 %v475_v29, %v474_v28  ;;  %1217 = vst [vmem:[%s1355_s27 + $0xe0] sm:$0xff] %v1173_v32   ;;  %v478_v38 = vmax.f32 %v414_v34, 0.0 }
  0x49   : > { %v1183_v39 = vpack.c.bf16 %v477_v36, %v476_v33  ;;  %v479_v40 = vmax.f32 %v415_v37, 0.0 }
  0x4a   : > { %1218 = vst [vmem:[%s1355_s27 + $0xe8] sm:$0xff] %v1178_v35  }
  0x4b   : > { %1219 = vst [vmem:[%s1355_s27 + $0xf0] sm:$0xff] %v1183_v39   ;;  %v1188_v41 = vpack.c.bf16 %v479_v40, %v478_v38 }
  0x4d   : > { %1220 = vst [vmem:[%s1355_s27 + $0xf8] sm:$0xff] %v1188_v41  }
  0x4e PF: > { %s13_s14 = sadd.s32 1, %s1267_s14   ;;  %s1568_s12 = smov %s1263_s13 }
  0x4f   : > { %p10_p5 = scmp.ge.s32.totalorder %s13_s14, 6   ;;  %s1569_s13 = smov %s1571_s15 }
  0x51   :  { %12 = sbr.rel (!%p10_p5) target bundleno = 2 (0x2), region = 62 }

// kernel: _lambda_.17
= control target key start
LH: loop header
LB: loop body
LE: loop exit
PB: predicated region body
PF: predicated region fallthrough
CT: control target
= control target key end

     0   :  { %s3520_s12 = smov 0   ;;  %s3522_s13 = smov 0   ;;  %s4225_s0 = inlined_call_operand.vmem [shape: bf16[4,2048,128], index: 0, kind: input, shape index: {}]   ;;  %s4226_s1 = inlined_call_operand.vmem [shape: bf16[4,128,128], index: 1, kind: input, shape index: {}]   ;;  %s4227_s2 = inlined_call_operand.vmem [shape: f32[1,128], index: 2, kind: input, shape index: {}]   ;;  %s4228_s3 = inlined_call_operand.vmem [shape: f32[4,2048,128], index: 3, kind: output, shape index: {}]  }
   0x1   :  { %s3524_s14 = smov 0  }
   0x2 LB: > { %s25_s15 = sadd.s32 1, %s3494_s13  ;;  %p2742_p0 = scmp.ge.s32.totalorder %s3498_s14, 1  ;;  %s3498_s14 = sphi %s3524_s14, %s13_s14   ;;  %s3494_s13 = sphi %s3522_s13, %s4230_s13   ;;  %s3490_s12 = sphi %s3520_s12, %s4229_s12  }
   0x3   : > { %p27_p1 = scmp.ge.s32.totalorder %s25_s15, 4  ;;  %p168_p2 = scmp.lt.s32.totalorder %s3498_s14, 5 }
   0x5   : > { %s4232_s15 = smov (%p27_p1, %s25_s15), 0  ;;  %p169_p3 = pnand %p2742_p0, %p168_p2 }
   0x6   : > { %p206_p4 = scmp.lt.s32.totalorder (!%p169_p3), %s3490_s12, 3 }
   0x7   : > { %172 = sbr.rel (%p169_p3) target bundleno = 498 (0x1f2), region = 32 }
   0xc   : > { %s4234_s12 = smov (!%p206_p4, %s3490_s12), 3 }
   0xd   : > { %s2889_s16 = sshll.u32 %s4234_s12, 6  ;;  %s2888_s20 = sshll.u32 %s4234_s12, 10 }
   0xe   : > { %s3544_s19 = scalar_lea.vmem %s4226_s1, %s2889_s16  ;;  %s3553_s23 = scalar_lea.vmem %s4225_s0, %s2888_s20 }
   0xf   : > { %v3339_v0 = vld [vmem:[%s3544_s19 + $0x38] sm:$0xff]   ;;  %v3340_v1 = vld [vmem:[%s3544_s19 + $0x30] sm:$0xff]   ;;  %v3341_v2 = vld [vmem:[%s3544_s19 + $0x28] sm:$0xff]   ;;  %s2890_s24 = sshll.u32 %s4234_s12, 11 }
  0x10   : > { %3027 = vmatprep.subr.bf16.mxu0 %v3339_v0  ;;  %3299 = vmatprep.subr.bf16.mxu1 %v3339_v0  ;;  %v3342_v3 = vld [vmem:[%s3544_s19 + $0x20] sm:$0xff]   ;;  %v3343_v6 = vld [vmem:[%s3544_s19 + $0x18] sm:$0xff]   ;;  %v3344_v7 = vld [vmem:[%s3544_s19 + $0x10] sm:$0xff]   ;;  %s3671_s29 = scalar_lea.vmem %s4228_s3, %s2890_s24 }
  0x11   : > { %3028 = vmatpush3.bf16.msra.mxu0 %v3339_v0  ;;  %3307 = vmatpush3.bf16.msra.mxu1 %v3339_v0  ;;  %v3347_v4 = vld [vmem:[%s3553_s23] sm:$0xff]   ;;  %v3345_v8 = vld [vmem:[%s3544_s19 + $0x8] sm:$0xff]   ;;  %v3351_v12 = vld [vmem:[%s3553_s23 + $0x10] sm:$0xff]  }
  0x12   : > { %3029 = vmatprep.subr.bf16.mxu0 %v3340_v1  ;;  %3300 = vmatprep.subr.bf16.mxu1 %v3340_v1  ;;  %v3348_v5 = vld [vmem:[%s3553_s23 + $0x200] sm:$0xff]   ;;  %v3349_v10 = vld [vmem:[%s3553_s23 + $0x8] sm:$0xff]   ;;  %v3352_v13 = vld [vmem:[%s3553_s23 + $0x210] sm:$0xff]  }
  0x13   : > { %3043 = vmatprep.mubr.bf16.mxu0 %v3347_v4  ;;  %3171 = vmatprep.mubr.bf16.mxu1 %v3348_v5  ;;  %v3346_v9 = vld [vmem:[%s3544_s19] sm:$0xff]   ;;  %v3350_v11 = vld [vmem:[%s3553_s23 + $0x208] sm:$0xff]   ;;  %v3353_v14 = vld [vmem:[%s3553_s23 + $0x18] sm:$0xff]  }
  0x14   : > { %v3354_v15 = vld [vmem:[%s3553_s23 + $0x218] sm:$0xff]   ;;  %v3355_v16 = vld [vmem:[%s3553_s23 + $0x20] sm:$0xff]   ;;  %v3357_v18 = vld [vmem:[%s3553_s23 + $0x28] sm:$0xff]  }
  0x15   : > { %3030 = vmatpush3.bf16.msra.mxu0 %v3340_v1  ;;  %3308 = vmatpush3.bf16.msra.mxu1 %v3340_v1  ;;  %v3356_v17 = vld [vmem:[%s3553_s23 + $0x220] sm:$0xff]   ;;  %v3358_v19 = vld [vmem:[%s3553_s23 + $0x228] sm:$0xff]   ;;  %v3359_v20 = vld [vmem:[%s3553_s23 + $0x30] sm:$0xff]  }
  0x16   : > { %3031 = vmatprep.subr.bf16.mxu0 %v3341_v2  ;;  %3301 = vmatprep.subr.bf16.mxu1 %v3341_v2  ;;  %v3360_v21 = vld [vmem:[%s3553_s23 + $0x230] sm:$0xff]   ;;  %v3361_v22 = vld [vmem:[%s3553_s23 + $0x38] sm:$0xff]   ;;  %v3363_v24 = vld [vmem:[%s3553_s23 + $0x40] sm:$0xff]  }
  0x17   : > { %v3362_v23 = vld [vmem:[%s3553_s23 + $0x238] sm:$0xff]   ;;  %v3364_v25 = vld [vmem:[%s3553_s23 + $0x240] sm:$0xff]   ;;  %v3365_v26 = vld [vmem:[%s3553_s23 + $0x48] sm:$0xff]  }
  0x18   : > { %v3366_v27 = vld [vmem:[%s3553_s23 + $0x248] sm:$0xff]   ;;  %v3367_v28 = vld [vmem:[%s3553_s23 + $0x50] sm:$0xff]   ;;  %v3369_v30 = vld [vmem:[%s3553_s23 + $0x58] sm:$0xff]  }
  0x19   : > { %3032 = vmatpush3.bf16.msra.mxu0 %v3341_v2  ;;  %3309 = vmatpush3.bf16.msra.mxu1 %v3341_v2  ;;  %v3368_v29 = vld [vmem:[%s3553_s23 + $0x250] sm:$0xff]   ;;  %v3370_v31 = vld [vmem:[%s3553_s23 + $0x258] sm:$0xff]   ;;  %v3371_v32 = vld [vmem:[%s3553_s23 + $0x60] sm:$0xff]  }
  0x1a   : > { %3033 = vmatprep.subr.bf16.mxu0 %v3342_v3  ;;  %3302 = vmatprep.subr.bf16.mxu1 %v3342_v3  ;;  %v3372_v33 = vld [vmem:[%s3553_s23 + $0x260] sm:$0xff]   ;;  %v3373_v34 = vld [vmem:[%s3553_s23 + $0x68] sm:$0xff]   ;;  %v3375_v36 = vld [vmem:[%s3553_s23 + $0x70] sm:$0xff]  }
  0x1b   : > { %v3374_v35 = vld [vmem:[%s3553_s23 + $0x268] sm:$0xff]   ;;  %v3376_v37 = vld [vmem:[%s3553_s23 + $0x270] sm:$0xff]   ;;  %v3377_v38 = vld [vmem:[%s3553_s23 + $0x78] sm:$0xff]  }
  0x1c   : > { %v3378_v39 = vld [vmem:[%s3553_s23 + $0x278] sm:$0xff]   ;;  %v3379_v40 = vld [vmem:[%s3553_s23 + $0x80] sm:$0xff]   ;;  %v3381_v42 = vld [vmem:[%s3553_s23 + $0x88] sm:$0xff]  }
  0x1d   : > { %3034 = vmatpush3.bf16.msra.mxu0 %v3342_v3  ;;  %3310 = vmatpush3.bf16.msra.mxu1 %v3342_v3  ;;  %v3380_v41 = vld [vmem:[%s3553_s23 + $0x280] sm:$0xff]   ;;  %v3382_v43 = vld [vmem:[%s3553_s23 + $0x288] sm:$0xff]   ;;  %v3383_v44 = vld [vmem:[%s3553_s23 + $0x90] sm:$0xff]  }
  0x1e   : > { %3035 = vmatprep.subr.bf16.mxu0 %v3343_v6  ;;  %3303 = vmatprep.subr.bf16.mxu1 %v3343_v6  ;;  %v3384_v45 = vld [vmem:[%s3553_s23 + $0x290] sm:$0xff]   ;;  %v3385_v46 = vld [vmem:[%s3553_s23 + $0x98] sm:$0xff]   ;;  %v3387_v48 = vld [vmem:[%s3553_s23 + $0xa0] sm:$0xff]  }
  0x1f   : > { %v3386_v47 = vld [vmem:[%s3553_s23 + $0x298] sm:$0xff]   ;;  %v3388_v49 = vld [vmem:[%s3553_s23 + $0x2a0] sm:$0xff]   ;;  %v3389_v50 = vld [vmem:[%s3553_s23 + $0xa8] sm:$0xff]  }
  0x20   : > { %v3390_v51 = vld [vmem:[%s3553_s23 + $0x2a8] sm:$0xff]   ;;  %v3391_v52 = vld [vmem:[%s3553_s23 + $0xb0] sm:$0xff]   ;;  %v3393_v54 = vld [vmem:[%s3553_s23 + $0xb8] sm:$0xff]  }
  0x21   : > { %3036 = vmatpush3.bf16.msra.mxu0 %v3343_v6  ;;  %3311 = vmatpush3.bf16.msra.mxu1 %v3343_v6  ;;  %v3392_v53 = vld [vmem:[%s3553_s23 + $0x2b0] sm:$0xff]   ;;  %v3394_v55 = vld [vmem:[%s3553_s23 + $0x2b8] sm:$0xff]   ;;  %v3395_v56 = vld [vmem:[%s3553_s23 + $0xc0] sm:$0xff]  }
  0x22   : > { %3037 = vmatprep.subr.bf16.mxu0 %v3344_v7  ;;  %3304 = vmatprep.subr.bf16.mxu1 %v3344_v7  ;;  %v3396_v57 = vld [vmem:[%s3553_s23 + $0x2c0] sm:$0xff]   ;;  %v3397_v58 = vld [vmem:[%s3553_s23 + $0xc8] sm:$0xff]   ;;  %v3399_v60 = vld [vmem:[%s3553_s23 + $0xd0] sm:$0xff]  }
  0x23   : > { %v3398_v59 = vld [vmem:[%s3553_s23 + $0x2c8] sm:$0xff]   ;;  %v3400_v61 = vld [vmem:[%s3553_s23 + $0x2d0] sm:$0xff]   ;;  %v3401_v62 = vld [vmem:[%s3553_s23 + $0xd8] sm:$0xff]  }
  0x24   : > { %v3402_v63 = vld [vmem:[%s3553_s23 + $0x2d8] sm:$0xff]   ;;  %v3403_v0 = vld [vmem:[%s3553_s23 + $0xe0] sm:$0xff]   ;;  %v3405_v2 = vld [vmem:[%s3553_s23 + $0xe8] sm:$0xff]  }
  0x25   : > { %3038 = vmatpush3.bf16.msra.mxu0 %v3344_v7  ;;  %3312 = vmatpush3.bf16.msra.mxu1 %v3344_v7  ;;  %v3404_v1 = vld [vmem:[%s3553_s23 + $0x2e0] sm:$0xff]   ;;  %v3406_v3 = vld [vmem:[%s3553_s23 + $0x2e8] sm:$0xff]   ;;  %v3407_v4 = vld [vmem:[%s3553_s23 + $0xf0] sm:$0xff]  }
  0x26   : > { %3039 = vmatprep.subr.bf16.mxu0 %v3345_v8  ;;  %3305 = vmatprep.subr.bf16.mxu1 %v3345_v8  ;;  %v3408_v5 = vld [vmem:[%s3553_s23 + $0x2f0] sm:$0xff]   ;;  %v3409_v6 = vld [vmem:[%s3553_s23 + $0xf8] sm:$0xff]  }
  0x27   : > { %v3410_v7 = vld [vmem:[%s3553_s23 + $0x2f8] sm:$0xff]  }
  0x29   : > { %3040 = vmatpush3.bf16.msra.mxu0 %v3345_v8  ;;  %3313 = vmatpush3.bf16.msra.mxu1 %v3345_v8  ;;  %v3411_v8 = vld [vmem:[%s3553_s23 + $0x100] sm:$0xff]  }
  0x2a   : > { %3041 = vmatprep.subr.bf16.mxu0 %v3346_v9  ;;  %3306 = vmatprep.subr.bf16.mxu1 %v3346_v9 }
  0x2d   : > { %3042 = vmatpush3.bf16.msra.mxu0 %v3346_v9  ;;  %3314 = vmatpush3.bf16.msra.mxu1 %v3346_v9  ;;  %v3412_v9 = vld [vmem:[%s3553_s23 + $0x300] sm:$0xff]  }
  0x30   : > { %3044 = vmatmul.mubr.bf16.vlgmr.msra.gmra.mxu0 %v3349_v10  ;;  %3172 = vmatmul.mubr.bf16.vlgmr.msra.gmra.mxu1 %v3350_v11  ;;  %v3413_v10 = vld [vmem:[%s3553_s23 + $0x108] sm:$0xff]  }
  0x31   : > { %3047 = vmatprep.mubr.bf16.mxu0 %v3351_v12  ;;  %3175 = vmatprep.mubr.bf16.mxu1 %v3352_v13  ;;  %v3414_v11 = vld [vmem:[%s3553_s23 + $0x308] sm:$0xff]   ;;  %v3415_v12 = vld [vmem:[%s3553_s23 + $0x110] sm:$0xff]  }
  0x32   : > { %v3416_v13 = vld [vmem:[%s3553_s23 + $0x310] sm:$0xff]  }
  0x38   : > { %3048 = vmatmul.mubr.bf16.gmra.mxu0 %v3353_v14  ;;  %3176 = vmatmul.mubr.bf16.gmra.mxu1 %v3354_v15  ;;  %v3417_v14 = vld [vmem:[%s3553_s23 + $0x118] sm:$0xff]  }
  0x39   : > { %3051 = vmatprep.mubr.bf16.mxu0 %v3355_v16  ;;  %3179 = vmatprep.mubr.bf16.mxu1 %v3356_v17  ;;  %v3418_v15 = vld [vmem:[%s3553_s23 + $0x318] sm:$0xff]   ;;  %v3419_v16 = vld [vmem:[%s3553_s23 + $0x120] sm:$0xff]  }
  0x3a   : > { %v3420_v17 = vld [vmem:[%s3553_s23 + $0x320] sm:$0xff]  }
  0x40   : > { %3052 = vmatmul.mubr.bf16.gmra.mxu0 %v3357_v18  ;;  %3180 = vmatmul.mubr.bf16.gmra.mxu1 %v3358_v19  ;;  %v3421_v18 = vld [vmem:[%s3553_s23 + $0x128] sm:$0xff]  }
  0x41   : > { %3055 = vmatprep.mubr.bf16.mxu0 %v3359_v20  ;;  %3183 = vmatprep.mubr.bf16.mxu1 %v3360_v21  ;;  %v3422_v19 = vld [vmem:[%s3553_s23 + $0x328] sm:$0xff]   ;;  %v3423_v20 = vld [vmem:[%s3553_s23 + $0x130] sm:$0xff]  }
  0x42   : > { %v3424_v21 = vld [vmem:[%s3553_s23 + $0x330] sm:$0xff]  }
  0x48   : > { %3056 = vmatmul.mubr.bf16.gmra.mxu0 %v3361_v22  ;;  %3184 = vmatmul.mubr.bf16.gmra.mxu1 %v3362_v23  ;;  %v3425_v22 = vld [vmem:[%s3553_s23 + $0x138] sm:$0xff]  }
  0x49   : > { %3059 = vmatprep.mubr.bf16.mxu0 %v3363_v24  ;;  %3187 = vmatprep.mubr.bf16.mxu1 %v3364_v25  ;;  %v3426_v23 = vld [vmem:[%s3553_s23 + $0x338] sm:$0xff]   ;;  %v3427_v24 = vld [vmem:[%s3553_s23 + $0x140] sm:$0xff]  }
  0x4a   : > { %v3428_v25 = vld [vmem:[%s3553_s23 + $0x340] sm:$0xff]  }
  0x50   : > { %3060 = vmatmul.mubr.bf16.gmra.mxu0 %v3365_v26  ;;  %3188 = vmatmul.mubr.bf16.gmra.mxu1 %v3366_v27  ;;  %v3429_v26 = vld [vmem:[%s3553_s23 + $0x148] sm:$0xff]  }
  0x51   : > { %3063 = vmatprep.mubr.bf16.mxu0 %v3367_v28  ;;  %3191 = vmatprep.mubr.bf16.mxu1 %v3368_v29  ;;  %v3430_v27 = vld [vmem:[%s3553_s23 + $0x348] sm:$0xff]   ;;  %v3431_v28 = vld [vmem:[%s3553_s23 + $0x150] sm:$0xff]  }
  0x52   : > { %v3432_v29 = vld [vmem:[%s3553_s23 + $0x350] sm:$0xff]  }
  0x58   : > { %3064 = vmatmul.mubr.bf16.gmra.mxu0 %v3369_v30  ;;  %3192 = vmatmul.mubr.bf16.gmra.mxu1 %v3370_v31  ;;  %v3433_v30 = vld [vmem:[%s3553_s23 + $0x158] sm:$0xff]  }
  0x59   : > { %3067 = vmatprep.mubr.bf16.mxu0 %v3371_v32  ;;  %3195 = vmatprep.mubr.bf16.mxu1 %v3372_v33  ;;  %v3434_v31 = vld [vmem:[%s3553_s23 + $0x358] sm:$0xff]   ;;  %v3435_v32 = vld [vmem:[%s3553_s23 + $0x160] sm:$0xff]  }
  0x5a   : > { %v3436_v33 = vld [vmem:[%s3553_s23 + $0x360] sm:$0xff]  }
  0x60   : > { %3068 = vmatmul.mubr.bf16.gmra.mxu0 %v3373_v34  ;;  %3196 = vmatmul.mubr.bf16.gmra.mxu1 %v3374_v35  ;;  %v3437_v34 = vld [vmem:[%s3553_s23 + $0x168] sm:$0xff]  }
  0x61   : > { %3071 = vmatprep.mubr.bf16.mxu0 %v3375_v36  ;;  %3199 = vmatprep.mubr.bf16.mxu1 %v3376_v37  ;;  %v3438_v35 = vld [vmem:[%s3553_s23 + $0x368] sm:$0xff]   ;;  %v3439_v36 = vld [vmem:[%s3553_s23 + $0x170] sm:$0xff]  }
  0x62   : > { %v3440_v37 = vld [vmem:[%s3553_s23 + $0x370] sm:$0xff]  }
  0x68   : > { %3072 = vmatmul.mubr.bf16.gmra.mxu0 %v3377_v38  ;;  %3200 = vmatmul.mubr.bf16.gmra.mxu1 %v3378_v39  ;;  %v3441_v38 = vld [vmem:[%s3553_s23 + $0x178] sm:$0xff]  }
  0x69   : > { %3075 = vmatprep.mubr.bf16.mxu0 %v3379_v40  ;;  %3203 = vmatprep.mubr.bf16.mxu1 %v3380_v41  ;;  %v3442_v39 = vld [vmem:[%s3553_s23 + $0x378] sm:$0xff]   ;;  %v3443_v40 = vld [vmem:[%s3553_s23 + $0x180] sm:$0xff]  }
  0x6a   : > { %v3444_v41 = vld [vmem:[%s3553_s23 + $0x380] sm:$0xff]  }
  0x70   : > { %3076 = vmatmul.mubr.bf16.gmra.mxu0 %v3381_v42  ;;  %3204 = vmatmul.mubr.bf16.gmra.mxu1 %v3382_v43  ;;  %v3445_v42 = vld [vmem:[%s3553_s23 + $0x188] sm:$0xff]  }
  0x71   : > { %3079 = vmatprep.mubr.bf16.mxu0 %v3383_v44  ;;  %3207 = vmatprep.mubr.bf16.mxu1 %v3384_v45  ;;  %v3446_v43 = vld [vmem:[%s3553_s23 + $0x388] sm:$0xff]   ;;  %v3447_v44 = vld [vmem:[%s3553_s23 + $0x190] sm:$0xff]  }
  0x72   : > { %v3448_v45 = vld [vmem:[%s3553_s23 + $0x390] sm:$0xff]  }
  0x78   : > { %3080 = vmatmul.mubr.bf16.gmra.mxu0 %v3385_v46  ;;  %3208 = vmatmul.mubr.bf16.gmra.mxu1 %v3386_v47  ;;  %v3666_v46 = vld [vmem:[%s4227_s2] ss:$0 sm:$0xff] }
  0x79   : > { %3083 = vmatprep.mubr.bf16.mxu0 %v3387_v48  ;;  %3211 = vmatprep.mubr.bf16.mxu1 %v3388_v49 }
  0x80   : > { %3084 = vmatmul.mubr.bf16.gmra.mxu0 %v3389_v50  ;;  %3212 = vmatmul.mubr.bf16.gmra.mxu1 %v3390_v51 }
  0x81   : > { %3087 = vmatprep.mubr.bf16.mxu0 %v3391_v52  ;;  %3215 = vmatprep.mubr.bf16.mxu1 %v3392_v53 }
  0x88   : > { %3088 = vmatmul.mubr.bf16.gmra.mxu0 %v3393_v54  ;;  %3216 = vmatmul.mubr.bf16.gmra.mxu1 %v3394_v55 }
  0x89   : > { %3091 = vmatprep.mubr.bf16.mxu0 %v3395_v56  ;;  %3219 = vmatprep.mubr.bf16.mxu1 %v3396_v57  ;;  %v3449_v57 = vld [vmem:[%s3553_s23 + $0x198] sm:$0xff]  }
  0x90   : > { %3092 = vmatmul.mubr.bf16.gmra.mxu0 %v3397_v58  ;;  %3220 = vmatmul.mubr.bf16.gmra.mxu1 %v3398_v59  ;;  %v3450_v58 = vld [vmem:[%s3553_s23 + $0x398] sm:$0xff]  }
  0x91   : > { %3095 = vmatprep.mubr.bf16.mxu0 %v3399_v60  ;;  %3223 = vmatprep.mubr.bf16.mxu1 %v3400_v61  ;;  %v3451_v61 = vld [vmem:[%s3553_s23 + $0x1a0] sm:$0xff]  }
  0x98   : > { %3096 = vmatmul.mubr.bf16.gmra.mxu0 %v3401_v62  ;;  %3224 = vmatmul.mubr.bf16.gmra.mxu1 %v3402_v63  ;;  %v3452_v62 = vld [vmem:[%s3553_s23 + $0x3a0] sm:$0xff]  }
  0x99   : > { %3099 = vmatprep.mubr.bf16.mxu0 %v3403_v0  ;;  %3227 = vmatprep.mubr.bf16.mxu1 %v3404_v1 }
  0xa0   : > { %3100 = vmatmul.mubr.bf16.gmra.mxu0 %v3405_v2  ;;  %3228 = vmatmul.mubr.bf16.gmra.mxu1 %v3406_v3 }
  0xa1   : > { %3103 = vmatprep.mubr.bf16.mxu0 %v3407_v4  ;;  %3231 = vmatprep.mubr.bf16.mxu1 %v3408_v5 }
  0xa8   : > { %3104 = vmatmul.mubr.bf16.gmra.mxu0 %v3409_v6  ;;  %3232 = vmatmul.mubr.bf16.gmra.mxu1 %v3410_v7 }
  0xa9   : > { %3107 = vmatprep.mubr.bf16.mxu0 %v3411_v8  ;;  %3235 = vmatprep.mubr.bf16.mxu1 %v3412_v9 }
  0xb0   : > { %3108 = vmatmul.mubr.bf16.gmra.mxu0 %v3413_v10  ;;  %3236 = vmatmul.mubr.bf16.gmra.mxu1 %v3414_v11 }
  0xb1   : > { %3111 = vmatprep.mubr.bf16.mxu0 %v3415_v12  ;;  %3239 = vmatprep.mubr.bf16.mxu1 %v3416_v13  ;;  %v3453_v13 = vld [vmem:[%s3553_s23 + $0x1a8] sm:$0xff]  }
  0xb8   : > { %3112 = vmatmul.mubr.bf16.gmra.mxu0 %v3417_v14  ;;  %3240 = vmatmul.mubr.bf16.gmra.mxu1 %v3418_v15  ;;  %v3454_v14 = vld [vmem:[%s3553_s23 + $0x3a8] sm:$0xff]  }
  0xb9   : > { %3115 = vmatprep.mubr.bf16.mxu0 %v3419_v16  ;;  %3243 = vmatprep.mubr.bf16.mxu1 %v3420_v17  ;;  %v3455_v17 = vld [vmem:[%s3553_s23 + $0x1b0] sm:$0xff]  }
  0xc0   : > { %3116 = vmatmul.mubr.bf16.gmra.mxu0 %v3421_v18  ;;  %3244 = vmatmul.mubr.bf16.gmra.mxu1 %v3422_v19  ;;  %v3456_v18 = vld [vmem:[%s3553_s23 + $0x3b0] sm:$0xff]  }
  0xc1   : > { %3119 = vmatprep.mubr.bf16.mxu0 %v3423_v20  ;;  %3247 = vmatprep.mubr.bf16.mxu1 %v3424_v21 }
  0xc8   : > { %3120 = vmatmul.mubr.bf16.gmra.mxu0 %v3425_v22  ;;  %3248 = vmatmul.mubr.bf16.gmra.mxu1 %v3426_v23 }
  0xc9   : > { %3123 = vmatprep.mubr.bf16.mxu0 %v3427_v24  ;;  %3251 = vmatprep.mubr.bf16.mxu1 %v3428_v25 }
  0xd0   : > { %3124 = vmatmul.mubr.bf16.gmra.mxu0 %v3429_v26  ;;  %3252 = vmatmul.mubr.bf16.gmra.mxu1 %v3430_v27 }
  0xd1   : > { %3127 = vmatprep.mubr.bf16.mxu0 %v3431_v28  ;;  %3255 = vmatprep.mubr.bf16.mxu1 %v3432_v29 }
  0xd8   : > { %3128 = vmatmul.mubr.bf16.gmra.mxu0 %v3433_v30  ;;  %3256 = vmatmul.mubr.bf16.gmra.mxu1 %v3434_v31 }
  0xd9   : > { %3131 = vmatprep.mubr.bf16.mxu0 %v3435_v32  ;;  %3259 = vmatprep.mubr.bf16.mxu1 %v3436_v33  ;;  %v3457_v33 = vld [vmem:[%s3553_s23 + $0x1b8] sm:$0xff]  }
  0xe0   : > { %3132 = vmatmul.mubr.bf16.gmra.mxu0 %v3437_v34  ;;  %3260 = vmatmul.mubr.bf16.gmra.mxu1 %v3438_v35  ;;  %v3458_v34 = vld [vmem:[%s3553_s23 + $0x3b8] sm:$0xff]  }
  0xe1   : > { %3135 = vmatprep.mubr.bf16.mxu0 %v3439_v36  ;;  %3263 = vmatprep.mubr.bf16.mxu1 %v3440_v37  ;;  %v3459_v37 = vld [vmem:[%s3553_s23 + $0x1c0] sm:$0xff]  }
  0xe8   : > { %3136 = vmatmul.mubr.bf16.gmra.mxu0 %v3441_v38  ;;  %3264 = vmatmul.mubr.bf16.gmra.mxu1 %v3442_v39  ;;  %v3460_v38 = vld [vmem:[%s3553_s23 + $0x3c0] sm:$0xff]  }
  0xe9   : > { %3139 = vmatprep.mubr.bf16.mxu0 %v3443_v40  ;;  %3267 = vmatprep.mubr.bf16.mxu1 %v3444_v41 }
  0xf0   : > { %v3045_v47 = vpop.f32.mrf.mxu0  ;;  %3140 = vmatmul.mubr.bf16.gmra.mxu0 %v3445_v42  ;;  %v3173_v48 = vpop.f32.mrf.mxu1  ;;  %3268 = vmatmul.mubr.bf16.gmra.mxu1 %v3446_v43 }
  0xf1   : > { %v1369_v49 = vadd.f32 %v3045_v47, %v3666_v46  ;;  %v1881_v50 = vadd.f32 %v3173_v48, %v3666_v46  ;;  %3143 = vmatprep.mubr.bf16.mxu0 %v3447_v44  ;;  %3271 = vmatprep.mubr.bf16.mxu1 %v3448_v45 }
  0xf2   : > { %v1360_v51 = vpop.f32.mrf.mxu0  ;;  %v1872_v52 = vpop.f32.mrf.mxu1 }
  0xf3   : > { %2385 = vst [vmem:[%s3671_s29 + $0x10] sm:$0xff] %v1369_v49  ;;  %2513 = vst [vmem:[%s3671_s29 + $0x410] sm:$0xff] %v1881_v50  ;;  %v1361_v53 = vadd.f32 %v3666_v46, %v1360_v51  ;;  %v1873_v54 = vadd.f32 %v3666_v46, %v1872_v52 }
  0xf4   : > { %v3046_v55 = vpop.f32.mrf.mxu0  ;;  %v3174_v56 = vpop.f32.mrf.mxu1 }
  0xf5   : > { %2383 = vst [vmem:[%s3671_s29] sm:$0xff] %v1361_v53  ;;  %2511 = vst [vmem:[%s3671_s29 + $0x400] sm:$0xff] %v1873_v54  ;;  %v1372_v59 = vadd.f32 %v3046_v55, %v3666_v46  ;;  %v1884_v60 = vadd.f32 %v3174_v56, %v3666_v46  ;;  %v3461_v54 = vld [vmem:[%s3553_s23 + $0x1c8] sm:$0xff]  }
  0xf6   : > { %v1363_v63 = vpop.f32.mrf.mxu0  ;;  %v1875_v0 = vpop.f32.mrf.mxu1  ;;  %v3462_v55 = vld [vmem:[%s3553_s23 + $0x3c8] sm:$0xff]  }
  0xf7   : > { %2386 = vst [vmem:[%s3671_s29 + $0x18] sm:$0xff] %v1372_v59  ;;  %2514 = vst [vmem:[%s3671_s29 + $0x418] sm:$0xff] %v1884_v60  ;;  %v1364_v1 = vadd.f32 %v3666_v46, %v1363_v63  ;;  %v1876_v2 = vadd.f32 %v3666_v46, %v1875_v0  ;;  %v3464_v59 = vld [vmem:[%s3553_s23 + $0x3d0] sm:$0xff]  }
  0xf8   : > { %v3049_v3 = vpop.f32.mrf.mxu0  ;;  %3144 = vmatmul.mubr.bf16.gmra.mxu0 %v3449_v57  ;;  %v3177_v4 = vpop.f32.mrf.mxu1  ;;  %3272 = vmatmul.mubr.bf16.gmra.mxu1 %v3450_v58  ;;  %v3463_v58 = vld [vmem:[%s3553_s23 + $0x1d0] sm:$0xff]  }
  0xf9   : > { %2384 = vst [vmem:[%s3671_s29 + $0x8] sm:$0xff] %v1364_v1  ;;  %2512 = vst [vmem:[%s3671_s29 + $0x408] sm:$0xff] %v1876_v2  ;;  %v1385_v5 = vadd.f32 %v3049_v3, %v3666_v46  ;;  %v1897_v6 = vadd.f32 %v3177_v4, %v3666_v46  ;;  %3147 = vmatprep.mubr.bf16.mxu0 %v3451_v61  ;;  %3275 = vmatprep.mubr.bf16.mxu1 %v3452_v62 }
  0xfa   : > { %v1376_v7 = vpop.f32.mrf.mxu0  ;;  %v1888_v8 = vpop.f32.mrf.mxu1 }
  0xfb   : > { %2389 = vst [vmem:[%s3671_s29 + $0x30] sm:$0xff] %v1385_v5  ;;  %2517 = vst [vmem:[%s3671_s29 + $0x430] sm:$0xff] %v1897_v6  ;;  %v1377_v9 = vadd.f32 %v3666_v46, %v1376_v7  ;;  %v1889_v10 = vadd.f32 %v3666_v46, %v1888_v8 }
  0xfc   : > { %v3050_v11 = vpop.f32.mrf.mxu0  ;;  %v3178_v12 = vpop.f32.mrf.mxu1 }
  0xfd   : > { %2387 = vst [vmem:[%s3671_s29 + $0x20] sm:$0xff] %v1377_v9  ;;  %2515 = vst [vmem:[%s3671_s29 + $0x420] sm:$0xff] %v1889_v10  ;;  %v1388_v15 = vadd.f32 %v3050_v11, %v3666_v46  ;;  %v1900_v16 = vadd.f32 %v3178_v12, %v3666_v46  ;;  %v3465_v10 = vld [vmem:[%s3553_s23 + $0x1d8] sm:$0xff]  }
  0xfe   : > { %v1379_v19 = vpop.f32.mrf.mxu0  ;;  %v1891_v20 = vpop.f32.mrf.mxu1  ;;  %v3466_v11 = vld [vmem:[%s3553_s23 + $0x3d8] sm:$0xff]  }
  0xff   : > { %2390 = vst [vmem:[%s3671_s29 + $0x38] sm:$0xff] %v1388_v15  ;;  %2518 = vst [vmem:[%s3671_s29 + $0x438] sm:$0xff] %v1900_v16  ;;  %v1380_v21 = vadd.f32 %v3666_v46, %v1379_v19  ;;  %v1892_v22 = vadd.f32 %v3666_v46, %v1891_v20  ;;  %v3468_v15 = vld [vmem:[%s3553_s23 + $0x3e0] sm:$0xff]  }
 0x100   : > { %v3053_v23 = vpop.f32.mrf.mxu0  ;;  %3148 = vmatmul.mubr.bf16.gmra.mxu0 %v3453_v13  ;;  %v3181_v24 = vpop.f32.mrf.mxu1  ;;  %3276 = vmatmul.mubr.bf16.gmra.mxu1 %v3454_v14  ;;  %v3467_v14 = vld [vmem:[%s3553_s23 + $0x1e0] sm:$0xff]  }
 0x101   : > { %2388 = vst [vmem:[%s3671_s29 + $0x28] sm:$0xff] %v1380_v21  ;;  %2516 = vst [vmem:[%s3671_s29 + $0x428] sm:$0xff] %v1892_v22  ;;  %v1401_v25 = vadd.f32 %v3053_v23, %v3666_v46  ;;  %v1913_v26 = vadd.f32 %v3181_v24, %v3666_v46  ;;  %3151 = vmatprep.mubr.bf16.mxu0 %v3455_v17  ;;  %3279 = vmatprep.mubr.bf16.mxu1 %v3456_v18 }
 0x102   : > { %v1392_v27 = vpop.f32.mrf.mxu0  ;;  %v1904_v28 = vpop.f32.mrf.mxu1 }
 0x103   : > { %2393 = vst [vmem:[%s3671_s29 + $0x50] sm:$0xff] %v1401_v25  ;;  %2521 = vst [vmem:[%s3671_s29 + $0x450] sm:$0xff] %v1913_v26  ;;  %v1393_v29 = vadd.f32 %v3666_v46, %v1392_v27  ;;  %v1905_v30 = vadd.f32 %v3666_v46, %v1904_v28 }
 0x104   : > { %v3054_v31 = vpop.f32.mrf.mxu0  ;;  %v3182_v32 = vpop.f32.mrf.mxu1 }
 0x105   : > { %2391 = vst [vmem:[%s3671_s29 + $0x40] sm:$0xff] %v1393_v29  ;;  %2519 = vst [vmem:[%s3671_s29 + $0x440] sm:$0xff] %v1905_v30  ;;  %v1404_v35 = vadd.f32 %v3054_v31, %v3666_v46  ;;  %v1916_v36 = vadd.f32 %v3182_v32, %v3666_v46  ;;  %v3469_v30 = vld [vmem:[%s3553_s23 + $0x1e8] sm:$0xff]  }
 0x106   : > { %v1395_v39 = vpop.f32.mrf.mxu0  ;;  %v1907_v40 = vpop.f32.mrf.mxu1  ;;  %v3470_v31 = vld [vmem:[%s3553_s23 + $0x3e8] sm:$0xff]  }
 0x107   : > { %2394 = vst [vmem:[%s3671_s29 + $0x58] sm:$0xff] %v1404_v35  ;;  %2522 = vst [vmem:[%s3671_s29 + $0x458] sm:$0xff] %v1916_v36  ;;  %v1396_v41 = vadd.f32 %v3666_v46, %v1395_v39  ;;  %v1908_v42 = vadd.f32 %v3666_v46, %v1907_v40  ;;  %v3472_v35 = vld [vmem:[%s3553_s23 + $0x3f0] sm:$0xff]  }
 0x108   : > { %v3057_v43 = vpop.f32.mrf.mxu0  ;;  %3152 = vmatmul.mubr.bf16.gmra.mxu0 %v3457_v33  ;;  %v3185_v44 = vpop.f32.mrf.mxu1  ;;  %3280 = vmatmul.mubr.bf16.gmra.mxu1 %v3458_v34  ;;  %v3471_v34 = vld [vmem:[%s3553_s23 + $0x1f0] sm:$0xff]  }
 0x109   : > { %2392 = vst [vmem:[%s3671_s29 + $0x48] sm:$0xff] %v1396_v41  ;;  %2520 = vst [vmem:[%s3671_s29 + $0x448] sm:$0xff] %v1908_v42  ;;  %v1417_v45 = vadd.f32 %v3057_v43, %v3666_v46  ;;  %v1929_v47 = vadd.f32 %v3185_v44, %v3666_v46  ;;  %3155 = vmatprep.mubr.bf16.mxu0 %v3459_v37  ;;  %3283 = vmatprep.mubr.bf16.mxu1 %v3460_v38 }
 0x10a   : > { %v1408_v48 = vpop.f32.mrf.mxu0  ;;  %v1920_v49 = vpop.f32.mrf.mxu1 }
 0x10b   : > { %2397 = vst [vmem:[%s3671_s29 + $0x70] sm:$0xff] %v1417_v45  ;;  %2525 = vst [vmem:[%s3671_s29 + $0x470] sm:$0xff] %v1929_v47  ;;  %v1409_v50 = vadd.f32 %v3666_v46, %v1408_v48  ;;  %v1921_v51 = vadd.f32 %v3666_v46, %v1920_v49 }
 0x10c   : > { %v3058_v52 = vpop.f32.mrf.mxu0  ;;  %v3186_v53 = vpop.f32.mrf.mxu1 }
 0x10d   : > { %2395 = vst [vmem:[%s3671_s29 + $0x60] sm:$0xff] %v1409_v50  ;;  %2523 = vst [vmem:[%s3671_s29 + $0x460] sm:$0xff] %v1921_v51  ;;  %v1420_v56 = vadd.f32 %v3058_v52, %v3666_v46  ;;  %v1932_v57 = vadd.f32 %v3186_v53, %v3666_v46  ;;  %v3473_v51 = vld [vmem:[%s3553_s23 + $0x1f8] sm:$0xff]  }
 0x10e   : > { %v1411_v60 = vpop.f32.mrf.mxu0  ;;  %v1923_v61 = vpop.f32.mrf.mxu1  ;;  %v3474_v52 = vld [vmem:[%s3553_s23 + $0x3f8] sm:$0xff]  }
 0x10f   : > { %2398 = vst [vmem:[%s3671_s29 + $0x78] sm:$0xff] %v1420_v56  ;;  %2526 = vst [vmem:[%s3671_s29 + $0x478] sm:$0xff] %v1932_v57  ;;  %v1412_v62 = vadd.f32 %v3666_v46, %v1411_v60  ;;  %v1924_v63 = vadd.f32 %v3666_v46, %v1923_v61 }
 0x110   : > { %v3061_v0 = vpop.f32.mrf.mxu0  ;;  %3156 = vmatmul.mubr.bf16.gmra.mxu0 %v3461_v54  ;;  %v3189_v1 = vpop.f32.mrf.mxu1  ;;  %3284 = vmatmul.mubr.bf16.gmra.mxu1 %v3462_v55 }
 0x111   : > { %2396 = vst [vmem:[%s3671_s29 + $0x68] sm:$0xff] %v1412_v62  ;;  %2524 = vst [vmem:[%s3671_s29 + $0x468] sm:$0xff] %v1924_v63  ;;  %v1433_v2 = vadd.f32 %v3061_v0, %v3666_v46  ;;  %v1945_v3 = vadd.f32 %v3189_v1, %v3666_v46  ;;  %3159 = vmatprep.mubr.bf16.mxu0 %v3463_v58  ;;  %3287 = vmatprep.mubr.bf16.mxu1 %v3464_v59 }
 0x112   : > { %v1424_v4 = vpop.f32.mrf.mxu0  ;;  %v1936_v5 = vpop.f32.mrf.mxu1 }
 0x113   : > { %2401 = vst [vmem:[%s3671_s29 + $0x90] sm:$0xff] %v1433_v2  ;;  %2529 = vst [vmem:[%s3671_s29 + $0x490] sm:$0xff] %v1945_v3  ;;  %v1425_v6 = vadd.f32 %v3666_v46, %v1424_v4  ;;  %v1937_v7 = vadd.f32 %v3666_v46, %v1936_v5 }
 0x114   : > { %v3062_v8 = vpop.f32.mrf.mxu0  ;;  %v3190_v9 = vpop.f32.mrf.mxu1 }
 0x115   : > { %2399 = vst [vmem:[%s3671_s29 + $0x80] sm:$0xff] %v1425_v6  ;;  %2527 = vst [vmem:[%s3671_s29 + $0x480] sm:$0xff] %v1937_v7  ;;  %v1436_v12 = vadd.f32 %v3062_v8, %v3666_v46  ;;  %v1948_v13 = vadd.f32 %v3190_v9, %v3666_v46 }
 0x116   : > { %v1427_v16 = vpop.f32.mrf.mxu0  ;;  %v1939_v17 = vpop.f32.mrf.mxu1 }
 0x117   : > { %2402 = vst [vmem:[%s3671_s29 + $0x98] sm:$0xff] %v1436_v12  ;;  %2530 = vst [vmem:[%s3671_s29 + $0x498] sm:$0xff] %v1948_v13  ;;  %v1428_v18 = vadd.f32 %v3666_v46, %v1427_v16  ;;  %v1940_v19 = vadd.f32 %v3666_v46, %v1939_v17 }
 0x118   : > { %v3065_v20 = vpop.f32.mrf.mxu0  ;;  %3160 = vmatmul.mubr.bf16.gmra.mxu0 %v3465_v10  ;;  %v3193_v21 = vpop.f32.mrf.mxu1  ;;  %3288 = vmatmul.mubr.bf16.gmra.mxu1 %v3466_v11 }
 0x119   : > { %2400 = vst [vmem:[%s3671_s29 + $0x88] sm:$0xff] %v1428_v18  ;;  %2528 = vst [vmem:[%s3671_s29 + $0x488] sm:$0xff] %v1940_v19  ;;  %v1449_v22 = vadd.f32 %v3065_v20, %v3666_v46  ;;  %v1961_v23 = vadd.f32 %v3193_v21, %v3666_v46  ;;  %3163 = vmatprep.mubr.bf16.mxu0 %v3467_v14  ;;  %3291 = vmatprep.mubr.bf16.mxu1 %v3468_v15 }
 0x11a   : > { %v1440_v24 = vpop.f32.mrf.mxu0  ;;  %v1952_v25 = vpop.f32.mrf.mxu1 }
 0x11b   : > { %2405 = vst [vmem:[%s3671_s29 + $0xb0] sm:$0xff] %v1449_v22  ;;  %2533 = vst [vmem:[%s3671_s29 + $0x4b0] sm:$0xff] %v1961_v23  ;;  %v1441_v26 = vadd.f32 %v3666_v46, %v1440_v24  ;;  %v1953_v27 = vadd.f32 %v3666_v46, %v1952_v25 }
 0x11c   : > { %v3066_v28 = vpop.f32.mrf.mxu0  ;;  %v3194_v29 = vpop.f32.mrf.mxu1 }
 0x11d   : > { %2403 = vst [vmem:[%s3671_s29 + $0xa0] sm:$0xff] %v1441_v26  ;;  %2531 = vst [vmem:[%s3671_s29 + $0x4a0] sm:$0xff] %v1953_v27  ;;  %v1452_v32 = vadd.f32 %v3066_v28, %v3666_v46  ;;  %v1964_v33 = vadd.f32 %v3194_v29, %v3666_v46 }
 0x11e   : > { %v1443_v36 = vpop.f32.mrf.mxu0  ;;  %v1955_v37 = vpop.f32.mrf.mxu1 }
 0x11f   : > { %2406 = vst [vmem:[%s3671_s29 + $0xb8] sm:$0xff] %v1452_v32  ;;  %2534 = vst [vmem:[%s3671_s29 + $0x4b8] sm:$0xff] %v1964_v33  ;;  %v1444_v38 = vadd.f32 %v3666_v46, %v1443_v36  ;;  %v1956_v39 = vadd.f32 %v3666_v46, %v1955_v37 }
 0x120   : > { %v3069_v40 = vpop.f32.mrf.mxu0  ;;  %3164 = vmatmul.mubr.bf16.gmra.mxu0 %v3469_v30  ;;  %v3197_v41 = vpop.f32.mrf.mxu1  ;;  %3292 = vmatmul.mubr.bf16.gmra.mxu1 %v3470_v31 }
 0x121   : > { %2404 = vst [vmem:[%s3671_s29 + $0xa8] sm:$0xff] %v1444_v38  ;;  %2532 = vst [vmem:[%s3671_s29 + $0x4a8] sm:$0xff] %v1956_v39  ;;  %v1465_v42 = vadd.f32 %v3069_v40, %v3666_v46  ;;  %v1977_v43 = vadd.f32 %v3197_v41, %v3666_v46  ;;  %3167 = vmatprep.mubr.bf16.mxu0 %v3471_v34  ;;  %3295 = vmatprep.mubr.bf16.mxu1 %v3472_v35 }
 0x122   : > { %v1456_v44 = vpop.f32.mrf.mxu0  ;;  %v1968_v45 = vpop.f32.mrf.mxu1 }
 0x123   : > { %2409 = vst [vmem:[%s3671_s29 + $0xd0] sm:$0xff] %v1465_v42  ;;  %2537 = vst [vmem:[%s3671_s29 + $0x4d0] sm:$0xff] %v1977_v43  ;;  %v1457_v47 = vadd.f32 %v3666_v46, %v1456_v44  ;;  %v1969_v48 = vadd.f32 %v3666_v46, %v1968_v45 }
 0x124   : > { %v3070_v49 = vpop.f32.mrf.mxu0  ;;  %v3198_v50 = vpop.f32.mrf.mxu1 }
 0x125   : > { %2407 = vst [vmem:[%s3671_s29 + $0xc0] sm:$0xff] %v1457_v47  ;;  %2535 = vst [vmem:[%s3671_s29 + $0x4c0] sm:$0xff] %v1969_v48  ;;  %v1468_v53 = vadd.f32 %v3070_v49, %v3666_v46  ;;  %v1980_v54 = vadd.f32 %v3198_v50, %v3666_v46 }
 0x126   : > { %v1459_v55 = vpop.f32.mrf.mxu0  ;;  %v1971_v56 = vpop.f32.mrf.mxu1 }
 0x127   : > { %2410 = vst [vmem:[%s3671_s29 + $0xd8] sm:$0xff] %v1468_v53  ;;  %2538 = vst [vmem:[%s3671_s29 + $0x4d8] sm:$0xff] %v1980_v54  ;;  %v1460_v57 = vadd.f32 %v3666_v46, %v1459_v55  ;;  %v1972_v58 = vadd.f32 %v3666_v46, %v1971_v56 }
 0x128   : > { %v3073_v59 = vpop.f32.mrf.mxu0  ;;  %3168 = vmatmul.mubr.bf16.gmra.mxu0 %v3473_v51  ;;  %v3201_v60 = vpop.f32.mrf.mxu1  ;;  %3296 = vmatmul.mubr.bf16.gmra.mxu1 %v3474_v52 }
 0x129   : > { %2408 = vst [vmem:[%s3671_s29 + $0xc8] sm:$0xff] %v1460_v57  ;;  %2536 = vst [vmem:[%s3671_s29 + $0x4c8] sm:$0xff] %v1972_v58  ;;  %v1481_v61 = vadd.f32 %v3073_v59, %v3666_v46  ;;  %v1993_v62 = vadd.f32 %v3201_v60, %v3666_v46 }
 0x12a   : > { %v1472_v63 = vpop.f32.mrf.mxu0  ;;  %v1984_v0 = vpop.f32.mrf.mxu1 }
 0x12b   : > { %2413 = vst [vmem:[%s3671_s29 + $0xf0] sm:$0xff] %v1481_v61  ;;  %2541 = vst [vmem:[%s3671_s29 + $0x4f0] sm:$0xff] %v1993_v62  ;;  %v1473_v1 = vadd.f32 %v3666_v46, %v1472_v63  ;;  %v1985_v2 = vadd.f32 %v3666_v46, %v1984_v0 }
 0x12c   : > { %v3074_v3 = vpop.f32.mrf.mxu0  ;;  %v3202_v4 = vpop.f32.mrf.mxu1 }
 0x12d   : > { %2411 = vst [vmem:[%s3671_s29 + $0xe0] sm:$0xff] %v1473_v1  ;;  %2539 = vst [vmem:[%s3671_s29 + $0x4e0] sm:$0xff] %v1985_v2  ;;  %v1484_v5 = vadd.f32 %v3074_v3, %v3666_v46  ;;  %v1996_v6 = vadd.f32 %v3202_v4, %v3666_v46 }
 0x12e   : > { %v1475_v7 = vpop.f32.mrf.mxu0  ;;  %v1987_v8 = vpop.f32.mrf.mxu1 }
 0x12f   : > { %2414 = vst [vmem:[%s3671_s29 + $0xf8] sm:$0xff] %v1484_v5  ;;  %2542 = vst [vmem:[%s3671_s29 + $0x4f8] sm:$0xff] %v1996_v6  ;;  %v1476_v9 = vadd.f32 %v3666_v46, %v1475_v7  ;;  %v1988_v10 = vadd.f32 %v3666_v46, %v1987_v8 }
 0x130   : > { %v3077_v11 = vpop.f32.mrf.mxu0  ;;  %v3205_v12 = vpop.f32.mrf.mxu1 }
 0x131   : > { %2412 = vst [vmem:[%s3671_s29 + $0xe8] sm:$0xff] %v1476_v9  ;;  %2540 = vst [vmem:[%s3671_s29 + $0x4e8] sm:$0xff] %v1988_v10  ;;  %v1497_v13 = vadd.f32 %v3077_v11, %v3666_v46  ;;  %v2009_v14 = vadd.f32 %v3205_v12, %v3666_v46 }
 0x132   : > { %v1488_v15 = vpop.f32.mrf.mxu0  ;;  %v2000_v16 = vpop.f32.mrf.mxu1 }
 0x133   : > { %2417 = vst [vmem:[%s3671_s29 + $0x110] sm:$0xff] %v1497_v13  ;;  %2545 = vst [vmem:[%s3671_s29 + $0x510] sm:$0xff] %v2009_v14  ;;  %v1489_v17 = vadd.f32 %v3666_v46, %v1488_v15  ;;  %v2001_v18 = vadd.f32 %v3666_v46, %v2000_v16 }
 0x134   : > { %v3078_v19 = vpop.f32.mrf.mxu0  ;;  %v3206_v20 = vpop.f32.mrf.mxu1 }
 0x135   : > { %2415 = vst [vmem:[%s3671_s29 + $0x100] sm:$0xff] %v1489_v17  ;;  %2543 = vst [vmem:[%s3671_s29 + $0x500] sm:$0xff] %v2001_v18  ;;  %v1500_v21 = vadd.f32 %v3078_v19, %v3666_v46  ;;  %v2012_v22 = vadd.f32 %v3206_v20, %v3666_v46 }
 0x136   : > { %v1491_v23 = vpop.f32.mrf.mxu0  ;;  %v2003_v24 = vpop.f32.mrf.mxu1 }
 0x137   : > { %2418 = vst [vmem:[%s3671_s29 + $0x118] sm:$0xff] %v1500_v21  ;;  %2546 = vst [vmem:[%s3671_s29 + $0x518] sm:$0xff] %v2012_v22  ;;  %v1492_v25 = vadd.f32 %v3666_v46, %v1491_v23  ;;  %v2004_v26 = vadd.f32 %v3666_v46, %v2003_v24 }
 0x138   : > { %v3081_v27 = vpop.f32.mrf.mxu0  ;;  %v3209_v28 = vpop.f32.mrf.mxu1 }
 0x139   : > { %2416 = vst [vmem:[%s3671_s29 + $0x108] sm:$0xff] %v1492_v25  ;;  %2544 = vst [vmem:[%s3671_s29 + $0x508] sm:$0xff] %v2004_v26  ;;  %v1513_v29 = vadd.f32 %v3081_v27, %v3666_v46  ;;  %v2025_v30 = vadd.f32 %v3209_v28, %v3666_v46 }
 0x13a   : > { %v1504_v31 = vpop.f32.mrf.mxu0  ;;  %v2016_v32 = vpop.f32.mrf.mxu1 }
 0x13b   : > { %2421 = vst [vmem:[%s3671_s29 + $0x130] sm:$0xff] %v1513_v29  ;;  %2549 = vst [vmem:[%s3671_s29 + $0x530] sm:$0xff] %v2025_v30  ;;  %v1505_v33 = vadd.f32 %v3666_v46, %v1504_v31  ;;  %v2017_v34 = vadd.f32 %v3666_v46, %v2016_v32 }
 0x13c   : > { %v3082_v35 = vpop.f32.mrf.mxu0  ;;  %v3210_v36 = vpop.f32.mrf.mxu1 }
 0x13d   : > { %2419 = vst [vmem:[%s3671_s29 + $0x120] sm:$0xff] %v1505_v33  ;;  %2547 = vst [vmem:[%s3671_s29 + $0x520] sm:$0xff] %v2017_v34  ;;  %v1516_v37 = vadd.f32 %v3082_v35, %v3666_v46  ;;  %v2028_v38 = vadd.f32 %v3210_v36, %v3666_v46 }
 0x13e   : > { %v1507_v39 = vpop.f32.mrf.mxu0  ;;  %v2019_v40 = vpop.f32.mrf.mxu1 }
 0x13f   : > { %2422 = vst [vmem:[%s3671_s29 + $0x138] sm:$0xff] %v1516_v37  ;;  %2550 = vst [vmem:[%s3671_s29 + $0x538] sm:$0xff] %v2028_v38  ;;  %v1508_v41 = vadd.f32 %v3666_v46, %v1507_v39  ;;  %v2020_v42 = vadd.f32 %v3666_v46, %v2019_v40 }
 0x140   : > { %v3085_v43 = vpop.f32.mrf.mxu0  ;;  %v3213_v44 = vpop.f32.mrf.mxu1 }
 0x141   : > { %2420 = vst [vmem:[%s3671_s29 + $0x128] sm:$0xff] %v1508_v41  ;;  %2548 = vst [vmem:[%s3671_s29 + $0x528] sm:$0xff] %v2020_v42  ;;  %v1529_v45 = vadd.f32 %v3085_v43, %v3666_v46  ;;  %v2041_v47 = vadd.f32 %v3213_v44, %v3666_v46 }
 0x142   : > { %v1520_v48 = vpop.f32.mrf.mxu0  ;;  %v2032_v49 = vpop.f32.mrf.mxu1 }
 0x143   : > { %2425 = vst [vmem:[%s3671_s29 + $0x150] sm:$0xff] %v1529_v45  ;;  %2553 = vst [vmem:[%s3671_s29 + $0x550] sm:$0xff] %v2041_v47  ;;  %v1521_v50 = vadd.f32 %v3666_v46, %v1520_v48  ;;  %v2033_v51 = vadd.f32 %v3666_v46, %v2032_v49 }
 0x144   : > { %v3086_v52 = vpop.f32.mrf.mxu0  ;;  %v3214_v53 = vpop.f32.mrf.mxu1 }
 0x145   : > { %2423 = vst [vmem:[%s3671_s29 + $0x140] sm:$0xff] %v1521_v50  ;;  %2551 = vst [vmem:[%s3671_s29 + $0x540] sm:$0xff] %v2033_v51  ;;  %v1532_v54 = vadd.f32 %v3086_v52, %v3666_v46  ;;  %v2044_v55 = vadd.f32 %v3214_v53, %v3666_v46 }
 0x146   : > { %v1523_v56 = vpop.f32.mrf.mxu0  ;;  %v2035_v57 = vpop.f32.mrf.mxu1 }
 0x147   : > { %2426 = vst [vmem:[%s3671_s29 + $0x158] sm:$0xff] %v1532_v54  ;;  %2554 = vst [vmem:[%s3671_s29 + $0x558] sm:$0xff] %v2044_v55  ;;  %v1524_v58 = vadd.f32 %v3666_v46, %v1523_v56  ;;  %v2036_v59 = vadd.f32 %v3666_v46, %v2035_v57 }
 0x148   : > { %v3089_v60 = vpop.f32.mrf.mxu0  ;;  %v3217_v61 = vpop.f32.mrf.mxu1 }
 0x149   : > { %2424 = vst [vmem:[%s3671_s29 + $0x148] sm:$0xff] %v1524_v58  ;;  %2552 = vst [vmem:[%s3671_s29 + $0x548] sm:$0xff] %v2036_v59  ;;  %v1545_v62 = vadd.f32 %v3089_v60, %v3666_v46  ;;  %v2057_v63 = vadd.f32 %v3217_v61, %v3666_v46 }
 0x14a   : > { %v1536_v0 = vpop.f32.mrf.mxu0  ;;  %v2048_v1 = vpop.f32.mrf.mxu1 }
 0x14b   : > { %2429 = vst [vmem:[%s3671_s29 + $0x170] sm:$0xff] %v1545_v62  ;;  %2557 = vst [vmem:[%s3671_s29 + $0x570] sm:$0xff] %v2057_v63  ;;  %v1537_v2 = vadd.f32 %v3666_v46, %v1536_v0  ;;  %v2049_v3 = vadd.f32 %v3666_v46, %v2048_v1 }
 0x14c   : > { %v3090_v4 = vpop.f32.mrf.mxu0  ;;  %v3218_v5 = vpop.f32.mrf.mxu1 }
 0x14d   : > { %2427 = vst [vmem:[%s3671_s29 + $0x160] sm:$0xff] %v1537_v2  ;;  %2555 = vst [vmem:[%s3671_s29 + $0x560] sm:$0xff] %v2049_v3  ;;  %v1548_v6 = vadd.f32 %v3090_v4, %v3666_v46  ;;  %v2060_v7 = vadd.f32 %v3218_v5, %v3666_v46 }
 0x14e   : > { %v1539_v8 = vpop.f32.mrf.mxu0  ;;  %v2051_v9 = vpop.f32.mrf.mxu1 }
 0x14f   : > { %2430 = vst [vmem:[%s3671_s29 + $0x178] sm:$0xff] %v1548_v6  ;;  %2558 = vst [vmem:[%s3671_s29 + $0x578] sm:$0xff] %v2060_v7  ;;  %v1540_v10 = vadd.f32 %v3666_v46, %v1539_v8  ;;  %v2052_v11 = vadd.f32 %v3666_v46, %v2051_v9 }
 0x150   : > { %v3093_v12 = vpop.f32.mrf.mxu0  ;;  %v3221_v13 = vpop.f32.mrf.mxu1 }
 0x151   : > { %2428 = vst [vmem:[%s3671_s29 + $0x168] sm:$0xff] %v1540_v10  ;;  %2556 = vst [vmem:[%s3671_s29 + $0x568] sm:$0xff] %v2052_v11  ;;  %v1561_v14 = vadd.f32 %v3093_v12, %v3666_v46  ;;  %v2073_v15 = vadd.f32 %v3221_v13, %v3666_v46 }
 0x152   : > { %v1552_v16 = vpop.f32.mrf.mxu0  ;;  %v2064_v17 = vpop.f32.mrf.mxu1 }
 0x153   : > { %2433 = vst [vmem:[%s3671_s29 + $0x190] sm:$0xff] %v1561_v14  ;;  %2561 = vst [vmem:[%s3671_s29 + $0x590] sm:$0xff] %v2073_v15  ;;  %v1553_v18 = vadd.f32 %v3666_v46, %v1552_v16  ;;  %v2065_v19 = vadd.f32 %v3666_v46, %v2064_v17 }
 0x154   : > { %v3094_v20 = vpop.f32.mrf.mxu0  ;;  %v3222_v21 = vpop.f32.mrf.mxu1 }
 0x155   : > { %2431 = vst [vmem:[%s3671_s29 + $0x180] sm:$0xff] %v1553_v18  ;;  %2559 = vst [vmem:[%s3671_s29 + $0x580] sm:$0xff] %v2065_v19  ;;  %v1564_v22 = vadd.f32 %v3094_v20, %v3666_v46  ;;  %v2076_v23 = vadd.f32 %v3222_v21, %v3666_v46 }
 0x156   : > { %v1555_v24 = vpop.f32.mrf.mxu0  ;;  %v2067_v25 = vpop.f32.mrf.mxu1 }
 0x157   : > { %2434 = vst [vmem:[%s3671_s29 + $0x198] sm:$0xff] %v1564_v22  ;;  %2562 = vst [vmem:[%s3671_s29 + $0x598] sm:$0xff] %v2076_v23  ;;  %v1556_v26 = vadd.f32 %v3666_v46, %v1555_v24  ;;  %v2068_v27 = vadd.f32 %v3666_v46, %v2067_v25 }
 0x158   : > { %v3097_v28 = vpop.f32.mrf.mxu0  ;;  %v3225_v29 = vpop.f32.mrf.mxu1 }
 0x159   : > { %2432 = vst [vmem:[%s3671_s29 + $0x188] sm:$0xff] %v1556_v26  ;;  %2560 = vst [vmem:[%s3671_s29 + $0x588] sm:$0xff] %v2068_v27  ;;  %v1577_v30 = vadd.f32 %v3097_v28, %v3666_v46  ;;  %v2089_v31 = vadd.f32 %v3225_v29, %v3666_v46 }
 0x15a   : > { %v1568_v32 = vpop.f32.mrf.mxu0  ;;  %v2080_v33 = vpop.f32.mrf.mxu1 }
 0x15b   : > { %2437 = vst [vmem:[%s3671_s29 + $0x1b0] sm:$0xff] %v1577_v30  ;;  %2565 = vst [vmem:[%s3671_s29 + $0x5b0] sm:$0xff] %v2089_v31  ;;  %v1569_v34 = vadd.f32 %v3666_v46, %v1568_v32  ;;  %v2081_v35 = vadd.f32 %v3666_v46, %v2080_v33 }
 0x15c   : > { %v3098_v36 = vpop.f32.mrf.mxu0  ;;  %v3226_v37 = vpop.f32.mrf.mxu1 }
 0x15d   : > { %2435 = vst [vmem:[%s3671_s29 + $0x1a0] sm:$0xff] %v1569_v34  ;;  %2563 = vst [vmem:[%s3671_s29 + $0x5a0] sm:$0xff] %v2081_v35  ;;  %v1580_v38 = vadd.f32 %v3098_v36, %v3666_v46  ;;  %v2092_v39 = vadd.f32 %v3226_v37, %v3666_v46 }
 0x15e   : > { %v1571_v40 = vpop.f32.mrf.mxu0  ;;  %v2083_v41 = vpop.f32.mrf.mxu1 }
 0x15f   : > { %2438 = vst [vmem:[%s3671_s29 + $0x1b8] sm:$0xff] %v1580_v38  ;;  %2566 = vst [vmem:[%s3671_s29 + $0x5b8] sm:$0xff] %v2092_v39  ;;  %v1572_v42 = vadd.f32 %v3666_v46, %v1571_v40  ;;  %v2084_v43 = vadd.f32 %v3666_v46, %v2083_v41 }
 0x160   : > { %v3101_v44 = vpop.f32.mrf.mxu0  ;;  %v3229_v45 = vpop.f32.mrf.mxu1 }
 0x161   : > { %2436 = vst [vmem:[%s3671_s29 + $0x1a8] sm:$0xff] %v1572_v42  ;;  %2564 = vst [vmem:[%s3671_s29 + $0x5a8] sm:$0xff] %v2084_v43  ;;  %v1593_v47 = vadd.f32 %v3101_v44, %v3666_v46  ;;  %v2105_v48 = vadd.f32 %v3229_v45, %v3666_v46 }
 0x162   : > { %v1584_v49 = vpop.f32.mrf.mxu0  ;;  %v2096_v50 = vpop.f32.mrf.mxu1 }
 0x163   : > { %2441 = vst [vmem:[%s3671_s29 + $0x1d0] sm:$0xff] %v1593_v47  ;;  %2569 = vst [vmem:[%s3671_s29 + $0x5d0] sm:$0xff] %v2105_v48  ;;  %v1585_v51 = vadd.f32 %v3666_v46, %v1584_v49  ;;  %v2097_v52 = vadd.f32 %v3666_v46, %v2096_v50 }
 0x164   : > { %v3102_v53 = vpop.f32.mrf.mxu0  ;;  %v3230_v54 = vpop.f32.mrf.mxu1 }
 0x165   : > { %2439 = vst [vmem:[%s3671_s29 + $0x1c0] sm:$0xff] %v1585_v51  ;;  %2567 = vst [vmem:[%s3671_s29 + $0x5c0] sm:$0xff] %v2097_v52  ;;  %v1596_v55 = vadd.f32 %v3102_v53, %v3666_v46  ;;  %v2108_v56 = vadd.f32 %v3230_v54, %v3666_v46 }
 0x166   : > { %v1587_v57 = vpop.f32.mrf.mxu0  ;;  %v2099_v58 = vpop.f32.mrf.mxu1 }
 0x167   : > { %2442 = vst [vmem:[%s3671_s29 + $0x1d8] sm:$0xff] %v1596_v55  ;;  %2570 = vst [vmem:[%s3671_s29 + $0x5d8] sm:$0xff] %v2108_v56  ;;  %v1588_v59 = vadd.f32 %v3666_v46, %v1587_v57  ;;  %v2100_v60 = vadd.f32 %v3666_v46, %v2099_v58 }
 0x168   : > { %v3105_v61 = vpop.f32.mrf.mxu0  ;;  %v3233_v62 = vpop.f32.mrf.mxu1 }
 0x169   : > { %2440 = vst [vmem:[%s3671_s29 + $0x1c8] sm:$0xff] %v1588_v59  ;;  %2568 = vst [vmem:[%s3671_s29 + $0x5c8] sm:$0xff] %v2100_v60  ;;  %v1609_v63 = vadd.f32 %v3105_v61, %v3666_v46  ;;  %v2121_v0 = vadd.f32 %v3233_v62, %v3666_v46 }
 0x16a   : > { %v1600_v1 = vpop.f32.mrf.mxu0  ;;  %v2112_v2 = vpop.f32.mrf.mxu1 }
 0x16b   : > { %2445 = vst [vmem:[%s3671_s29 + $0x1f0] sm:$0xff] %v1609_v63  ;;  %2573 = vst [vmem:[%s3671_s29 + $0x5f0] sm:$0xff] %v2121_v0  ;;  %v1601_v3 = vadd.f32 %v3666_v46, %v1600_v1  ;;  %v2113_v4 = vadd.f32 %v3666_v46, %v2112_v2  ;;  %v4006_v0 = vld [vmem:[%s4227_s2] ss:$0 sm:$0xff] }
 0x16c   : > { %v3106_v5 = vpop.f32.mrf.mxu0  ;;  %v3234_v6 = vpop.f32.mrf.mxu1 }
 0x16d   : > { %2443 = vst [vmem:[%s3671_s29 + $0x1e0] sm:$0xff] %v1601_v3  ;;  %2571 = vst [vmem:[%s3671_s29 + $0x5e0] sm:$0xff] %v2113_v4  ;;  %v1612_v7 = vadd.f32 %v3106_v5, %v3666_v46  ;;  %v2124_v8 = vadd.f32 %v3234_v6, %v3666_v46 }
 0x16e   : > { %v1603_v9 = vpop.f32.mrf.mxu0  ;;  %v2115_v10 = vpop.f32.mrf.mxu1 }
 0x16f   : > { %2446 = vst [vmem:[%s3671_s29 + $0x1f8] sm:$0xff] %v1612_v7  ;;  %2574 = vst [vmem:[%s3671_s29 + $0x5f8] sm:$0xff] %v2124_v8  ;;  %v1604_v11 = vadd.f32 %v3666_v46, %v1603_v9  ;;  %v2116_v12 = vadd.f32 %v3666_v46, %v2115_v10 }
 0x170   : > { %v3109_v13 = vpop.f32.mrf.mxu0  ;;  %v3237_v14 = vpop.f32.mrf.mxu1 }
 0x171   : > { %2444 = vst [vmem:[%s3671_s29 + $0x1e8] sm:$0xff] %v1604_v11  ;;  %2572 = vst [vmem:[%s3671_s29 + $0x5e8] sm:$0xff] %v2116_v12  ;;  %v1625_v15 = vadd.f32 %v3109_v13, %v3666_v46  ;;  %v2137_v16 = vadd.f32 %v3237_v14, %v3666_v46 }
 0x172   : > { %v1616_v17 = vpop.f32.mrf.mxu0  ;;  %v2128_v18 = vpop.f32.mrf.mxu1 }
 0x173   : > { %2449 = vst [vmem:[%s3671_s29 + $0x210] sm:$0xff] %v1625_v15  ;;  %2577 = vst [vmem:[%s3671_s29 + $0x610] sm:$0xff] %v2137_v16  ;;  %v1617_v19 = vadd.f32 %v3666_v46, %v1616_v17  ;;  %v2129_v20 = vadd.f32 %v3666_v46, %v2128_v18 }
 0x174   : > { %v3110_v21 = vpop.f32.mrf.mxu0  ;;  %v3238_v22 = vpop.f32.mrf.mxu1 }
 0x175   : > { %2447 = vst [vmem:[%s3671_s29 + $0x200] sm:$0xff] %v1617_v19  ;;  %2575 = vst [vmem:[%s3671_s29 + $0x600] sm:$0xff] %v2129_v20  ;;  %v1628_v23 = vadd.f32 %v3110_v21, %v3666_v46  ;;  %v2140_v24 = vadd.f32 %v3238_v22, %v3666_v46 }
 0x176   : > { %v1619_v25 = vpop.f32.mrf.mxu0  ;;  %v2131_v26 = vpop.f32.mrf.mxu1 }
 0x177   : > { %2450 = vst [vmem:[%s3671_s29 + $0x218] sm:$0xff] %v1628_v23  ;;  %2578 = vst [vmem:[%s3671_s29 + $0x618] sm:$0xff] %v2140_v24  ;;  %v1620_v27 = vadd.f32 %v3666_v46, %v1619_v25  ;;  %v2132_v28 = vadd.f32 %v3666_v46, %v2131_v26 }
 0x178   : > { %v3113_v29 = vpop.f32.mrf.mxu0  ;;  %v3241_v30 = vpop.f32.mrf.mxu1 }
 0x179   : > { %2448 = vst [vmem:[%s3671_s29 + $0x208] sm:$0xff] %v1620_v27  ;;  %2576 = vst [vmem:[%s3671_s29 + $0x608] sm:$0xff] %v2132_v28  ;;  %v1641_v31 = vadd.f32 %v3113_v29, %v3666_v46  ;;  %v2153_v32 = vadd.f32 %v3241_v30, %v3666_v46 }
 0x17a   : > { %v1632_v33 = vpop.f32.mrf.mxu0  ;;  %v2144_v34 = vpop.f32.mrf.mxu1 }
 0x17b   : > { %2453 = vst [vmem:[%s3671_s29 + $0x230] sm:$0xff] %v1641_v31  ;;  %2581 = vst [vmem:[%s3671_s29 + $0x630] sm:$0xff] %v2153_v32  ;;  %v1633_v35 = vadd.f32 %v3666_v46, %v1632_v33  ;;  %v2145_v36 = vadd.f32 %v3666_v46, %v2144_v34 }
 0x17c   : > { %v3114_v37 = vpop.f32.mrf.mxu0  ;;  %v3242_v38 = vpop.f32.mrf.mxu1 }
 0x17d   : > { %2451 = vst [vmem:[%s3671_s29 + $0x220] sm:$0xff] %v1633_v35  ;;  %2579 = vst [vmem:[%s3671_s29 + $0x620] sm:$0xff] %v2145_v36  ;;  %v1644_v39 = vadd.f32 %v3114_v37, %v3666_v46  ;;  %v2156_v40 = vadd.f32 %v3242_v38, %v3666_v46 }
 0x17e   : > { %v1635_v41 = vpop.f32.mrf.mxu0  ;;  %v2147_v42 = vpop.f32.mrf.mxu1 }
 0x17f   : > { %2454 = vst [vmem:[%s3671_s29 + $0x238] sm:$0xff] %v1644_v39  ;;  %2582 = vst [vmem:[%s3671_s29 + $0x638] sm:$0xff] %v2156_v40  ;;  %v1636_v43 = vadd.f32 %v3666_v46, %v1635_v41  ;;  %v2148_v44 = vadd.f32 %v3666_v46, %v2147_v42 }
 0x180   : > { %v3117_v45 = vpop.f32.mrf.mxu0  ;;  %v3245_v47 = vpop.f32.mrf.mxu1 }
 0x181   : > { %2452 = vst [vmem:[%s3671_s29 + $0x228] sm:$0xff] %v1636_v43  ;;  %2580 = vst [vmem:[%s3671_s29 + $0x628] sm:$0xff] %v2148_v44  ;;  %v1657_v48 = vadd.f32 %v3117_v45, %v3666_v46  ;;  %v2169_v49 = vadd.f32 %v3245_v47, %v3666_v46 }
 0x182   : > { %v1648_v50 = vpop.f32.mrf.mxu0  ;;  %v2160_v51 = vpop.f32.mrf.mxu1 }
 0x183   : > { %2457 = vst [vmem:[%s3671_s29 + $0x250] sm:$0xff] %v1657_v48  ;;  %2585 = vst [vmem:[%s3671_s29 + $0x650] sm:$0xff] %v2169_v49  ;;  %v1649_v52 = vadd.f32 %v3666_v46, %v1648_v50  ;;  %v2161_v53 = vadd.f32 %v3666_v46, %v2160_v51 }
 0x184   : > { %v3118_v54 = vpop.f32.mrf.mxu0  ;;  %v3246_v55 = vpop.f32.mrf.mxu1 }
 0x185   : > { %2455 = vst [vmem:[%s3671_s29 + $0x240] sm:$0xff] %v1649_v52  ;;  %2583 = vst [vmem:[%s3671_s29 + $0x640] sm:$0xff] %v2161_v53  ;;  %v1660_v56 = vadd.f32 %v3118_v54, %v3666_v46  ;;  %v2172_v57 = vadd.f32 %v3246_v55, %v3666_v46 }
 0x186   : > { %v1651_v58 = vpop.f32.mrf.mxu0  ;;  %v2163_v59 = vpop.f32.mrf.mxu1 }
 0x187   : > { %2458 = vst [vmem:[%s3671_s29 + $0x258] sm:$0xff] %v1660_v56  ;;  %2586 = vst [vmem:[%s3671_s29 + $0x658] sm:$0xff] %v2172_v57  ;;  %v1652_v60 = vadd.f32 %v3666_v46, %v1651_v58  ;;  %v2164_v61 = vadd.f32 %v3666_v46, %v2163_v59 }
 0x188   : > { %v3121_v62 = vpop.f32.mrf.mxu0  ;;  %v3249_v63 = vpop.f32.mrf.mxu1 }
 0x189   : > { %2456 = vst [vmem:[%s3671_s29 + $0x248] sm:$0xff] %v1652_v60  ;;  %2584 = vst [vmem:[%s3671_s29 + $0x648] sm:$0xff] %v2164_v61  ;;  %v1673_v1 = vadd.f32 %v4006_v0, %v3121_v62  ;;  %v2185_v2 = vadd.f32 %v4006_v0, %v3249_v63 }
 0x18a   : > { %v1664_v3 = vpop.f32.mrf.mxu0  ;;  %v2176_v4 = vpop.f32.mrf.mxu1 }
 0x18b   : > { %2461 = vst [vmem:[%s3671_s29 + $0x270] sm:$0xff] %v1673_v1  ;;  %2589 = vst [vmem:[%s3671_s29 + $0x670] sm:$0xff] %v2185_v2  ;;  %v1665_v46 = vadd.f32 %v4006_v0, %v1664_v3  ;;  %v2177_v5 = vadd.f32 %v4006_v0, %v2176_v4 }
 0x18c   : > { %v3122_v6 = vpop.f32.mrf.mxu0  ;;  %v3250_v7 = vpop.f32.mrf.mxu1 }
 0x18d   : > { %2459 = vst [vmem:[%s3671_s29 + $0x260] sm:$0xff] %v1665_v46  ;;  %2587 = vst [vmem:[%s3671_s29 + $0x660] sm:$0xff] %v2177_v5  ;;  %v1676_v8 = vadd.f32 %v4006_v0, %v3122_v6  ;;  %v2188_v9 = vadd.f32 %v4006_v0, %v3250_v7 }
 0x18e   : > { %v1667_v10 = vpop.f32.mrf.mxu0  ;;  %v2179_v11 = vpop.f32.mrf.mxu1 }
 0x18f   : > { %2462 = vst [vmem:[%s3671_s29 + $0x278] sm:$0xff] %v1676_v8  ;;  %2590 = vst [vmem:[%s3671_s29 + $0x678] sm:$0xff] %v2188_v9  ;;  %v1668_v12 = vadd.f32 %v4006_v0, %v1667_v10  ;;  %v2180_v13 = vadd.f32 %v4006_v0, %v2179_v11 }
 0x190   : > { %v3125_v14 = vpop.f32.mrf.mxu0  ;;  %v3253_v15 = vpop.f32.mrf.mxu1 }
 0x191   : > { %2460 = vst [vmem:[%s3671_s29 + $0x268] sm:$0xff] %v1668_v12  ;;  %2588 = vst [vmem:[%s3671_s29 + $0x668] sm:$0xff] %v2180_v13  ;;  %v1689_v16 = vadd.f32 %v4006_v0, %v3125_v14  ;;  %v2201_v17 = vadd.f32 %v4006_v0, %v3253_v15 }
 0x192   : > { %v1680_v18 = vpop.f32.mrf.mxu0  ;;  %v2192_v19 = vpop.f32.mrf.mxu1 }
 0x193   : > { %2465 = vst [vmem:[%s3671_s29 + $0x290] sm:$0xff] %v1689_v16  ;;  %2593 = vst [vmem:[%s3671_s29 + $0x690] sm:$0xff] %v2201_v17  ;;  %v1681_v20 = vadd.f32 %v4006_v0, %v1680_v18  ;;  %v2193_v21 = vadd.f32 %v4006_v0, %v2192_v19 }
 0x194   : > { %v3126_v22 = vpop.f32.mrf.mxu0  ;;  %v3254_v23 = vpop.f32.mrf.mxu1 }
 0x195   : > { %2463 = vst [vmem:[%s3671_s29 + $0x280] sm:$0xff] %v1681_v20  ;;  %2591 = vst [vmem:[%s3671_s29 + $0x680] sm:$0xff] %v2193_v21  ;;  %v1692_v24 = vadd.f32 %v4006_v0, %v3126_v22  ;;  %v2204_v25 = vadd.f32 %v4006_v0, %v3254_v23 }
 0x196   : > { %v1683_v26 = vpop.f32.mrf.mxu0  ;;  %v2195_v27 = vpop.f32.mrf.mxu1 }
 0x197   : > { %2466 = vst [vmem:[%s3671_s29 + $0x298] sm:$0xff] %v1692_v24  ;;  %2594 = vst [vmem:[%s3671_s29 + $0x698] sm:$0xff] %v2204_v25  ;;  %v1684_v28 = vadd.f32 %v4006_v0, %v1683_v26  ;;  %v2196_v29 = vadd.f32 %v4006_v0, %v2195_v27 }
 0x198   : > { %v3129_v30 = vpop.f32.mrf.mxu0  ;;  %v3257_v31 = vpop.f32.mrf.mxu1 }
 0x199   : > { %2464 = vst [vmem:[%s3671_s29 + $0x288] sm:$0xff] %v1684_v28  ;;  %2592 = vst [vmem:[%s3671_s29 + $0x688] sm:$0xff] %v2196_v29  ;;  %v1705_v32 = vadd.f32 %v4006_v0, %v3129_v30  ;;  %v2217_v33 = vadd.f32 %v4006_v0, %v3257_v31 }
 0x19a   : > { %v1696_v34 = vpop.f32.mrf.mxu0  ;;  %v2208_v35 = vpop.f32.mrf.mxu1 }
 0x19b   : > { %2469 = vst [vmem:[%s3671_s29 + $0x2b0] sm:$0xff] %v1705_v32  ;;  %2597 = vst [vmem:[%s3671_s29 + $0x6b0] sm:$0xff] %v2217_v33  ;;  %v1697_v36 = vadd.f32 %v4006_v0, %v1696_v34  ;;  %v2209_v37 = vadd.f32 %v4006_v0, %v2208_v35 }
 0x19c   : > { %v3130_v38 = vpop.f32.mrf.mxu0  ;;  %v3258_v39 = vpop.f32.mrf.mxu1 }
 0x19d   : > { %2467 = vst [vmem:[%s3671_s29 + $0x2a0] sm:$0xff] %v1697_v36  ;;  %2595 = vst [vmem:[%s3671_s29 + $0x6a0] sm:$0xff] %v2209_v37  ;;  %v1708_v40 = vadd.f32 %v4006_v0, %v3130_v38  ;;  %v2220_v41 = vadd.f32 %v4006_v0, %v3258_v39 }
 0x19e   : > { %v1699_v42 = vpop.f32.mrf.mxu0  ;;  %v2211_v43 = vpop.f32.mrf.mxu1 }
 0x19f   : > { %2470 = vst [vmem:[%s3671_s29 + $0x2b8] sm:$0xff] %v1708_v40  ;;  %2598 = vst [vmem:[%s3671_s29 + $0x6b8] sm:$0xff] %v2220_v41  ;;  %v1700_v44 = vadd.f32 %v4006_v0, %v1699_v42  ;;  %v2212_v45 = vadd.f32 %v4006_v0, %v2211_v43 }
 0x1a0   : > { %v3133_v47 = vpop.f32.mrf.mxu0  ;;  %v3261_v48 = vpop.f32.mrf.mxu1 }
 0x1a1   : > { %2468 = vst [vmem:[%s3671_s29 + $0x2a8] sm:$0xff] %v1700_v44  ;;  %2596 = vst [vmem:[%s3671_s29 + $0x6a8] sm:$0xff] %v2212_v45  ;;  %v1721_v49 = vadd.f32 %v4006_v0, %v3133_v47  ;;  %v2233_v50 = vadd.f32 %v4006_v0, %v3261_v48 }
 0x1a2   : > { %v1712_v51 = vpop.f32.mrf.mxu0  ;;  %v2224_v52 = vpop.f32.mrf.mxu1 }
 0x1a3   : > { %2473 = vst [vmem:[%s3671_s29 + $0x2d0] sm:$0xff] %v1721_v49  ;;  %2601 = vst [vmem:[%s3671_s29 + $0x6d0] sm:$0xff] %v2233_v50  ;;  %v1713_v53 = vadd.f32 %v4006_v0, %v1712_v51  ;;  %v2225_v54 = vadd.f32 %v4006_v0, %v2224_v52 }
 0x1a4   : > { %v3134_v55 = vpop.f32.mrf.mxu0  ;;  %v3262_v56 = vpop.f32.mrf.mxu1 }
 0x1a5   : > { %2471 = vst [vmem:[%s3671_s29 + $0x2c0] sm:$0xff] %v1713_v53  ;;  %2599 = vst [vmem:[%s3671_s29 + $0x6c0] sm:$0xff] %v2225_v54  ;;  %v1724_v57 = vadd.f32 %v4006_v0, %v3134_v55  ;;  %v2236_v58 = vadd.f32 %v4006_v0, %v3262_v56 }
 0x1a6   : > { %v1715_v59 = vpop.f32.mrf.mxu0  ;;  %v2227_v60 = vpop.f32.mrf.mxu1 }
 0x1a7   : > { %2474 = vst [vmem:[%s3671_s29 + $0x2d8] sm:$0xff] %v1724_v57  ;;  %2602 = vst [vmem:[%s3671_s29 + $0x6d8] sm:$0xff] %v2236_v58  ;;  %v1716_v61 = vadd.f32 %v4006_v0, %v1715_v59  ;;  %v2228_v62 = vadd.f32 %v4006_v0, %v2227_v60 }
 0x1a8   : > { %v3137_v63 = vpop.f32.mrf.mxu0  ;;  %v3265_v1 = vpop.f32.mrf.mxu1 }
 0x1a9   : > { %2472 = vst [vmem:[%s3671_s29 + $0x2c8] sm:$0xff] %v1716_v61  ;;  %2600 = vst [vmem:[%s3671_s29 + $0x6c8] sm:$0xff] %v2228_v62  ;;  %v1737_v2 = vadd.f32 %v4006_v0, %v3137_v63  ;;  %v2249_v3 = vadd.f32 %v4006_v0, %v3265_v1 }
 0x1aa   : > { %v1728_v4 = vpop.f32.mrf.mxu0  ;;  %v2240_v46 = vpop.f32.mrf.mxu1 }
 0x1ab   : > { %2477 = vst [vmem:[%s3671_s29 + $0x2f0] sm:$0xff] %v1737_v2  ;;  %2605 = vst [vmem:[%s3671_s29 + $0x6f0] sm:$0xff] %v2249_v3  ;;  %v1729_v5 = vadd.f32 %v4006_v0, %v1728_v4  ;;  %v2241_v6 = vadd.f32 %v4006_v0, %v2240_v46 }
 0x1ac   : > { %v3138_v7 = vpop.f32.mrf.mxu0  ;;  %v3266_v8 = vpop.f32.mrf.mxu1 }
 0x1ad   : > { %2475 = vst [vmem:[%s3671_s29 + $0x2e0] sm:$0xff] %v1729_v5  ;;  %2603 = vst [vmem:[%s3671_s29 + $0x6e0] sm:$0xff] %v2241_v6  ;;  %v1740_v9 = vadd.f32 %v4006_v0, %v3138_v7  ;;  %v2252_v10 = vadd.f32 %v4006_v0, %v3266_v8 }
 0x1ae   : > { %v1731_v11 = vpop.f32.mrf.mxu0  ;;  %v2243_v12 = vpop.f32.mrf.mxu1 }
 0x1af   : > { %2478 = vst [vmem:[%s3671_s29 + $0x2f8] sm:$0xff] %v1740_v9  ;;  %2606 = vst [vmem:[%s3671_s29 + $0x6f8] sm:$0xff] %v2252_v10  ;;  %v1732_v13 = vadd.f32 %v4006_v0, %v1731_v11  ;;  %v2244_v14 = vadd.f32 %v4006_v0, %v2243_v12 }
 0x1b0   : > { %v3141_v15 = vpop.f32.mrf.mxu0  ;;  %v3269_v16 = vpop.f32.mrf.mxu1 }
 0x1b1   : > { %2476 = vst [vmem:[%s3671_s29 + $0x2e8] sm:$0xff] %v1732_v13  ;;  %2604 = vst [vmem:[%s3671_s29 + $0x6e8] sm:$0xff] %v2244_v14  ;;  %v1753_v17 = vadd.f32 %v4006_v0, %v3141_v15  ;;  %v2265_v18 = vadd.f32 %v4006_v0, %v3269_v16 }
 0x1b2   : > { %v1744_v19 = vpop.f32.mrf.mxu0  ;;  %v2256_v20 = vpop.f32.mrf.mxu1 }
 0x1b3   : > { %2481 = vst [vmem:[%s3671_s29 + $0x310] sm:$0xff] %v1753_v17  ;;  %2609 = vst [vmem:[%s3671_s29 + $0x710] sm:$0xff] %v2265_v18  ;;  %v1745_v21 = vadd.f32 %v4006_v0, %v1744_v19  ;;  %v2257_v22 = vadd.f32 %v4006_v0, %v2256_v20 }
 0x1b4   : > { %v3142_v23 = vpop.f32.mrf.mxu0  ;;  %v3270_v24 = vpop.f32.mrf.mxu1 }
 0x1b5   : > { %2479 = vst [vmem:[%s3671_s29 + $0x300] sm:$0xff] %v1745_v21  ;;  %2607 = vst [vmem:[%s3671_s29 + $0x700] sm:$0xff] %v2257_v22  ;;  %v1756_v25 = vadd.f32 %v4006_v0, %v3142_v23  ;;  %v2268_v26 = vadd.f32 %v4006_v0, %v3270_v24 }
 0x1b6   : > { %v1747_v27 = vpop.f32.mrf.mxu0  ;;  %v2259_v28 = vpop.f32.mrf.mxu1 }
 0x1b7   : > { %2482 = vst [vmem:[%s3671_s29 + $0x318] sm:$0xff] %v1756_v25  ;;  %2610 = vst [vmem:[%s3671_s29 + $0x718] sm:$0xff] %v2268_v26  ;;  %v1748_v29 = vadd.f32 %v4006_v0, %v1747_v27  ;;  %v2260_v30 = vadd.f32 %v4006_v0, %v2259_v28 }
 0x1b8   : > { %v3145_v31 = vpop.f32.mrf.mxu0  ;;  %v3273_v32 = vpop.f32.mrf.mxu1 }
 0x1b9   : > { %2480 = vst [vmem:[%s3671_s29 + $0x308] sm:$0xff] %v1748_v29  ;;  %2608 = vst [vmem:[%s3671_s29 + $0x708] sm:$0xff] %v2260_v30  ;;  %v1769_v33 = vadd.f32 %v4006_v0, %v3145_v31  ;;  %v2281_v34 = vadd.f32 %v4006_v0, %v3273_v32 }
 0x1ba   : > { %v1760_v35 = vpop.f32.mrf.mxu0  ;;  %v2272_v36 = vpop.f32.mrf.mxu1 }
 0x1bb   : > { %2485 = vst [vmem:[%s3671_s29 + $0x330] sm:$0xff] %v1769_v33  ;;  %2613 = vst [vmem:[%s3671_s29 + $0x730] sm:$0xff] %v2281_v34  ;;  %v1761_v37 = vadd.f32 %v4006_v0, %v1760_v35  ;;  %v2273_v38 = vadd.f32 %v4006_v0, %v2272_v36 }
 0x1bc   : > { %v3146_v39 = vpop.f32.mrf.mxu0  ;;  %v3274_v40 = vpop.f32.mrf.mxu1 }
 0x1bd   : > { %2483 = vst [vmem:[%s3671_s29 + $0x320] sm:$0xff] %v1761_v37  ;;  %2611 = vst [vmem:[%s3671_s29 + $0x720] sm:$0xff] %v2273_v38  ;;  %v1772_v41 = vadd.f32 %v4006_v0, %v3146_v39  ;;  %v2284_v42 = vadd.f32 %v4006_v0, %v3274_v40 }
 0x1be   : > { %v1763_v43 = vpop.f32.mrf.mxu0  ;;  %v2275_v44 = vpop.f32.mrf.mxu1 }
 0x1bf   : > { %2486 = vst [vmem:[%s3671_s29 + $0x338] sm:$0xff] %v1772_v41  ;;  %2614 = vst [vmem:[%s3671_s29 + $0x738] sm:$0xff] %v2284_v42  ;;  %v1764_v45 = vadd.f32 %v4006_v0, %v1763_v43  ;;  %v2276_v47 = vadd.f32 %v4006_v0, %v2275_v44 }
 0x1c0   : > { %v3149_v48 = vpop.f32.mrf.mxu0  ;;  %v3277_v49 = vpop.f32.mrf.mxu1 }
 0x1c1   : > { %2484 = vst [vmem:[%s3671_s29 + $0x328] sm:$0xff] %v1764_v45  ;;  %2612 = vst [vmem:[%s3671_s29 + $0x728] sm:$0xff] %v2276_v47  ;;  %v1785_v50 = vadd.f32 %v4006_v0, %v3149_v48  ;;  %v2297_v51 = vadd.f32 %v4006_v0, %v3277_v49 }
 0x1c2   : > { %v1776_v52 = vpop.f32.mrf.mxu0  ;;  %v2288_v53 = vpop.f32.mrf.mxu1 }
 0x1c3   : > { %2489 = vst [vmem:[%s3671_s29 + $0x350] sm:$0xff] %v1785_v50  ;;  %2617 = vst [vmem:[%s3671_s29 + $0x750] sm:$0xff] %v2297_v51  ;;  %v1777_v54 = vadd.f32 %v4006_v0, %v1776_v52  ;;  %v2289_v55 = vadd.f32 %v4006_v0, %v2288_v53 }
 0x1c4   : > { %v3150_v56 = vpop.f32.mrf.mxu0  ;;  %v3278_v57 = vpop.f32.mrf.mxu1 }
 0x1c5   : > { %2487 = vst [vmem:[%s3671_s29 + $0x340] sm:$0xff] %v1777_v54  ;;  %2615 = vst [vmem:[%s3671_s29 + $0x740] sm:$0xff] %v2289_v55  ;;  %v1788_v58 = vadd.f32 %v4006_v0, %v3150_v56  ;;  %v2300_v59 = vadd.f32 %v4006_v0, %v3278_v57 }
 0x1c6   : > { %v1779_v60 = vpop.f32.mrf.mxu0  ;;  %v2291_v61 = vpop.f32.mrf.mxu1 }
 0x1c7   : > { %2490 = vst [vmem:[%s3671_s29 + $0x358] sm:$0xff] %v1788_v58  ;;  %2618 = vst [vmem:[%s3671_s29 + $0x758] sm:$0xff] %v2300_v59  ;;  %v1780_v62 = vadd.f32 %v4006_v0, %v1779_v60  ;;  %v2292_v63 = vadd.f32 %v4006_v0, %v2291_v61 }
 0x1c8   : > { %v3153_v1 = vpop.f32.mrf.mxu0  ;;  %v3281_v2 = vpop.f32.mrf.mxu1 }
 0x1c9   : > { %2488 = vst [vmem:[%s3671_s29 + $0x348] sm:$0xff] %v1780_v62  ;;  %2616 = vst [vmem:[%s3671_s29 + $0x748] sm:$0xff] %v2292_v63  ;;  %v1801_v3 = vadd.f32 %v4006_v0, %v3153_v1  ;;  %v2313_v4 = vadd.f32 %v4006_v0, %v3281_v2 }
 0x1ca   : > { %v1792_v46 = vpop.f32.mrf.mxu0  ;;  %v2304_v5 = vpop.f32.mrf.mxu1 }
 0x1cb   : > { %2493 = vst [vmem:[%s3671_s29 + $0x370] sm:$0xff] %v1801_v3  ;;  %2621 = vst [vmem:[%s3671_s29 + $0x770] sm:$0xff] %v2313_v4  ;;  %v1793_v6 = vadd.f32 %v4006_v0, %v1792_v46  ;;  %v2305_v7 = vadd.f32 %v4006_v0, %v2304_v5 }
 0x1cc   : > { %v3154_v8 = vpop.f32.mrf.mxu0  ;;  %v3282_v9 = vpop.f32.mrf.mxu1 }
 0x1cd   : > { %2491 = vst [vmem:[%s3671_s29 + $0x360] sm:$0xff] %v1793_v6  ;;  %2619 = vst [vmem:[%s3671_s29 + $0x760] sm:$0xff] %v2305_v7  ;;  %v1804_v10 = vadd.f32 %v4006_v0, %v3154_v8  ;;  %v2316_v11 = vadd.f32 %v4006_v0, %v3282_v9 }
 0x1ce   : > { %v1795_v12 = vpop.f32.mrf.mxu0  ;;  %v2307_v13 = vpop.f32.mrf.mxu1 }
 0x1cf   : > { %2494 = vst [vmem:[%s3671_s29 + $0x378] sm:$0xff] %v1804_v10  ;;  %2622 = vst [vmem:[%s3671_s29 + $0x778] sm:$0xff] %v2316_v11  ;;  %v1796_v14 = vadd.f32 %v4006_v0, %v1795_v12  ;;  %v2308_v15 = vadd.f32 %v4006_v0, %v2307_v13 }
 0x1d0   : > { %v3157_v16 = vpop.f32.mrf.mxu0  ;;  %v3285_v17 = vpop.f32.mrf.mxu1 }
 0x1d1   : > { %2492 = vst [vmem:[%s3671_s29 + $0x368] sm:$0xff] %v1796_v14  ;;  %2620 = vst [vmem:[%s3671_s29 + $0x768] sm:$0xff] %v2308_v15  ;;  %v1817_v18 = vadd.f32 %v4006_v0, %v3157_v16  ;;  %v2329_v19 = vadd.f32 %v4006_v0, %v3285_v17 }
 0x1d2   : > { %v1808_v20 = vpop.f32.mrf.mxu0  ;;  %v2320_v21 = vpop.f32.mrf.mxu1 }
 0x1d3   : > { %2497 = vst [vmem:[%s3671_s29 + $0x390] sm:$0xff] %v1817_v18  ;;  %2625 = vst [vmem:[%s3671_s29 + $0x790] sm:$0xff] %v2329_v19  ;;  %v1809_v22 = vadd.f32 %v4006_v0, %v1808_v20  ;;  %v2321_v23 = vadd.f32 %v4006_v0, %v2320_v21 }
 0x1d4   : > { %v3158_v24 = vpop.f32.mrf.mxu0  ;;  %v3286_v25 = vpop.f32.mrf.mxu1 }
 0x1d5   : > { %2495 = vst [vmem:[%s3671_s29 + $0x380] sm:$0xff] %v1809_v22  ;;  %2623 = vst [vmem:[%s3671_s29 + $0x780] sm:$0xff] %v2321_v23  ;;  %v1820_v26 = vadd.f32 %v4006_v0, %v3158_v24  ;;  %v2332_v27 = vadd.f32 %v4006_v0, %v3286_v25 }
 0x1d6   : > { %v1811_v28 = vpop.f32.mrf.mxu0  ;;  %v2323_v29 = vpop.f32.mrf.mxu1 }
 0x1d7   : > { %2498 = vst [vmem:[%s3671_s29 + $0x398] sm:$0xff] %v1820_v26  ;;  %2626 = vst [vmem:[%s3671_s29 + $0x798] sm:$0xff] %v2332_v27  ;;  %v1812_v30 = vadd.f32 %v4006_v0, %v1811_v28  ;;  %v2324_v31 = vadd.f32 %v4006_v0, %v2323_v29 }
 0x1d8   : > { %v3161_v32 = vpop.f32.mrf.mxu0  ;;  %v3289_v33 = vpop.f32.mrf.mxu1 }
 0x1d9   : > { %2496 = vst [vmem:[%s3671_s29 + $0x388] sm:$0xff] %v1812_v30  ;;  %2624 = vst [vmem:[%s3671_s29 + $0x788] sm:$0xff] %v2324_v31  ;;  %v1833_v34 = vadd.f32 %v4006_v0, %v3161_v32  ;;  %v2345_v35 = vadd.f32 %v4006_v0, %v3289_v33 }
 0x1da   : > { %v1824_v36 = vpop.f32.mrf.mxu0  ;;  %v2336_v37 = vpop.f32.mrf.mxu1 }
 0x1db   : > { %2501 = vst [vmem:[%s3671_s29 + $0x3b0] sm:$0xff] %v1833_v34  ;;  %2629 = vst [vmem:[%s3671_s29 + $0x7b0] sm:$0xff] %v2345_v35  ;;  %v1825_v38 = vadd.f32 %v4006_v0, %v1824_v36  ;;  %v2337_v39 = vadd.f32 %v4006_v0, %v2336_v37 }
 0x1dc   : > { %v3162_v40 = vpop.f32.mrf.mxu0  ;;  %v3290_v41 = vpop.f32.mrf.mxu1 }
 0x1dd   : > { %2499 = vst [vmem:[%s3671_s29 + $0x3a0] sm:$0xff] %v1825_v38  ;;  %2627 = vst [vmem:[%s3671_s29 + $0x7a0] sm:$0xff] %v2337_v39  ;;  %v1836_v42 = vadd.f32 %v4006_v0, %v3162_v40  ;;  %v2348_v43 = vadd.f32 %v4006_v0, %v3290_v41 }
 0x1de   : > { %v1827_v44 = vpop.f32.mrf.mxu0  ;;  %v2339_v45 = vpop.f32.mrf.mxu1 }
 0x1df   : > { %2502 = vst [vmem:[%s3671_s29 + $0x3b8] sm:$0xff] %v1836_v42  ;;  %2630 = vst [vmem:[%s3671_s29 + $0x7b8] sm:$0xff] %v2348_v43  ;;  %v1828_v47 = vadd.f32 %v4006_v0, %v1827_v44  ;;  %v2340_v48 = vadd.f32 %v4006_v0, %v2339_v45 }
 0x1e0   : > { %v3165_v49 = vpop.f32.mrf.mxu0  ;;  %v3293_v50 = vpop.f32.mrf.mxu1 }
 0x1e1   : > { %2500 = vst [vmem:[%s3671_s29 + $0x3a8] sm:$0xff] %v1828_v47  ;;  %2628 = vst [vmem:[%s3671_s29 + $0x7a8] sm:$0xff] %v2340_v48  ;;  %v1849_v51 = vadd.f32 %v4006_v0, %v3165_v49  ;;  %v2361_v52 = vadd.f32 %v4006_v0, %v3293_v50 }
 0x1e2   : > { %v1840_v53 = vpop.f32.mrf.mxu0  ;;  %v2352_v54 = vpop.f32.mrf.mxu1 }
 0x1e3   : > { %2505 = vst [vmem:[%s3671_s29 + $0x3d0] sm:$0xff] %v1849_v51  ;;  %2633 = vst [vmem:[%s3671_s29 + $0x7d0] sm:$0xff] %v2361_v52  ;;  %v1841_v55 = vadd.f32 %v4006_v0, %v1840_v53  ;;  %v2353_v56 = vadd.f32 %v4006_v0, %v2352_v54 }
 0x1e4   : > { %v3166_v57 = vpop.f32.mrf.mxu0  ;;  %v3294_v58 = vpop.f32.mrf.mxu1 }
 0x1e5   : > { %2503 = vst [vmem:[%s3671_s29 + $0x3c0] sm:$0xff] %v1841_v55  ;;  %2631 = vst [vmem:[%s3671_s29 + $0x7c0] sm:$0xff] %v2353_v56  ;;  %v1852_v59 = vadd.f32 %v4006_v0, %v3166_v57  ;;  %v2364_v60 = vadd.f32 %v4006_v0, %v3294_v58 }
 0x1e6   : > { %v1843_v61 = vpop.f32.mrf.mxu0  ;;  %v2355_v62 = vpop.f32.mrf.mxu1 }
 0x1e7   : > { %2506 = vst [vmem:[%s3671_s29 + $0x3d8] sm:$0xff] %v1852_v59  ;;  %2634 = vst [vmem:[%s3671_s29 + $0x7d8] sm:$0xff] %v2364_v60  ;;  %v1844_v63 = vadd.f32 %v4006_v0, %v1843_v61  ;;  %v2356_v1 = vadd.f32 %v4006_v0, %v2355_v62 }
 0x1e8   : > { %v3169_v2 = vpop.f32.mrf.mxu0  ;;  %v3297_v3 = vpop.f32.mrf.mxu1 }
 0x1e9   : > { %2504 = vst [vmem:[%s3671_s29 + $0x3c8] sm:$0xff] %v1844_v63  ;;  %2632 = vst [vmem:[%s3671_s29 + $0x7c8] sm:$0xff] %v2356_v1  ;;  %v1865_v4 = vadd.f32 %v4006_v0, %v3169_v2  ;;  %v2377_v46 = vadd.f32 %v4006_v0, %v3297_v3 }
 0x1ea   : > { %v1856_v5 = vpop.f32.mrf.mxu0  ;;  %v2368_v6 = vpop.f32.mrf.mxu1 }
 0x1eb   : > { %2509 = vst [vmem:[%s3671_s29 + $0x3f0] sm:$0xff] %v1865_v4  ;;  %2637 = vst [vmem:[%s3671_s29 + $0x7f0] sm:$0xff] %v2377_v46  ;;  %v1857_v7 = vadd.f32 %v4006_v0, %v1856_v5  ;;  %v2369_v8 = vadd.f32 %v4006_v0, %v2368_v6 }
 0x1ec   : > { %v3170_v9 = vpop.f32.mrf.mxu0  ;;  %v3298_v10 = vpop.f32.mrf.mxu1 }
 0x1ed   : > { %2507 = vst [vmem:[%s3671_s29 + $0x3e0] sm:$0xff] %v1857_v7  ;;  %2635 = vst [vmem:[%s3671_s29 + $0x7e0] sm:$0xff] %v2369_v8  ;;  %v1868_v11 = vadd.f32 %v4006_v0, %v3170_v9  ;;  %v2380_v12 = vadd.f32 %v4006_v0, %v3298_v10 }
 0x1ee   : > { %v1859_v13 = vpop.f32.mrf.mxu0  ;;  %v2371_v14 = vpop.f32.mrf.mxu1 }
 0x1ef   : > { %2510 = vst [vmem:[%s3671_s29 + $0x3f8] sm:$0xff] %v1868_v11  ;;  %2638 = vst [vmem:[%s3671_s29 + $0x7f8] sm:$0xff] %v2380_v12  ;;  %v1860_v15 = vadd.f32 %v4006_v0, %v1859_v13  ;;  %v2372_v16 = vadd.f32 %v4006_v0, %v2371_v14 }
 0x1f1   : > { %2508 = vst [vmem:[%s3671_s29 + $0x3e8] sm:$0xff] %v1860_v15  ;;  %2636 = vst [vmem:[%s3671_s29 + $0x7e8] sm:$0xff] %v2372_v16 }
 0x1f2 PF: > { %s13_s14 = sadd.s32 1, %s3498_s14   ;;  %s4229_s12 = smov %s3494_s13 }
 0x1f3   : > { %p10_p5 = scmp.ge.s32.totalorder %s13_s14, 6   ;;  %s4230_s13 = smov %s4232_s15 }
 0x1f5   :  { %12 = sbr.rel (!%p10_p5) target bundleno = 2 (0x2), region = 65 }

</bundles_post_ra>
